<compile_context>
chip_gen: v7x
topology: tpu7x:2x2x1
jax: 0.10.0
libtpu: 0.0.40
codegen_flags: <defaults>
</compile_context>

<pallas_src>
import functools

import jax
import jax.numpy as jnp
from jax.experimental import pallas as pl
from jax.experimental.pallas import tpu as pltpu


def _spatial_attention_kernel(x_ref, p_ref, wqkv_ref, bqkv_ref, out_ref,
                              *, hp, out_dim, use_bf16):
    """G point clouds per grid step.

    x_ref    : [G, N, input_dim]   raw features (unpadded)
    p_ref    : [G, N, p_dim]       coords pre-scaled by sqrt(1/(2 sigma^2))
    wqkv_ref : [input_dim, 3*HP]   fused (lane-padded) QKV weights, 1/sqrt(H) in W_q
    bqkv_ref : [1, 3*HP]           fused (lane-padded) QKV biases,  1/sqrt(H) in b_q
    out_ref  : [G, N, out_dim]     H + X (residual), written directly (no padded lanes)
    """
    g, n, d_in = x_ref.shape
    x = x_ref[...]                                   # [G, N, D_in]
    w = wqkv_ref[...]                                # [D_in, 3*HP]

    # Fused Q/K/V projection (single MXU pass over K = input_dim).
    x2 = x.reshape(g * n, d_in)
    if use_bf16:
        qkv = jnp.dot(x2.astype(jnp.bfloat16), w.astype(jnp.bfloat16),
                      preferred_element_type=jnp.float32)
    else:
        qkv = jnp.dot(x2, w, preferred_element_type=jnp.float32)
    qkv = (qkv + bqkv_ref[...]).reshape(g, n, 3 * hp)

    q = qkv[:, :, 0 * hp:1 * hp]                     # lane-aligned static slices
    k = qkv[:, :, 1 * hp:2 * hp]
    v = qkv[:, :, 2 * hp:3 * hp]

    # scores = (x Wq / sqrt(H) + bq/sqrt(H)) (x Wk + bk)^T  -- kept in f32.
    scores = jnp.einsum('gqd,gkd->gqk', q, k,
                        preferred_element_type=jnp.float32)       # [G, N, N]

    # Gaussian spatial decay; gamma = 1/(2 sigma^2) is pre-folded into p.
    # gamma*dist2[q,k] = ||p_q||^2 + ||p_k||^2 - 2 p_q.p_k, all computed in-kernel.
    p = p_ref[...]                                                 # [G, N, p_dim]
    psq = p * p
    sq_row = jnp.sum(psq, axis=-1, keepdims=True)                  # [G, N, 1]
    pp = jnp.einsum('gqd,gkd->gqk', p, p,
                    preferred_element_type=jnp.float32)            # [G, N, N]
    sq_col = jnp.einsum('gqd,gkd->gqk', jnp.ones_like(p), psq,
                        preferred_element_type=jnp.float32)        # row q = ||p_k||^2
    dist2 = jnp.maximum(sq_row + sq_col - 2.0 * pp, 0.0)           # gamma * dist^2
    s = scores * jnp.exp(-dist2)

    # softmax_one (exp(s-m) / (1 + sum exp(s-m))) with deferred normalization:
    # the normalized attention matrix is never materialized.
    m = jnp.max(s, axis=-1, keepdims=True)
    e = jnp.exp(s - m)
    denom = 1.0 + jnp.sum(e, axis=-1, keepdims=True)               # [G, N, 1]
    if use_bf16:
        h = jnp.einsum('gqk,gkd->gqd', e.astype(jnp.bfloat16),
                       v.astype(jnp.bfloat16),
                       preferred_element_type=jnp.float32)
    else:
        h = jnp.einsum('gqk,gkd->gqd', e, v,
                       preferred_element_type=jnp.float32)         # [G, N, HP]

    h_out = h[:, :, :out_dim] * pl.reciprocal(denom, approx=False)

    # Residual (input_dim == output_dim).
    out_ref[...] = (h_out + x).astype(out_ref.dtype)


def _round_up(x, m):
    return (x + m - 1) // m * m


def _pick_group(batch, max_group=4):
    """Largest divisor of `batch` <= max_group that leaves >= 2 grid steps
    (keeps the grid even/multi-step so both v7x TensorCores get work)."""
    for g in range(min(max_group, batch), 0, -1):
        if batch % g == 0 and (batch // g >= 2 or batch == g == 1):
            return g
    return 1


def spatial_attention_layer(x_full, params, *, input_dim, hidden_dim, p_dim,
                            group_size=None, use_bf16_mxu=False):
    """x_full: [B, N, input_dim + p_dim] f32 -> [B, N, output_dim] f32."""
    B, N, F = x_full.shape
    assert F == input_dim + p_dim
    output_dim = params["wv"].shape[1]
    assert input_dim == output_dim, "plain residual requires input_dim == output_dim"
    # TODO(synk): res_proj branch (input_dim != output_dim) not implemented.

    LANE = 128
    HP = _round_up(max(hidden_dim, output_dim), LANE)   # padded per-head width (weights only)

    x = x_full[..., :input_dim]                          # [B, N, input_dim]
    p = x_full[..., input_dim:input_dim + p_dim]         # [B, N, p_dim]

    # ---- wrapper-side constant folding (cheap, O(B*N*p_dim) / O(params)) ----
    sigma2 = jnp.maximum(jnp.exp(params["log_sigma"]) ** 2, 1e-4)   # clamp like torch
    gamma = 0.5 / sigma2                                            # 1/(2 sigma^2)
    p_s = p * jnp.sqrt(gamma)                                       # fold gamma into coords

    inv_sqrt_h = 1.0 / (hidden_dim ** 0.5)

    def pad_cols(a, width):
        return jnp.pad(a, ((0, 0), (0, width - a.shape[1])))

    # Fused, lane-padded QKV weights: [input_dim, 3*HP], biases [1, 3*HP].
    w_qkv = jnp.concatenate([pad_cols(params["wq"] * inv_sqrt_h, HP),
                             pad_cols(params["wk"], HP),
                             pad_cols(params["wv"], HP)], axis=1)
    b_qkv = jnp.concatenate([pad_cols(params["bq"] * inv_sqrt_h, HP),
                             pad_cols(params["bk"], HP),
                             pad_cols(params["bv"], HP)], axis=1)

    G = group_size if group_size is not None else _pick_group(B)
    assert B % G == 0, "group_size must divide the batch"
    grid = (B // G,)

    kernel = functools.partial(_spatial_attention_kernel, hp=HP,
                               out_dim=output_dim, use_bf16=use_bf16_mxu)

    out = pl.pallas_call(
        kernel,
        out_shape=jax.ShapeDtypeStruct((B, N, output_dim), jnp.float32),
        grid_spec=pltpu.PrefetchScalarGridSpec(
            num_scalar_prefetch=0,
            grid=grid,
            in_specs=[
                pl.BlockSpec((G, N, input_dim), lambda b: (b, 0, 0)),   # x (unpadded)
                pl.BlockSpec((G, N, p_dim), lambda b: (b, 0, 0)),       # scaled coords
                pl.BlockSpec((input_dim, 3 * HP), lambda b: (0, 0)),    # W_qkv (resident)
                pl.BlockSpec((1, 3 * HP), lambda b: (0, 0)),            # b_qkv (resident)
            ],
            out_specs=pl.BlockSpec((G, N, output_dim), lambda b: (b, 0, 0)),
        ),
        compiler_params=pltpu.CompilerParams(
            dimension_semantics=("parallel",),   # megacore sharding on v7x
            # vmem_limit_bytes intentionally left at default: working set is a few MiB.
        ),
    )(x, p_s, w_qkv, b_qkv)

    return out


def _reference(x_full, params, *, input_dim, hidden_dim, p_dim):
    """Pure-JAX reference mirroring the PyTorch forward (message_passing=True,
    use_softmax=False, residual=True, input_dim == output_dim), per cloud."""
    def one(xf):
        x = xf[:, :input_dim]
        p = xf[:, input_dim:input_dim + p_dim]
        q = x @ params["wq"] + params["bq"][0]
        k = x @ params["wk"] + params["bk"][0]
        v = x @ params["wv"] + params["bv"][0]
        scores = (q @ k.T) / (hidden_dim ** 0.5)
        d = p[:, None, :] - p[None, :, :]
        dist2 = jnp.sum(d * d, axis=-1)
        sigma2 = jnp.maximum(jnp.exp(params["log_sigma"]) ** 2, 1e-4)
        s = scores * jnp.exp(-dist2 / (2.0 * sigma2))
        m = jnp.max(s, axis=-1, keepdims=True)
        e = jnp.exp(s - m)
        a = e / (1.0 + jnp.sum(e, axis=-1, keepdims=True))
        return a @ v + x
    return jax.vmap(one)(x_full)


if __name__ == "__main__":
    # B independent point clouds, N points each (fills the MXU M dimension),
    # input_dim features + p_dim spatial coordinates per point.
    B = 8
    N = 128
    INPUT_DIM = 32
    HIDDEN_DIM = 32          # output_dim defaults to hidden_dim
    P_DIM = 3
    SIGMA_INIT = 1.0

    key = jax.random.PRNGKey(0)
    kx, kq, kk, kv, kbq, kbk, kbv = jax.random.split(key, 7)

    x_full = jax.random.normal(kx, (B, N, INPUT_DIM + P_DIM), dtype=jnp.float32)

    scale = 1.0 / (INPUT_DIM ** 0.5)
    params = {
        # Linear weights stored as [in_dim, out_dim] (transpose of torch layout).
        "wq": jax.random.uniform(kq, (INPUT_DIM, HIDDEN_DIM), jnp.float32, -scale, scale),
        "wk": jax.random.uniform(kk, (INPUT_DIM, HIDDEN_DIM), jnp.float32, -scale, scale),
        "wv": jax.random.uniform(kv, (INPUT_DIM, HIDDEN_DIM), jnp.float32, -scale, scale),
        "bq": jax.random.uniform(kbq, (1, HIDDEN_DIM), jnp.float32, -scale, scale),
        "bk": jax.random.uniform(kbk, (1, HIDDEN_DIM), jnp.float32, -scale, scale),
        "bv": jax.random.uniform(kbv, (1, HIDDEN_DIM), jnp.float32, -scale, scale),
        "log_sigma": jnp.log(jnp.full((1,), SIGMA_INIT, dtype=jnp.float32)),
    }

    fwd = jax.jit(functools.partial(
        spatial_attention_layer,
        input_dim=INPUT_DIM, hidden_dim=HIDDEN_DIM, p_dim=P_DIM,
        use_bf16_mxu=False))   # flip to True for bf16 MXU (needs looser tolerance)

    out = jax.block_until_ready(fwd(x_full, params))

    ref = _reference(x_full, params,
                     input_dim=INPUT_DIM, hidden_dim=HIDDEN_DIM, p_dim=P_DIM)
    assert out.shape == (B, N, HIDDEN_DIM)
    assert jnp.allclose(out, ref, atol=1e-4, rtol=1e-4), "mismatch vs reference"

    print("KERNEL_OK")
</pallas_src>

<mosaic_0001>
module attributes {stable_mosaic.version = 11 : i64} {
  func.func @_spatial_attention_kernel(%arg0: i32, %arg1: memref<4x128x32xf32, #tpu.memory_space<vmem>>, %arg2: memref<4x128x3xf32, #tpu.memory_space<vmem>>, %arg3: memref<32x384xf32, #tpu.memory_space<vmem>>, %arg4: memref<1x384xf32, #tpu.memory_space<vmem>>, %arg5: memref<4x128x32xf32, #tpu.memory_space<vmem>>) attributes {dimension_semantics = [#tpu.dimension_semantics<parallel>], iteration_bounds = array<i64: 2>, scalar_prefetch = 0 : i64, scratch_operands = 0 : i64, tpu.core_type = #tpu.core_type<tc>, window_params = [{transform_indices = @transform_0, window_bounds = array<i64: 4, 128, 32>}, {transform_indices = @transform_1, window_bounds = array<i64: 4, 128, 3>}, {pipeline_mode = #tpu.pipeline_mode<synchronous>, transform_indices = @transform_2, window_bounds = array<i64: 32, 384>}, {pipeline_mode = #tpu.pipeline_mode<synchronous>, transform_indices = @transform_3, window_bounds = array<i64: 1, 384>}, {transform_indices = @transform_4, window_bounds = array<i64: 4, 128, 32>}]} {
    %c0 = arith.constant 0 : index
    %c0_0 = arith.constant 0 : index
    %c0_1 = arith.constant 0 : index
    %0 = vector.load %arg1[%c0, %c0_0, %c0_1] : memref<4x128x32xf32, #tpu.memory_space<vmem>>, vector<4x128x32xf32>
    %c0_2 = arith.constant 0 : index
    %c0_3 = arith.constant 0 : index
    %1 = vector.load %arg3[%c0_2, %c0_3] : memref<32x384xf32, #tpu.memory_space<vmem>>, vector<32x384xf32>
    %2 = vector.shape_cast %0 : vector<4x128x32xf32> to vector<512x32xf32>
    %cst = arith.constant dense<0.000000e+00> : vector<512x384xf32>
    %3 = tpu.matmul %2, %1, %cst {dimension_numbers = #tpu.dot_dimension_numbers<[1], [0], [0], [1], [0, 0, 1, 1], [], []>} : vector<512x32xf32>, vector<32x384xf32>, vector<512x384xf32> -> vector<512x384xf32>
    %c0_4 = arith.constant 0 : index
    %c0_5 = arith.constant 0 : index
    %4 = vector.load %arg4[%c0_4, %c0_5] : memref<1x384xf32, #tpu.memory_space<vmem>>, vector<1x384xf32>
    %5 = vector.broadcast %4 : vector<1x384xf32> to vector<512x384xf32>
    %6 = arith.addf %3, %5 : vector<512x384xf32>
    %7 = vector.shape_cast %6 : vector<512x384xf32> to vector<4x128x384xf32>
    %8 = vector.extract_strided_slice %7 {offsets = [0, 0, 0], sizes = [4, 128, 128], strides = [1, 1, 1]} : vector<4x128x384xf32> to vector<4x128x128xf32>
    %9 = vector.extract_strided_slice %7 {offsets = [0, 0, 128], sizes = [4, 128, 128], strides = [1, 1, 1]} : vector<4x128x384xf32> to vector<4x128x128xf32>
    %10 = vector.extract_strided_slice %7 {offsets = [0, 0, 256], sizes = [4, 128, 128], strides = [1, 1, 1]} : vector<4x128x384xf32> to vector<4x128x128xf32>
    "tpu.trace_start"() <{level = 10 : i32, message = "gqd,gkd->gqk"}> : () -> ()
    %cst_6 = arith.constant dense<0.000000e+00> : vector<4x128x128xf32>
    %11 = tpu.matmul %8, %9, %cst_6 {dimension_numbers = #tpu.dot_dimension_numbers<[2], [2], [1], [1], [0, 0, 0, 1, 1, 1], [0], [0]>} : vector<4x128x128xf32>, vector<4x128x128xf32>, vector<4x128x128xf32> -> vector<4x128x128xf32>
    "tpu.trace_stop"() : () -> ()
    %c0_7 = arith.constant 0 : index
    %c0_8 = arith.constant 0 : index
    %c0_9 = arith.constant 0 : index
    %12 = vector.load %arg2[%c0_7, %c0_8, %c0_9] : memref<4x128x3xf32, #tpu.memory_space<vmem>>, vector<4x128x3xf32>
    %13 = arith.mulf %12, %12 : vector<4x128x3xf32>
    %cst_10 = arith.constant dense<0.000000e+00> : vector<4x128xf32>
    %14 = vector.multi_reduction <add>, %13, %cst_10 [2] : vector<4x128x3xf32> to vector<4x128xf32>
    %15 = vector.shape_cast %14 : vector<4x128xf32> to vector<4x128x1xf32>
    "tpu.trace_start"() <{level = 10 : i32, message = "gqd,gkd->gqk"}> : () -> ()
    %cst_11 = arith.constant dense<0.000000e+00> : vector<4x128x128xf32>
    %16 = tpu.matmul %12, %12, %cst_11 {dimension_numbers = #tpu.dot_dimension_numbers<[2], [2], [1], [1], [0, 0, 0, 1, 1, 1], [0], [0]>} : vector<4x128x3xf32>, vector<4x128x3xf32>, vector<4x128x128xf32> -> vector<4x128x128xf32>
    %cst_12 = arith.constant 1.000000e+00 : f32
    "tpu.trace_stop"() : () -> ()
    %17 = vector.broadcast %cst_12 : f32 to vector<4x128x3xf32>
    "tpu.trace_start"() <{level = 10 : i32, message = "gqd,gkd->gqk"}> : () -> ()
    %cst_13 = arith.constant dense<0.000000e+00> : vector<4x128x128xf32>
    %18 = tpu.matmul %17, %13, %cst_13 {dimension_numbers = #tpu.dot_dimension_numbers<[2], [2], [1], [1], [0, 0, 0, 1, 1, 1], [0], [0]>} : vector<4x128x3xf32>, vector<4x128x3xf32>, vector<4x128x128xf32> -> vector<4x128x128xf32>
    "tpu.trace_stop"() : () -> ()
    %19 = vector.broadcast %15 : vector<4x128x1xf32> to vector<4x128x128xf32>
    %20 = arith.addf %19, %18 : vector<4x128x128xf32>
    %cst_14 = arith.constant 2.000000e+00 : f32
    %21 = vector.broadcast %cst_14 : f32 to vector<4x128x128xf32>
    %22 = arith.mulf %21, %16 : vector<4x128x128xf32>
    %23 = arith.subf %20, %22 : vector<4x128x128xf32>
    %cst_15 = arith.constant 0.000000e+00 : f32
    %24 = vector.broadcast %cst_15 : f32 to vector<4x128x128xf32>
    %25 = arith.maximumf %23, %24 : vector<4x128x128xf32>
    %cst_16 = arith.constant 0.000000e+00 : f32
    %26 = vector.broadcast %cst_16 : f32 to vector<4x128x128xf32>
    %27 = arith.subf %26, %25 : vector<4x128x128xf32>
    %28 = math.exp %27 : vector<4x128x128xf32>
    %29 = arith.mulf %11, %28 : vector<4x128x128xf32>
    %cst_17 = arith.constant dense<0xFF800000> : vector<4x128xf32>
    %30 = vector.multi_reduction <maximumf>, %29, %cst_17 [2] : vector<4x128x128xf32> to vector<4x128xf32>
    %31 = vector.shape_cast %30 : vector<4x128xf32> to vector<4x128x1xf32>
    %32 = vector.broadcast %31 : vector<4x128x1xf32> to vector<4x128x128xf32>
    %33 = arith.subf %29, %32 : vector<4x128x128xf32>
    %34 = math.exp %33 : vector<4x128x128xf32>
    %cst_18 = arith.constant dense<0.000000e+00> : vector<4x128xf32>
    %35 = vector.multi_reduction <add>, %34, %cst_18 [2] : vector<4x128x128xf32> to vector<4x128xf32>
    %36 = vector.shape_cast %35 : vector<4x128xf32> to vector<4x128x1xf32>
    %cst_19 = arith.constant 1.000000e+00 : f32
    %37 = vector.broadcast %cst_19 : f32 to vector<4x128x1xf32>
    %38 = arith.addf %37, %36 : vector<4x128x1xf32>
    "tpu.trace_start"() <{level = 10 : i32, message = "gqk,gkd->gqd"}> : () -> ()
    %cst_20 = arith.constant dense<0.000000e+00> : vector<4x128x128xf32>
    %39 = tpu.matmul %34, %10, %cst_20 {dimension_numbers = #tpu.dot_dimension_numbers<[2], [1], [1], [2], [0, 0, 0, 1, 1, 2], [0], [0]>} : vector<4x128x128xf32>, vector<4x128x128xf32>, vector<4x128x128xf32> -> vector<4x128x128xf32>
    "tpu.trace_stop"() : () -> ()
    %40 = vector.extract_strided_slice %39 {offsets = [0, 0, 0], sizes = [4, 128, 32], strides = [1, 1, 1]} : vector<4x128x128xf32> to vector<4x128x32xf32>
    %41 = tpu.reciprocal %38 : vector<4x128x1xf32> -> vector<4x128x1xf32>
    %42 = vector.broadcast %41 : vector<4x128x1xf32> to vector<4x128x32xf32>
    %43 = arith.mulf %40, %42 : vector<4x128x32xf32>
    %44 = arith.addf %43, %0 : vector<4x128x32xf32>
    %c0_21 = arith.constant 0 : index
    %c0_22 = arith.constant 0 : index
    %c0_23 = arith.constant 0 : index
    %45 = vector.load %arg5[%c0_21, %c0_22, %c0_23] : memref<4x128x32xf32, #tpu.memory_space<vmem>>, vector<4x128x32xf32>
    tpu.vector_store %arg5[%c0_21, %c0_22, %c0_23], %44 {strides = array<i32>} : memref<4x128x32xf32, #tpu.memory_space<vmem>>, vector<4x128x32xf32>,
    return
  }
  func.func @transform_0(%arg0: i32) -> (i32, i32, i32) {
    %c0_i32 = arith.constant 0 : i32
    %c0_i32_0 = arith.constant 0 : i32
    %c0_i32_1 = arith.constant 0 : i32
    return %arg0, %c0_i32, %c0_i32_0 : i32, i32, i32
  }
  func.func @transform_1(%arg0: i32) -> (i32, i32, i32) {
    %c0_i32 = arith.constant 0 : i32
    %c0_i32_0 = arith.constant 0 : i32
    %c0_i32_1 = arith.constant 0 : i32
    return %arg0, %c0_i32, %c0_i32_0 : i32, i32, i32
  }
  func.func @transform_2(%arg0: i32) -> (i32, i32) {
    %c0_i32 = arith.constant 0 : i32
    %c0_i32_0 = arith.constant 0 : i32
    %c0_i32_1 = arith.constant 0 : i32
    return %c0_i32, %c0_i32_0 : i32, i32
  }
  func.func @transform_3(%arg0: i32) -> (i32, i32) {
    %c0_i32 = arith.constant 0 : i32
    %c0_i32_0 = arith.constant 0 : i32
    %c0_i32_1 = arith.constant 0 : i32
    return %c0_i32, %c0_i32_0 : i32, i32
  }
  func.func @transform_4(%arg0: i32) -> (i32, i32, i32) {
    %c0_i32 = arith.constant 0 : i32
    %c0_i32_0 = arith.constant 0 : i32
    %c0_i32_1 = arith.constant 0 : i32
    return %arg0, %c0_i32, %c0_i32_0 : i32, i32, i32
  }
}

</mosaic_0001>

<bundles_post_ra>
// kernel: spatial_attention_layer.1
= control target key start
LH: loop header
LB: loop body
LE: loop exit
PB: predicated region body
PF: predicated region fallthrough
CT: control target
= control target key end

     0   :  { %s8861_s15 = smov 0   ;;  %s12227_s0 = inlined_call_operand.vmem [shape: f32[8,128,32], index: 0, kind: input, shape index: {}]   ;;  %s12228_s1 = inlined_call_operand.vmem [shape: f32[8,128,3], index: 1, kind: input, shape index: {}]   ;;  %s12229_s2 = inlined_call_operand.vmem [shape: f32[32,384], index: 2, kind: input, shape index: {}]   ;;  %s12230_s3 = inlined_call_operand.vmem [shape: f32[1,384], index: 3, kind: input, shape index: {}]   ;;  %s12231_s4 = inlined_call_operand.vmem [shape: f32[8,128,32], index: 4, kind: output, shape index: {}]  }
   0x1 LB: > { %s5729_s16 = sadd.s32 4294967295, %s8832_s15   ;;  %p5733_p0 = scmp.ge.s32.totalorder %s8832_s15, 1  ;;  %s8832_s15 = sphi %s8861_s15, %s14_s15  }
   0x2   : > { %p176_p1 = scmp.lt.s32.totalorder %s8832_s15, 3 }
   0x4   : > { %p177_p2 = pnand %p5733_p0, %p176_p1 }
   0x6   : > { %180 = sbr.rel (%p177_p2) target bundleno = 1416 (0x588), region = 36 }
   0xd   : > { %v296_v0 = vld [vmem:[%s12229_s2 + $0x8] sm:$0xff]  ;;  %v299_v1 = vld [vmem:[%s12229_s2 + $0x20] sm:$0xff]  ;;  %s5734_s23 = sshll.u32 %s5729_s16, 2  ;;  %v298_v4 = vld [vmem:[%s12229_s2 + $0x18] sm:$0xff]  ;;  %v8834_v7 = vmov 0.0   ;;  %vm324_vm0 = vcmask 261120  }
   0xe   : > { %v295_v2 = vld [vmem:[%s12229_s2] sm:$0xff]  ;;  %v7712_v3 = vpack.c.bf16 %v299_v1, %v296_v0  ;;  %v302_v5 = vld [vmem:[%s12229_s2 + $0x38] sm:$0xff]  ;;  %v305_v6 = vld [vmem:[%s12229_s2 + $0x50] sm:$0xff]  ;;  %581 = vmatprep.mubr.f32.mxu0 %v8834_v7  ;;  %p211_p3 = scmp.lt.s32.totalorder %s5734_s23, 7  ;;  %vm2059_vm1 = vcmask 23552  }
   0xf   : > { %v7714_v8 = vpack.c.bf16 %v298_v4, %v295_v2  ;;  %v7716_v9 = vpack.c.bf16 %v305_v6, %v302_v5  ;;  %v301_v10 = vld [vmem:[%s12229_s2 + $0x30] sm:$0xff]  ;;  %v304_v11 = vld [vmem:[%s12229_s2 + $0x48] sm:$0xff]  ;;  %v303_v14 = vld [vmem:[%s12229_s2 + $0x40] sm:$0xff] }
  0x10   : > { %v297_v12 = vld [vmem:[%s12229_s2 + $0x10] sm:$0xff]  ;;  %7713 = vmatprep.subr.bf16.mxu0 %v7712_v3  ;;  %s12641_s23 = smov (!%p211_p3, %s5734_s23), 7  ;;  %v300_v13 = vld [vmem:[%s12229_s2 + $0x28] sm:$0xff]  ;;  %v306_v15 = vld [vmem:[%s12229_s2 + $0x58] sm:$0xff]  ;;  %v7718_v16 = vpack.c.bf16 %v304_v11, %v301_v10 }
  0x11   : > { %7715 = vmatpush1.bf16.msra.mxu0 %v7714_v8  ;;  %v7720_v17 = vpack.c.bf16 %v300_v13, %v297_v12  ;;  %v7724_v18 = vpack.c.bf16 %v306_v15, %v303_v14  ;;  %s8906_s17 = sshll.u32 %s12641_s23, 7  ;;  %vm9709_vm2 = vmpackc.low %vm2059_vm1, %vm2059_vm1 }
  0x12   : > { %7717 = vmatprep.subr.bf16.mxu0 %v7716_v9  ;;  %s8912_s20 = scalar_lea.vmem %s12227_s0, %s8906_s17  ;;  %s9692_s25 = scalar_lea.vmem %s12228_s1, %s8906_s17 }
  0x13   : > { %7721 = vmatprep.subr.bf16.mxu1 %v7720_v17  ;;  %v231_v19 = vld [vmem:[%s8912_s20] sm:$0xff]  ;;  %v232_v20 = vld [vmem:[%s8912_s20 + $0x8] sm:$0xff]  ;;  %v233_v21 = vld [vmem:[%s8912_s20 + $0x10] sm:$0xff]  ;;  %s11958_s28 = scalar_lea.vmem %s12231_s4, %s8906_s17 }
  0x14   : > { %7723 = vmatpush3.bf16.msra.mxu1 %v7720_v17  ;;  %6720 = vmatprep.mubr.msk.f32.mxu1 %vm324_vm0, %v231_v19  ;;  %v234_v22 = vld [vmem:[%s8912_s20 + $0x18] sm:$0xff]  ;;  %v235_v23 = vld [vmem:[%s8912_s20 + $0x20] sm:$0xff]  ;;  %v236_v24 = vld [vmem:[%s8912_s20 + $0x28] sm:$0xff] }
  0x15   : > { %7719 = vmatpush1.bf16.msra.mxu0 %v7718_v16  ;;  %7725 = vmatprep.subr.bf16.mxu1 %v7724_v18  ;;  %v237_v25 = vld [vmem:[%s8912_s20 + $0x30] sm:$0xff]  ;;  %v238_v26 = vld [vmem:[%s8912_s20 + $0x38] sm:$0xff]  ;;  %v239_v27 = vld [vmem:[%s8912_s20 + $0x40] sm:$0xff] }
  0x16   : > { %v240_v28 = vld [vmem:[%s8912_s20 + $0x48] sm:$0xff]  ;;  %v241_v29 = vld [vmem:[%s8912_s20 + $0x50] sm:$0xff]  ;;  %v242_v30 = vld [vmem:[%s8912_s20 + $0x58] sm:$0xff] }
  0x17   : > { %v243_v31 = vld [vmem:[%s8912_s20 + $0x60] sm:$0xff]  ;;  %v244_v32 = vld [vmem:[%s8912_s20 + $0x68] sm:$0xff]  ;;  %v245_v33 = vld [vmem:[%s8912_s20 + $0x70] sm:$0xff] }
  0x18   : > { %5743 = vmatmul.mubr.msk.f32.vlgmr.msra.gmra.mrb[0].mxu0 %vm324_vm0, %v231_v19  ;;  %7727 = vmatpush3.bf16.msra.mxu1 %v7724_v18  ;;  %v246_v34 = vld [vmem:[%s8912_s20 + $0x78] sm:$0xff]  ;;  %v247_v35 = vld [vmem:[%s8912_s20 + $0x80] sm:$0xff]  ;;  %v248_v36 = vld [vmem:[%s8912_s20 + $0x88] sm:$0xff] }
  0x19   : > { %587 = vmatprep.mubr.f32.mxu0 %v8834_v7  ;;  %v249_v37 = vld [vmem:[%s8912_s20 + $0x90] sm:$0xff]  ;;  %v250_v38 = vld [vmem:[%s8912_s20 + $0x98] sm:$0xff]  ;;  %v251_v39 = vld [vmem:[%s8912_s20 + $0xa0] sm:$0xff] }
  0x1a   : > { %v8979_v40 = vld [vmem:[%s8912_s20 + $0xa8] sm:$0xff]  ;;  %v8982_v41 = vld [vmem:[%s8912_s20 + $0xb0] sm:$0xff]  ;;  %v8991_v42 = vld [vmem:[%s8912_s20 + $0xb8] sm:$0xff] }
  0x1b   : > { %6721 = vmatmul.mubr.msk.f32.vlgmr.msra.gmra.mrb[0].mxu1 %vm324_vm0, %v232_v20  ;;  %v8994_v43 = vld [vmem:[%s8912_s20 + $0xc0] sm:$0xff]  ;;  %v9003_v44 = vld [vmem:[%s8912_s20 + $0xc8] sm:$0xff]  ;;  %v9006_v45 = vld [vmem:[%s8912_s20 + $0xd0] sm:$0xff] }
  0x1c   : > { %5744 = vmatmul.mubr.msk.f32.gmra.mrb[2].mxu0 %vm324_vm0, %v232_v20  ;;  %6723 = vmatprep.mubr.msk.f32.mxu1 %vm324_vm0, %v233_v21  ;;  %v9015_v46 = vld [vmem:[%s8912_s20 + $0xd8] sm:$0xff]  ;;  %v9018_v47 = vld [vmem:[%s8912_s20 + $0xe0] sm:$0xff]  ;;  %v9027_v48 = vld [vmem:[%s8912_s20 + $0xe8] sm:$0xff]  ;;  %v309_v20 = vlaneseq }
  0x1d   : > { %593 = vmatprep.mubr.f32.mxu0 %v8834_v7  ;;  %v9030_v49 = vld [vmem:[%s8912_s20 + $0xf0] sm:$0xff]  ;;  %v9039_v50 = vld [vmem:[%s8912_s20 + $0xf8] sm:$0xff]  ;;  %v9042_v51 = vld [vmem:[%s8912_s20 + $0x100] sm:$0xff] }
  0x1e   : > { %v9051_v52 = vld [vmem:[%s8912_s20 + $0x108] sm:$0xff]  ;;  %v9054_v53 = vld [vmem:[%s8912_s20 + $0x110] sm:$0xff]  ;;  %v9063_v54 = vld [vmem:[%s8912_s20 + $0x118] sm:$0xff] }
  0x1f   : > { %6724 = vmatmul.mubr.msk.f32.gmra.mrb[2].mxu1 %vm324_vm0, %v234_v22  ;;  %v9066_v55 = vld [vmem:[%s8912_s20 + $0x120] sm:$0xff]  ;;  %v9075_v56 = vld [vmem:[%s8912_s20 + $0x128] sm:$0xff]  ;;  %v9078_v57 = vld [vmem:[%s8912_s20 + $0x130] sm:$0xff] }
  0x20   : > { %5745 = vmatmul.mubr.msk.f32.gmra.mrb[4].mxu0 %vm324_vm0, %v233_v21  ;;  %6726 = vmatprep.mubr.msk.f32.mxu1 %vm324_vm0, %v235_v23  ;;  %v9087_v58 = vld [vmem:[%s8912_s20 + $0x138] sm:$0xff]  ;;  %v9090_v59 = vld [vmem:[%s8912_s20 + $0x140] sm:$0xff]  ;;  %v9099_v60 = vld [vmem:[%s8912_s20 + $0x148] sm:$0xff]  ;;  %v9302_v21 = vshrl.u32 %v309_v20, 7 }
  0x21   : > { %599 = vmatprep.mubr.f32.mxu0 %v8834_v7  ;;  %v9102_v61 = vld [vmem:[%s8912_s20 + $0x150] sm:$0xff]  ;;  %v9109_v62 = vld [vmem:[%s8912_s20 + $0x158] sm:$0xff]  ;;  %v9115_v63 = vld [vmem:[%s8912_s20 + $0x160] sm:$0xff] }
  0x22   : > { %v9124_v0 = vld [vmem:[%s8912_s20 + $0x168] sm:$0xff]  ;;  %v9128_v1 = vld [vmem:[%s8912_s20 + $0x170] sm:$0xff]  ;;  %v9137_v2 = vld [vmem:[%s8912_s20 + $0x178] sm:$0xff] }
  0x23   : > { %6727 = vmatmul.mubr.msk.f32.gmra.mrb[4].mxu1 %vm324_vm0, %v236_v24  ;;  %v9141_v3 = vld [vmem:[%s8912_s20 + $0x180] sm:$0xff]  ;;  %v9150_v4 = vld [vmem:[%s8912_s20 + $0x188] sm:$0xff]  ;;  %v9154_v5 = vld [vmem:[%s8912_s20 + $0x190] sm:$0xff] }
  0x24   : > { %5746 = vmatmul.mubr.msk.f32.gmra.mrb[6].mxu0 %vm324_vm0, %v234_v22  ;;  %6729 = vmatprep.mubr.msk.f32.mxu1 %vm324_vm0, %v237_v25  ;;  %v9163_v6 = vld [vmem:[%s8912_s20 + $0x198] sm:$0xff]  ;;  %v9167_v8 = vld [vmem:[%s8912_s20 + $0x1a0] sm:$0xff]  ;;  %v9176_v9 = vld [vmem:[%s8912_s20 + $0x1a8] sm:$0xff]  ;;  %v311_v22 = vsub.s32 0, %v9302_v21 }
  0x25   : > { %605 = vmatprep.mubr.f32.mxu0 %v8834_v7  ;;  %v9180_v10 = vld [vmem:[%s8912_s20 + $0x1b0] sm:$0xff]  ;;  %v9189_v11 = vld [vmem:[%s8912_s20 + $0x1b8] sm:$0xff]  ;;  %v9193_v12 = vld [vmem:[%s8912_s20 + $0x1c0] sm:$0xff] }
  0x26   : > { %v9202_v13 = vld [vmem:[%s8912_s20 + $0x1c8] sm:$0xff]  ;;  %v9206_v14 = vld [vmem:[%s8912_s20 + $0x1d0] sm:$0xff]  ;;  %v9215_v15 = vld [vmem:[%s8912_s20 + $0x1d8] sm:$0xff] }
  0x27   : > { %6730 = vmatmul.mubr.msk.f32.gmra.mrb[6].mxu1 %vm324_vm0, %v238_v26  ;;  %v9219_v16 = vld [vmem:[%s8912_s20 + $0x1e0] sm:$0xff]  ;;  %v9228_v17 = vld [vmem:[%s8912_s20 + $0x1e8] sm:$0xff]  ;;  %v9232_v18 = vld [vmem:[%s8912_s20 + $0x1f0] sm:$0xff] }
  0x28   : > { %5747 = vmatmul.mubr.msk.f32.gmra.mrb[8].mxu0 %vm324_vm0, %v235_v23  ;;  %6732 = vmatprep.mubr.msk.f32.mxu1 %vm324_vm0, %v239_v27  ;;  %v9241_v19 = vld [vmem:[%s8912_s20 + $0x1f8] sm:$0xff]  ;;  %v9312_v23 = vld [vmem:[%s12230_s3] sm:$0x7] }
  0x29   : > { %611 = vmatprep.mubr.f32.mxu0 %v8834_v7 }
  0x2b   : > { %6733 = vmatmul.mubr.msk.f32.gmra.mrb[8].mxu1 %vm324_vm0, %v240_v28 }
  0x2c   : > { %5748 = vmatmul.mubr.msk.f32.gmra.mrb[10].mxu0 %vm324_vm0, %v236_v24  ;;  %6735 = vmatprep.mubr.msk.f32.mxu1 %vm324_vm0, %v241_v29  ;;  %v9317_v24 = vrot.slane %v9312_v23, %v311_v22 }
  0x2d   : > { %617 = vmatprep.mubr.f32.mxu0 %v8834_v7 }
  0x2f   : > { %6736 = vmatmul.mubr.msk.f32.gmra.mrb[10].mxu1 %vm324_vm0, %v242_v30 }
  0x30   : > { %5749 = vmatmul.mubr.msk.f32.gmra.mrb[12].mxu0 %vm324_vm0, %v237_v25  ;;  %6738 = vmatprep.mubr.msk.f32.mxu1 %vm324_vm0, %v243_v31  ;;  %v315_v25 = vsub.s32 1, %v9302_v21 }
  0x31   : > { %623 = vmatprep.mubr.f32.mxu0 %v8834_v7 }
  0x33   : > { %6739 = vmatmul.mubr.msk.f32.gmra.mrb[12].mxu1 %vm324_vm0, %v244_v32 }
  0x34   : > { %5750 = vmatmul.mubr.msk.f32.gmra.mrb[14].mxu0 %vm324_vm0, %v238_v26  ;;  %6741 = vmatprep.mubr.msk.f32.mxu1 %vm324_vm0, %v245_v33 }
  0x35   : > { %629 = vmatprep.mubr.f32.mxu0 %v8834_v7 }
  0x37   : > { %6742 = vmatmul.mubr.msk.f32.gmra.mrb[14].mxu1 %vm324_vm0, %v246_v34 }
  0x38   : > { %5751 = vmatmul.mubr.msk.f32.gmra.mrb[16].mxu0 %vm324_vm0, %v239_v27  ;;  %6744 = vmatprep.mubr.msk.f32.mxu1 %vm324_vm0, %v247_v35 }
  0x39   : > { %635 = vmatprep.mubr.f32.mxu0 %v8834_v7 }
  0x3b   : > { %6745 = vmatmul.mubr.msk.f32.gmra.mrb[16].mxu1 %vm324_vm0, %v248_v36 }
  0x3c   : > { %5752 = vmatmul.mubr.msk.f32.gmra.mrb[18].mxu0 %vm324_vm0, %v240_v28  ;;  %6747 = vmatprep.mubr.msk.f32.mxu1 %vm324_vm0, %v249_v37 }
  0x3d   : > { %641 = vmatprep.mubr.f32.mxu0 %v8834_v7 }
  0x3f   : > { %6748 = vmatmul.mubr.msk.f32.gmra.mrb[18].mxu1 %vm324_vm0, %v250_v38 }
  0x40   : > { %5753 = vmatmul.mubr.msk.f32.gmra.mrb[20].mxu0 %vm324_vm0, %v241_v29  ;;  %6750 = vmatprep.mubr.msk.f32.mxu1 %vm324_vm0, %v251_v39  ;;  %v9325_v29 = vrot.slane %v9312_v23, %v315_v25 }
  0x41   : > { %647 = vmatprep.mubr.f32.mxu0 %v8834_v7 }
  0x43   : > { %6751 = vmatmul.mubr.msk.f32.gmra.mrb[20].mxu1 %vm324_vm0, %v8979_v40 }
  0x44   : > { %5754 = vmatmul.mubr.msk.f32.gmra.mrb[22].mxu0 %vm324_vm0, %v242_v30  ;;  %6753 = vmatprep.mubr.msk.f32.mxu1 %vm324_vm0, %v8982_v41 }
  0x45   : > { %653 = vmatprep.mubr.f32.mxu0 %v8834_v7 }
  0x47   : > { %6754 = vmatmul.mubr.msk.f32.gmra.mrb[22].mxu1 %vm324_vm0, %v8991_v42 }
  0x48   : > { %5755 = vmatmul.mubr.msk.f32.gmra.mrb[24].mxu0 %vm324_vm0, %v243_v31  ;;  %6756 = vmatprep.mubr.msk.f32.mxu1 %vm324_vm0, %v8994_v43 }
  0x49   : > { %659 = vmatprep.mubr.f32.mxu0 %v8834_v7 }
  0x4b   : > { %6757 = vmatmul.mubr.msk.f32.gmra.mrb[24].mxu1 %vm324_vm0, %v9003_v44 }
  0x4c   : > { %5756 = vmatmul.mubr.msk.f32.gmra.mrb[26].mxu0 %vm324_vm0, %v244_v32  ;;  %6759 = vmatprep.mubr.msk.f32.mxu1 %vm324_vm0, %v9006_v45 }
  0x4d   : > { %665 = vmatprep.mubr.f32.mxu0 %v8834_v7 }
  0x4f   : > { %6760 = vmatmul.mubr.msk.f32.gmra.mrb[26].mxu1 %vm324_vm0, %v9015_v46 }
  0x50   : > { %5757 = vmatmul.mubr.msk.f32.gmra.mrb[28].mxu0 %vm324_vm0, %v245_v33  ;;  %6762 = vmatprep.mubr.msk.f32.mxu1 %vm324_vm0, %v9018_v47 }
  0x51   : > { %671 = vmatprep.mubr.f32.mxu0 %v8834_v7 }
  0x53   : > { %6763 = vmatmul.mubr.msk.f32.gmra.mrb[28].mxu1 %vm324_vm0, %v9027_v48 }
  0x54   : > { %5758 = vmatmul.mubr.msk.f32.gmra.mrb[30].mxu0 %vm324_vm0, %v246_v34  ;;  %6765 = vmatprep.mubr.msk.f32.mxu1 %vm324_vm0, %v9030_v49 }
  0x55   : > { %677 = vmatprep.mubr.f32.mxu0 %v8834_v7 }
  0x57   : > { %6766 = vmatmul.mubr.msk.f32.gmra.mrb[30].mxu1 %vm324_vm0, %v9039_v50 }
  0x58   : > { %5759 = vmatmul.mubr.msk.f32.gmra.mrb[32].mxu0 %vm324_vm0, %v247_v35  ;;  %6768 = vmatprep.mubr.msk.f32.mxu1 %vm324_vm0, %v9042_v51 }
  0x59   : > { %683 = vmatprep.mubr.f32.mxu0 %v8834_v7 }
  0x5b   : > { %6769 = vmatmul.mubr.msk.f32.gmra.mrb[32].mxu1 %vm324_vm0, %v9051_v52 }
  0x5c   : > { %5760 = vmatmul.mubr.msk.f32.gmra.mrb[34].mxu0 %vm324_vm0, %v248_v36  ;;  %6771 = vmatprep.mubr.msk.f32.mxu1 %vm324_vm0, %v9054_v53 }
  0x5d   : > { %689 = vmatprep.mubr.f32.mxu0 %v8834_v7 }
  0x5f   : > { %6772 = vmatmul.mubr.msk.f32.gmra.mrb[34].mxu1 %vm324_vm0, %v9063_v54 }
  0x60   : > { %5761 = vmatmul.mubr.msk.f32.gmra.mrb[36].mxu0 %vm324_vm0, %v249_v37  ;;  %6774 = vmatprep.mubr.msk.f32.mxu1 %vm324_vm0, %v9066_v55 }
  0x61   : > { %695 = vmatprep.mubr.f32.mxu0 %v8834_v7 }
  0x63   : > { %6775 = vmatmul.mubr.msk.f32.gmra.mrb[36].mxu1 %vm324_vm0, %v9075_v56 }
  0x64   : > { %5762 = vmatmul.mubr.msk.f32.gmra.mrb[38].mxu0 %vm324_vm0, %v250_v38  ;;  %6777 = vmatprep.mubr.msk.f32.mxu1 %vm324_vm0, %v9078_v57 }
  0x65   : > { %701 = vmatprep.mubr.f32.mxu0 %v8834_v7 }
  0x67   : > { %6778 = vmatmul.mubr.msk.f32.gmra.mrb[38].mxu1 %vm324_vm0, %v9087_v58 }
  0x68   : > { %5763 = vmatmul.mubr.msk.f32.gmra.mrb[40].mxu0 %vm324_vm0, %v251_v39  ;;  %6780 = vmatprep.mubr.msk.f32.mxu1 %vm324_vm0, %v9090_v59 }
  0x69   : > { %707 = vmatprep.mubr.f32.mxu0 %v8834_v7 }
  0x6b   : > { %6781 = vmatmul.mubr.msk.f32.gmra.mrb[40].mxu1 %vm324_vm0, %v9099_v60 }
  0x6c   : > { %5764 = vmatmul.mubr.msk.f32.gmra.mrb[42].mxu0 %vm324_vm0, %v8979_v40  ;;  %6783 = vmatprep.mubr.msk.f32.mxu1 %vm324_vm0, %v9102_v61 }
  0x6d   : > { %713 = vmatprep.mubr.f32.mxu0 %v8834_v7 }
  0x6f   : > { %6784 = vmatmul.mubr.msk.f32.gmra.mrb[42].mxu1 %vm324_vm0, %v9109_v62 }
  0x70   : > { %5765 = vmatmul.mubr.msk.f32.gmra.mrb[44].mxu0 %vm324_vm0, %v8982_v41  ;;  %6786 = vmatprep.mubr.msk.f32.mxu1 %vm324_vm0, %v9115_v63 }
  0x71   : > { %719 = vmatprep.mubr.f32.mxu0 %v8834_v7 }
  0x73   : > { %6787 = vmatmul.mubr.msk.f32.gmra.mrb[44].mxu1 %vm324_vm0, %v9124_v0 }
  0x74   : > { %5766 = vmatmul.mubr.msk.f32.gmra.mrb[46].mxu0 %vm324_vm0, %v8991_v42  ;;  %6789 = vmatprep.mubr.msk.f32.mxu1 %vm324_vm0, %v9128_v1 }
  0x75   : > { %725 = vmatprep.mubr.f32.mxu0 %v8834_v7 }
  0x77   : > { %6790 = vmatmul.mubr.msk.f32.gmra.mrb[46].mxu1 %vm324_vm0, %v9137_v2 }
  0x78   : > { %5767 = vmatmul.mubr.msk.f32.gmra.mrb[48].mxu0 %vm324_vm0, %v8994_v43  ;;  %6792 = vmatprep.mubr.msk.f32.mxu1 %vm324_vm0, %v9141_v3 }
  0x79   : > { %731 = vmatprep.mubr.f32.mxu0 %v8834_v7 }
  0x7b   : > { %6793 = vmatmul.mubr.msk.f32.gmra.mrb[48].mxu1 %vm324_vm0, %v9150_v4 }
  0x7c   : > { %5768 = vmatmul.mubr.msk.f32.gmra.mrb[50].mxu0 %vm324_vm0, %v9003_v44  ;;  %6795 = vmatprep.mubr.msk.f32.mxu1 %vm324_vm0, %v9154_v5 }
  0x7d   : > { %737 = vmatprep.mubr.f32.mxu0 %v8834_v7 }
  0x7f   : > { %6796 = vmatmul.mubr.msk.f32.gmra.mrb[50].mxu1 %vm324_vm0, %v9163_v6 }
  0x80   : > { %5769 = vmatmul.mubr.msk.f32.gmra.mrb[52].mxu0 %vm324_vm0, %v9006_v45  ;;  %6798 = vmatprep.mubr.msk.f32.mxu1 %vm324_vm0, %v9167_v8 }
  0x81   : > { %743 = vmatprep.mubr.f32.mxu0 %v8834_v7 }
  0x83   : > { %6799 = vmatmul.mubr.msk.f32.gmra.mrb[52].mxu1 %vm324_vm0, %v9176_v9 }
  0x84   : > { %5770 = vmatmul.mubr.msk.f32.gmra.mrb[54].mxu0 %vm324_vm0, %v9015_v46  ;;  %6801 = vmatprep.mubr.msk.f32.mxu1 %vm324_vm0, %v9180_v10 }
  0x85   : > { %749 = vmatprep.mubr.f32.mxu0 %v8834_v7 }
  0x87   : > { %6802 = vmatmul.mubr.msk.f32.gmra.mrb[54].mxu1 %vm324_vm0, %v9189_v11 }
  0x88   : > { %5771 = vmatmul.mubr.msk.f32.gmra.mrb[56].mxu0 %vm324_vm0, %v9018_v47  ;;  %6804 = vmatprep.mubr.msk.f32.mxu1 %vm324_vm0, %v9193_v12 }
  0x89   : > { %755 = vmatprep.mubr.f32.mxu0 %v8834_v7 }
  0x8b   : > { %6805 = vmatmul.mubr.msk.f32.gmra.mrb[56].mxu1 %vm324_vm0, %v9202_v13 }
  0x8c   : > { %5772 = vmatmul.mubr.msk.f32.gmra.mrb[58].mxu0 %vm324_vm0, %v9027_v48  ;;  %6807 = vmatprep.mubr.msk.f32.mxu1 %vm324_vm0, %v9206_v14 }
  0x8d   : > { %761 = vmatprep.mubr.f32.mxu0 %v8834_v7 }
  0x8f   : > { %6808 = vmatmul.mubr.msk.f32.gmra.mrb[58].mxu1 %vm324_vm0, %v9215_v15 }
  0x90   : > { %5773 = vmatmul.mubr.msk.f32.gmra.mrb[60].mxu0 %vm324_vm0, %v9030_v49  ;;  %6810 = vmatprep.mubr.msk.f32.mxu1 %vm324_vm0, %v9219_v16 }
  0x91   : > { %767 = vmatprep.mubr.f32.mxu0 %v8834_v7 }
  0x93   : > { %6811 = vmatmul.mubr.msk.f32.gmra.mrb[60].mxu1 %vm324_vm0, %v9228_v17 }
  0x94   : > { %5774 = vmatmul.mubr.msk.f32.gmra.mrb[62].mxu0 %vm324_vm0, %v9039_v50  ;;  %6813 = vmatprep.mubr.msk.f32.mxu1 %vm324_vm0, %v9232_v18 }
  0x95   : > { %773 = vmatprep.mubr.f32.mxu0 %v8834_v7 }
  0x97   : > { %6814 = vmatmul.mubr.msk.f32.gmra.mrb[62].mxu1 %vm324_vm0, %v9241_v19 }
  0x98   : > { %5775 = vmatmul.mubr.msk.f32.gmra.mrb[64].mxu0 %vm324_vm0, %v9042_v51 }
  0x99   : > { %779 = vmatprep.mubr.f32.mxu0 %v8834_v7 }
  0x9c   : > { %5776 = vmatmul.mubr.msk.f32.gmra.mrb[66].mxu0 %vm324_vm0, %v9051_v52 }
  0x9d   : > { %785 = vmatprep.mubr.f32.mxu0 %v8834_v7 }
  0xa0   : > { %5777 = vmatmul.mubr.msk.f32.gmra.mrb[68].mxu0 %vm324_vm0, %v9054_v53 }
  0xa1   : > { %791 = vmatprep.mubr.f32.mxu0 %v8834_v7 }
  0xa4   : > { %5778 = vmatmul.mubr.msk.f32.gmra.mrb[70].mxu0 %vm324_vm0, %v9063_v54 }
  0xa5   : > { %797 = vmatprep.mubr.f32.mxu0 %v8834_v7 }
  0xa8   : > { %5779 = vmatmul.mubr.msk.f32.gmra.mrb[72].mxu0 %vm324_vm0, %v9066_v55 }
  0xa9   : > { %803 = vmatprep.mubr.f32.mxu0 %v8834_v7 }
  0xac   : > { %5780 = vmatmul.mubr.msk.f32.gmra.mrb[74].mxu0 %vm324_vm0, %v9075_v56 }
  0xad   : > { %809 = vmatprep.mubr.f32.mxu0 %v8834_v7 }
  0xb0   : > { %5781 = vmatmul.mubr.msk.f32.gmra.mrb[76].mxu0 %vm324_vm0, %v9078_v57 }
  0xb1   : > { %815 = vmatprep.mubr.f32.mxu0 %v8834_v7 }
  0xb4   : > { %5782 = vmatmul.mubr.msk.f32.gmra.mrb[78].mxu0 %vm324_vm0, %v9087_v58 }
  0xb5   : > { %821 = vmatprep.mubr.f32.mxu0 %v8834_v7 }
  0xb8   : > { %5783 = vmatmul.mubr.msk.f32.gmra.mrb[80].mxu0 %vm324_vm0, %v9090_v59 }
  0xb9   : > { %827 = vmatprep.mubr.f32.mxu0 %v8834_v7 }
  0xbc   : > { %5784 = vmatmul.mubr.msk.f32.gmra.mrb[82].mxu0 %vm324_vm0, %v9099_v60 }
  0xbd   : > { %833 = vmatprep.mubr.f32.mxu0 %v8834_v7 }
  0xc0   : > { %5785 = vmatmul.mubr.msk.f32.gmra.mrb[84].mxu0 %vm324_vm0, %v9102_v61 }
  0xc1   : > { %839 = vmatprep.mubr.f32.mxu0 %v8834_v7 }
  0xc4   : > { %5786 = vmatmul.mubr.msk.f32.gmra.mrb[86].mxu0 %vm324_vm0, %v9109_v62 }
  0xc5   : > { %845 = vmatprep.mubr.f32.mxu0 %v8834_v7 }
  0xc8   : > { %5787 = vmatmul.mubr.msk.f32.gmra.mrb[88].mxu0 %vm324_vm0, %v9115_v63 }
  0xc9   : > { %851 = vmatprep.mubr.f32.mxu0 %v8834_v7 }
  0xcc   : > { %5788 = vmatmul.mubr.msk.f32.gmra.mrb[90].mxu0 %vm324_vm0, %v9124_v0 }
  0xcd   : > { %857 = vmatprep.mubr.f32.mxu0 %v8834_v7 }
  0xd0   : > { %5789 = vmatmul.mubr.msk.f32.gmra.mrb[92].mxu0 %vm324_vm0, %v9128_v1 }
  0xd1   : > { %863 = vmatprep.mubr.f32.mxu0 %v8834_v7 }
  0xd4   : > { %5790 = vmatmul.mubr.msk.f32.gmra.mrb[94].mxu0 %vm324_vm0, %v9137_v2 }
  0xd5   : > { %869 = vmatprep.mubr.f32.mxu0 %v8834_v7 }
  0xd8   : > { %5791 = vmatmul.mubr.msk.f32.gmra.mrb[96].mxu0 %vm324_vm0, %v9141_v3 }
  0xd9   : > { %875 = vmatprep.mubr.f32.mxu0 %v8834_v7 }
  0xdc   : > { %5792 = vmatmul.mubr.msk.f32.gmra.mrb[98].mxu0 %vm324_vm0, %v9150_v4 }
  0xdd   : > { %881 = vmatprep.mubr.f32.mxu0 %v8834_v7 }
  0xe0   : > { %5793 = vmatmul.mubr.msk.f32.gmra.mrb[100].mxu0 %vm324_vm0, %v9154_v5 }
  0xe1   : > { %887 = vmatprep.mubr.f32.mxu0 %v8834_v7 }
  0xe4   : > { %5794 = vmatmul.mubr.msk.f32.gmra.mrb[102].mxu0 %vm324_vm0, %v9163_v6 }
  0xe5   : > { %893 = vmatprep.mubr.f32.mxu0 %v8834_v7 }
  0xe8   : > { %5795 = vmatmul.mubr.msk.f32.gmra.mrb[104].mxu0 %vm324_vm0, %v9167_v8 }
  0xe9   : > { %899 = vmatprep.mubr.f32.mxu0 %v8834_v7 }
  0xeb   : > { %v583_v26 = vpop.f32.mrb[0].mxu0 }
  0xec   : > { %v584_v27 = vadd.f32 %v583_v26, %v9317_v24  ;;  %v585_v28 = vpop.f32.mrb[1].mxu0  ;;  %5796 = vmatmul.mubr.msk.f32.gmra.mrb[106].mxu0 %vm324_vm0, %v9176_v9 }
  0xed   : > { %905 = vmatprep.mubr.f32.mxu0 %v8834_v7  ;;  %v586_v32 = vadd.f32 %v585_v28, %v9325_v29 }
  0xee   : > { %6848 = vmatprep.mubr.f32.mxu1 %v584_v27 }
  0xef   : > { %v9328_v30 = vpop.f32.mrb[2].mxu0 }
  0xf0   : > { %v591_v31 = vpop.f32.mrb[3].mxu0  ;;  %5797 = vmatmul.mubr.msk.f32.gmra.mrb[108].mxu0 %vm324_vm0, %v9180_v10 }
  0xf1   : > { %v592_v33 = vadd.f32 %v591_v31, %v9325_v29  ;;  %911 = vmatprep.mubr.f32.mxu0 %v8834_v7  ;;  %v590_v31 = vadd.f32 %v9328_v30, %v9317_v24 }
  0xf3   : > { %v7728_v34 = vpack.c.bf16 %v592_v33, %v586_v32  ;;  %v9335_v35 = vpop.f32.mrb[4].mxu0 }
  0xf4   : > { %v597_v36 = vpop.f32.mrb[5].mxu0  ;;  %5798 = vmatmul.mubr.msk.f32.gmra.mrb[110].mxu0 %vm324_vm0, %v9189_v11 }
  0xf5   : > { %7729 = vmatprep.subr.bf16.mxu1 %v7728_v34  ;;  %917 = vmatprep.mubr.f32.mxu0 %v8834_v7  ;;  %v598_v39 = vadd.f32 %v597_v36, %v9325_v29 }
  0xf6   : > { %7731 = vmatpush3.bf16.xpose.msra.mxu1 %v7728_v34  ;;  %v596_v34 = vadd.f32 %v9335_v35, %v9317_v24 }
  0xf7   : > { %v9340_v37 = vpop.f32.mrb[6].mxu0 }
  0xf8   : > { %v603_v38 = vpop.f32.mrb[7].mxu0  ;;  %5799 = vmatmul.mubr.msk.f32.gmra.mrb[112].mxu0 %vm324_vm0, %v9193_v12 }
  0xf9   : > { %v604_v40 = vadd.f32 %v603_v38, %v9325_v29  ;;  %923 = vmatprep.mubr.f32.mxu0 %v8834_v7  ;;  %v602_v38 = vadd.f32 %v9340_v37, %v9317_v24 }
  0xfb   : > { %v7732_v41 = vpack.c.bf16 %v604_v40, %v598_v39  ;;  %v9347_v42 = vpop.f32.mrb[8].mxu0 }
  0xfc   : > { %v609_v43 = vpop.f32.mrb[9].mxu0  ;;  %5800 = vmatmul.mubr.msk.f32.gmra.mrb[114].mxu0 %vm324_vm0, %v9202_v13  ;;  %v608_v40 = vadd.f32 %v9347_v42, %v9317_v24 }
  0xfd   : > { %7733 = vmatprep.subr.bf16.mxu1 %v7732_v41  ;;  %929 = vmatprep.mubr.f32.mxu0 %v8834_v7  ;;  %v610_v46 = vadd.f32 %v609_v43, %v9325_v29 }
  0xfe   : > { %7735 = vmatpush3.bf16.xpose.msra.mxu1 %v7732_v41 }
  0xff   : > { %v9352_v44 = vpop.f32.mrb[10].mxu0 }
 0x100   : > { %v615_v45 = vpop.f32.mrb[11].mxu0  ;;  %5801 = vmatmul.mubr.msk.f32.gmra.mrb[116].mxu0 %vm324_vm0, %v9206_v14  ;;  %v614_v35 = vadd.f32 %v9352_v44, %v9317_v24 }
 0x101   : > { %v616_v47 = vadd.f32 %v615_v45, %v9325_v29  ;;  %935 = vmatprep.mubr.f32.mxu0 %v8834_v7 }
 0x103   : > { %v7736_v48 = vpack.c.bf16 %v616_v47, %v610_v46  ;;  %v9359_v49 = vpop.f32.mrb[12].mxu0 }
 0x104   : > { %v621_v50 = vpop.f32.mrb[13].mxu0  ;;  %5802 = vmatmul.mubr.msk.f32.gmra.mrb[118].mxu0 %vm324_vm0, %v9215_v15  ;;  %v620_v37 = vadd.f32 %v9359_v49, %v9317_v24 }
 0x105   : > { %7737 = vmatprep.subr.bf16.mxu1 %v7736_v48  ;;  %941 = vmatprep.mubr.f32.mxu0 %v8834_v7  ;;  %v622_v53 = vadd.f32 %v621_v50, %v9325_v29 }
 0x106   : > { %7739 = vmatpush3.bf16.xpose.msra.mxu1 %v7736_v48 }
 0x107   : > { %v9364_v51 = vpop.f32.mrb[14].mxu0 }
 0x108   : > { %v627_v52 = vpop.f32.mrb[15].mxu0  ;;  %5803 = vmatmul.mubr.msk.f32.gmra.mrb[120].mxu0 %vm324_vm0, %v9219_v16  ;;  %v626_v42 = vadd.f32 %v9364_v51, %v9317_v24 }
 0x109   : > { %v628_v54 = vadd.f32 %v627_v52, %v9325_v29  ;;  %947 = vmatprep.mubr.f32.mxu0 %v8834_v7 }
 0x10b   : > { %v7740_v55 = vpack.c.bf16 %v628_v54, %v622_v53  ;;  %v9371_v56 = vpop.f32.mrb[16].mxu0 }
 0x10c   : > { %v633_v57 = vpop.f32.mrb[17].mxu0  ;;  %5804 = vmatmul.mubr.msk.f32.gmra.mrb[122].mxu0 %vm324_vm0, %v9228_v17  ;;  %v632_v50 = vadd.f32 %v9371_v56, %v9317_v24 }
 0x10d   : > { %7741 = vmatprep.subr.bf16.mxu1 %v7740_v55  ;;  %953 = vmatprep.mubr.f32.mxu0 %v8834_v7  ;;  %v634_v60 = vadd.f32 %v633_v57, %v9325_v29 }
 0x10e   : > { %7743 = vmatpush3.bf16.xpose.msra.mxu1 %v7740_v55 }
 0x10f   : > { %v9376_v58 = vpop.f32.mrb[18].mxu0 }
 0x110   : > { %v639_v59 = vpop.f32.mrb[19].mxu0  ;;  %5805 = vmatmul.mubr.msk.f32.gmra.mrb[124].mxu0 %vm324_vm0, %v9232_v18  ;;  %v638_v49 = vadd.f32 %v9376_v58, %v9317_v24 }
 0x111   : > { %v640_v61 = vadd.f32 %v639_v59, %v9325_v29  ;;  %959 = vmatprep.mubr.f32.mxu0 %v8834_v7 }
 0x113   : > { %v7744_v62 = vpack.c.bf16 %v640_v61, %v634_v60  ;;  %v9383_v63 = vpop.f32.mrb[20].mxu0  ;;  %v319_v60 = vsub.s32 2, %v9302_v21 }
 0x114   : > { %v645_v0 = vpop.f32.mrb[21].mxu0  ;;  %5806 = vmatmul.mubr.msk.f32.gmra.mrb[126].mxu0 %vm324_vm0, %v9241_v19  ;;  %v644_v51 = vadd.f32 %v9383_v63, %v9317_v24 }
 0x115   : > { %7745 = vmatprep.subr.bf16.mxu1 %v7744_v62  ;;  %v646_v3 = vadd.f32 %v645_v0, %v9325_v29  ;;  %v9453_v0 = vrot.slane %v9312_v23, %v319_v60 }
 0x116   : > { %7747 = vmatpush3.bf16.xpose.msra.mxu1 %v7744_v62 }
 0x117   : > { %v9387_v1 = vpop.f32.mrb[22].mxu0 }
 0x118   : > { %v651_v2 = vpop.f32.mrb[23].mxu0  ;;  %v650_v56 = vadd.f32 %v9387_v1, %v9317_v24 }
 0x119   : > { %v652_v4 = vadd.f32 %v651_v2, %v9325_v29  ;;  %v6722_v2 = vpop.f32.mrb[0].mxu1 }
 0x11b   : > { %v7748_v5 = vpack.c.bf16 %v652_v4, %v646_v3  ;;  %v9391_v6 = vpop.f32.mrb[24].mxu0  ;;  %v1032_v3 = vpop.f32.mrb[1].mxu1 }
 0x11c   : > { %v657_v7 = vpop.f32.mrb[25].mxu0  ;;  %v656_v58 = vadd.f32 %v9391_v6, %v9317_v24  ;;  %v1033_v6 = vadd.f32 %v1032_v3, %v9453_v0 }
 0x11d   : > { %7749 = vmatprep.subr.bf16.mxu1 %v7748_v5  ;;  %v658_v10 = vadd.f32 %v657_v7, %v9325_v29  ;;  %v6725_v7 = vpop.f32.mrb[2].mxu1 }
 0x11e   : > { %7751 = vmatpush3.bf16.xpose.msra.mxu1 %v7748_v5  ;;  %v1038_v5 = vadd.f32 %v6722_v2, %v9453_v0  ;;  %v1048_v23 = vadd.f32 %v6725_v7, %v9453_v0 }
 0x11f   : > { %v9393_v8 = vpop.f32.mrb[26].mxu0 }
 0x120   : > { %v663_v9 = vpop.f32.mrb[27].mxu0  ;;  %v662_v1 = vadd.f32 %v9393_v8, %v9317_v24 }
 0x121   : > { %v664_v11 = vadd.f32 %v663_v9, %v9325_v29 }
 0x123   : > { %v7752_v12 = vpack.c.bf16 %v664_v11, %v658_v10  ;;  %v9397_v13 = vpop.f32.mrb[28].mxu0  ;;  %v1042_v11 = vpop.f32.mrb[3].mxu1 }
 0x124   : > { %v669_v14 = vpop.f32.mrb[29].mxu0  ;;  %v668_v9 = vadd.f32 %v9397_v13, %v9317_v24  ;;  %v1043_v8 = vadd.f32 %v1042_v11, %v9453_v0 }
 0x125   : > { %7753 = vmatprep.subr.bf16.mxu1 %v7752_v12  ;;  %v670_v17 = vadd.f32 %v669_v14, %v9325_v29  ;;  %v6728_v14 = vpop.f32.mrb[4].mxu1 }
 0x126   : > { %7755 = vmatpush3.bf16.xpose.msra.mxu1 %v7752_v12  ;;  %v9464_v12 = vpack.c.bf16 %v1038_v5, %v1033_v6 }
 0x127   : > { %v9399_v15 = vpop.f32.mrb[30].mxu0 }
 0x128   : > { %v675_v16 = vpop.f32.mrb[31].mxu0  ;;  %12293 = vst [vmem:[#allocation2_spill] sm:$0xff] %v9464_v12 }
 0x129   : > { %v676_v18 = vadd.f32 %v675_v16, %v9325_v29  ;;  %v1058_v16 = vadd.f32 %v6728_v14, %v9453_v0 }
 0x12b   : > { %v7756_v19 = vpack.c.bf16 %v676_v18, %v670_v17  ;;  %v9403_v20 = vpop.f32.mrb[32].mxu0  ;;  %v1052_v17 = vpop.f32.mrb[5].mxu1  ;;  %v674_v18 = vadd.f32 %v9399_v15, %v9317_v24 }
 0x12c   : > { %v681_v22 = vpop.f32.mrb[33].mxu0 }
 0x12d   : > { %7757 = vmatprep.subr.bf16.mxu1 %v7756_v19  ;;  %v682_v27 = vadd.f32 %v681_v22, %v9325_v29  ;;  %v1053_v22 = vadd.f32 %v1052_v17, %v9453_v0 }
 0x12e   : > { %7759 = vmatpush3.bf16.xpose.msra.mxu1 %v7756_v19  ;;  %v9472_v19 = vpack.c.bf16 %v1048_v23, %v1043_v8 }
 0x12f   : > { %v9405_v25 = vpop.f32.mrb[34].mxu0  ;;  %v9480_v15 = vpack.c.bf16 %v1058_v16, %v1053_v22 }
 0x130   : > { %v687_v26 = vpop.f32.mrb[35].mxu0  ;;  %12294 = vst [vmem:[#allocation3_spill] sm:$0xff] %v9472_v19 }
 0x131   : > { %v688_v28 = vadd.f32 %v687_v26, %v9325_v29  ;;  %v6731_v26 = vpop.f32.mrb[6].mxu1  ;;  %12295 = vst [vmem:[#allocation4_spill] sm:$0xff] %v9480_v15 }
 0x133   : > { %v7760_v32 = vpack.c.bf16 %v688_v28, %v682_v27  ;;  %v9411_v33 = vpop.f32.mrb[36].mxu0  ;;  %v680_v27 = vadd.f32 %v9403_v20, %v9317_v24 }
 0x134   : > { %v693_v36 = vpop.f32.mrb[37].mxu0 }
 0x135   : > { %6849 = vmatmul.mubr.f32.vlgmr.msra.gmra.mrb[64].mxu1 %v590_v31  ;;  %7761 = vmatprep.subr.bf16.mxu1 %v7760_v32  ;;  %v694_v41 = vadd.f32 %v693_v36, %v9325_v29  ;;  %v1068_v31 = vadd.f32 %v6731_v26, %v9453_v0 }
 0x136   : > { %6851 = vmatprep.mubr.f32.mxu1 %v596_v34  ;;  %7763 = vmatpush3.bf16.xpose.msra.mxu1 %v7760_v32  ;;  %v1062_v32 = vpop.f32.mrb[7].mxu1 }
 0x137   : > { %v9417_v39 = vpop.f32.mrb[38].mxu0 }
 0x138   : > { %v699_v30 = vpop.f32.mrb[39].mxu0 }
 0x139   : > { %v700_v43 = vadd.f32 %v699_v30, %v9325_v29  ;;  %6852 = vmatmul.mubr.f32.gmra.mrb[66].mxu1 %v602_v38  ;;  %v1063_v38 = vadd.f32 %v1062_v32, %v9453_v0 }
 0x13a   : > { %6854 = vmatprep.mubr.f32.mxu1 %v608_v40  ;;  %v6734_v40 = vpop.f32.mrb[8].mxu1 }
 0x13b   : > { %v7764_v45 = vpack.c.bf16 %v700_v43, %v694_v41  ;;  %v9425_v46 = vpop.f32.mrb[40].mxu0  ;;  %v1072_v30 = vpop.f32.mrb[9].mxu1  ;;  %v9485_v20 = vpack.c.bf16 %v1068_v31, %v1063_v38 }
 0x13c   : > { %v705_v47 = vpop.f32.mrb[41].mxu0 }
 0x13d   : > { %6855 = vmatmul.mubr.f32.gmra.mrb[68].mxu1 %v614_v35  ;;  %7765 = vmatprep.subr.bf16.mxu1 %v7764_v45  ;;  %v706_v52 = vadd.f32 %v705_v47, %v9325_v29  ;;  %12296 = vst [vmem:[#allocation5_spill] sm:$0xff] %v9485_v20  ;;  %v1078_v35 = vadd.f32 %v6734_v40, %v9453_v0  ;;  %v10118_v20 = vld [vmem:[%s9692_s25 + $0x150] sm:$0xff] }
 0x13e   : > { %6857 = vmatprep.mubr.f32.mxu1 %v620_v37  ;;  %7767 = vmatpush3.bf16.xpose.msra.mxu1 %v7764_v45  ;;  %v1073_v45 = vadd.f32 %v1072_v30, %v9453_v0  ;;  %v6737_v37 = vpop.f32.mrb[10].mxu1 }
 0x13f   : > { %v9431_v48 = vpop.f32.mrb[42].mxu0 }
 0x140   : > { %v711_v44 = vpop.f32.mrb[43].mxu0 }
 0x141   : > { %v712_v53 = vadd.f32 %v711_v44, %v9325_v29  ;;  %6858 = vmatmul.mubr.f32.gmra.mrb[70].mxu1 %v626_v42  ;;  %v1088_v42 = vadd.f32 %v6737_v37, %v9453_v0  ;;  %v9490_v44 = vpack.c.bf16 %v1078_v35, %v1073_v45 }
 0x142   : > { %6860 = vmatprep.mubr.f32.mxu1 %v632_v50  ;;  %v1082_v50 = vpop.f32.mrb[11].mxu1 }
 0x143   : > { %v7768_v54 = vpack.c.bf16 %v712_v53, %v706_v52  ;;  %v9439_v55 = vpop.f32.mrb[44].mxu0  ;;  %12297 = vst [vmem:[#allocation6_spill] sm:$0xff] %v9490_v44  ;;  %v1083_v52 = vadd.f32 %v1082_v50, %v9453_v0  ;;  %v6740_v53 = vpop.f32.mrb[12].mxu1 }
 0x144   : > { %v717_v57 = vpop.f32.mrb[45].mxu0 }
 0x145   : > { %6861 = vmatmul.mubr.f32.gmra.mrb[72].mxu1 %v638_v49  ;;  %7769 = vmatprep.subr.bf16.mxu1 %v7768_v54  ;;  %v718_v62 = vadd.f32 %v717_v57, %v9325_v29  ;;  %v1098_v49 = vadd.f32 %v6740_v53, %v9453_v0  ;;  %v9496_v57 = vpack.c.bf16 %v1088_v42, %v1083_v52 }
 0x146   : > { %6863 = vmatprep.mubr.f32.mxu1 %v644_v51  ;;  %7771 = vmatpush3.bf16.xpose.msra.mxu1 %v7768_v54  ;;  %v1092_v54 = vpop.f32.mrb[13].mxu1 }
 0x147   : > { %v9445_v59 = vpop.f32.mrb[46].mxu0  ;;  %12298 = vst [vmem:[#allocation7_spill] sm:$0xff] %v9496_v57  ;;  %v6743_v60 = vpop.f32.mrb[14].mxu1 }
 0x148   : > { %v723_v61 = vpop.f32.mrb[47].mxu0 }
 0x149   : > { %v724_v63 = vadd.f32 %v723_v61, %v9325_v29  ;;  %6864 = vmatmul.mubr.f32.gmra.mrb[74].mxu1 %v650_v56  ;;  %v1093_v56 = vadd.f32 %v1092_v54, %v9453_v0  ;;  %v1108_v61 = vadd.f32 %v6743_v60, %v9453_v0 }
 0x14a   : > { %6866 = vmatprep.mubr.f32.mxu1 %v656_v58 }
 0x14b   : > { %v7772_v4 = vpack.c.bf16 %v724_v63, %v718_v62  ;;  %v9457_v21 = vpop.f32.mrb[48].mxu0  ;;  %v1102_v62 = vpop.f32.mrb[15].mxu1  ;;  %v9502_v3 = vpack.c.bf16 %v1098_v49, %v1093_v56 }
 0x14c   : > { %v729_v10 = vpop.f32.mrb[49].mxu0 }
 0x14d   : > { %6867 = vmatmul.mubr.f32.gmra.mrb[76].mxu1 %v662_v1  ;;  %7773 = vmatprep.subr.bf16.mxu1 %v7772_v4  ;;  %v730_v34 = vadd.f32 %v729_v10, %v9325_v29  ;;  %12299 = vst [vmem:[#allocation8_spill] sm:$0xff] %v9502_v3  ;;  %v1103_v1 = vadd.f32 %v1102_v62, %v9453_v0  ;;  %v10060_v3 = vld [vmem:[%s9692_s25 + $0x140] sm:$0xff] }
 0x14e   : > { %6869 = vmatprep.mubr.f32.mxu1 %v668_v9  ;;  %7775 = vmatpush3.bf16.xpose.msra.mxu1 %v7772_v4  ;;  %v6746_v4 = vpop.f32.mrb[16].mxu1 }
 0x14f   : > { %v9470_v13 = vpop.f32.mrb[50].mxu0  ;;  %v1112_v5 = vpop.f32.mrb[17].mxu1  ;;  %v9507_v9 = vpack.c.bf16 %v1108_v61, %v1103_v1  ;;  %v1118_v10 = vadd.f32 %v6746_v4, %v9453_v0 }
 0x150   : > { %v735_v28 = vpop.f32.mrb[51].mxu0  ;;  %v1113_v23 = vadd.f32 %v1112_v5, %v9453_v0  ;;  %v6749_v11 = vpop.f32.mrb[18].mxu1 }
 0x151   : > { %v736_v36 = vadd.f32 %v735_v28, %v9325_v29  ;;  %6870 = vmatmul.mubr.f32.gmra.mrb[78].mxu1 %v674_v18  ;;  %12300 = vst [vmem:[#allocation9_spill] sm:$0xff] %v9507_v9  ;;  %v1128_v14 = vadd.f32 %v6749_v11, %v9453_v0  ;;  %v1122_v16 = vpop.f32.mrb[19].mxu1 }
 0x152   : > { %6904 = vmatprep.mubr.f32.mxu1 %v680_v27  ;;  %v9512_v17 = vpack.c.bf16 %v1118_v10, %v1113_v23  ;;  %v1123_v18 = vadd.f32 %v1122_v16, %v9453_v0  ;;  %v6752_v22 = vpop.f32.mrb[20].mxu1 }
 0x153   : > { %v7776_v41 = vpack.c.bf16 %v736_v36, %v730_v34  ;;  %v9483_v43 = vpop.f32.mrb[52].mxu0  ;;  %v1138_v26 = vadd.f32 %v6752_v22, %v9453_v0  ;;  %v1132_v27 = vpop.f32.mrb[21].mxu1 }
 0x154   : > { %v741_v47 = vpop.f32.mrb[53].mxu0  ;;  %12301 = vst [vmem:[#allocation10_spill] sm:$0xff] %v9512_v17  ;;  %v9518_v31 = vpack.c.bf16 %v1128_v14, %v1123_v18  ;;  %v1133_v32 = vadd.f32 %v1132_v27, %v9453_v0  ;;  %v6755_v34 = vpop.f32.mrb[22].mxu1 }
 0x155   : > { %7777 = vmatprep.subr.bf16.mxu1 %v7776_v41  ;;  %v742_v63 = vadd.f32 %v741_v47, %v9325_v29  ;;  %v1148_v38 = vadd.f32 %v6755_v34, %v9453_v0  ;;  %v1142_v40 = vpop.f32.mrb[23].mxu1 }
 0x156   : > { %7779 = vmatpush3.bf16.xpose.msra.mxu1 %v7776_v41  ;;  %12302 = vst [vmem:[#allocation11_spill] sm:$0xff] %v9518_v31  ;;  %v9524_v35 = vpack.c.bf16 %v1138_v26, %v1133_v32  ;;  %v1143_v45 = vadd.f32 %v1142_v40, %v9453_v0  ;;  %v6758_v37 = vpop.f32.mrb[24].mxu1  ;;  %v10004_v31 = vld [vmem:[%s9692_s25 + $0x130] sm:$0xff] }
 0x157   : > { %v9494_v51 = vpop.f32.mrb[54].mxu0  ;;  %v1152_v47 = vpop.f32.mrb[25].mxu1  ;;  %v1158_v53 = vadd.f32 %v6758_v37, %v9453_v0 }
 0x158   : > { %v747_v58 = vpop.f32.mrb[55].mxu0  ;;  %12303 = vst [vmem:[#allocation12_spill] sm:$0xff] %v9524_v35  ;;  %v9529_v52 = vpack.c.bf16 %v1148_v38, %v1143_v45  ;;  %v1153_v49 = vadd.f32 %v1152_v47, %v9453_v0  ;;  %v6761_v54 = vpop.f32.mrb[26].mxu1 }
 0x159   : > { %v748_v2 = vadd.f32 %v747_v58, %v9325_v29  ;;  %v1168_v60 = vadd.f32 %v6761_v54, %v9453_v0  ;;  %v1162_v58 = vpop.f32.mrb[27].mxu1 }
 0x15a   : > { %12304 = vst [vmem:[#allocation13_spill] sm:$0xff] %v9529_v52  ;;  %v9534_v61 = vpack.c.bf16 %v1158_v53, %v1153_v49  ;;  %v1163_v62 = vadd.f32 %v1162_v58, %v9453_v0 }
 0x15b   : > { %v7780_v6 = vpack.c.bf16 %v748_v2, %v742_v63  ;;  %v9505_v7 = vpop.f32.mrb[56].mxu0  ;;  %v6764_v63 = vpop.f32.mrb[28].mxu1 }
 0x15c   : > { %v753_v8 = vpop.f32.mrb[57].mxu0  ;;  %12305 = vst [vmem:[#allocation14_spill] sm:$0xff] %v9534_v61  ;;  %v1178_v2 = vadd.f32 %v6764_v63, %v9453_v0  ;;  %v1172_v1 = vpop.f32.mrb[29].mxu1  ;;  %v9540_v5 = vpack.c.bf16 %v1168_v60, %v1163_v62  ;;  %v9949_v61 = vld [vmem:[%s9692_s25 + $0xa8] sm:$0xff] }
 0x15d   : > { %7781 = vmatprep.subr.bf16.mxu1 %v7780_v6  ;;  %v754_v30 = vadd.f32 %v753_v8, %v9325_v29  ;;  %v6767_v10 = vpop.f32.mrb[30].mxu1 }
 0x15e   : > { %7783 = vmatpush3.bf16.xpose.msra.mxu1 %v7780_v6  ;;  %12306 = vst [vmem:[#allocation15_spill] sm:$0xff] %v9540_v5  ;;  %v1173_v6 = vadd.f32 %v1172_v1, %v9453_v0  ;;  %v1188_v11 = vadd.f32 %v6767_v10, %v9453_v0  ;;  %v1182_v8 = vpop.f32.mrb[31].mxu1 }
 0x15f   : > { %v9516_v28 = vpop.f32.mrb[58].mxu0  ;;  %v1183_v22 = vadd.f32 %v1182_v8, %v9453_v0  ;;  %v6770_v26 = vpop.f32.mrb[32].mxu1 }
 0x160   : > { %v759_v36 = vpop.f32.mrb[59].mxu0  ;;  %v9546_v18 = vpack.c.bf16 %v1178_v2, %v1173_v6  ;;  %v1192_v27 = vpop.f32.mrb[33].mxu1  ;;  %v1198_v38 = vadd.f32 %v6770_v26, %v9453_v0  ;;  %v686_v26 = vadd.f32 %v9405_v25, %v9317_v24 }
 0x161   : > { %v760_v41 = vadd.f32 %v759_v36, %v9325_v29  ;;  %v9549_v36 = vpack.c.bf16 %v1188_v11, %v1183_v22  ;;  %v1193_v40 = vadd.f32 %v1192_v27, %v9453_v0 }
 0x162   : > { %12307 = vst [vmem:[#allocation16_spill] sm:$0xff] %v9546_v18 }
 0x163   : > { %v7784_v42 = vpack.c.bf16 %v760_v41, %v754_v30  ;;  %v9527_v50 = vpop.f32.mrb[60].mxu0  ;;  %12308 = vst [vmem:[#allocation17_spill] sm:$0xff] %v9549_v36  ;;  %v6773_v30 = vpop.f32.mrb[34].mxu1 }
 0x164   : > { %v765_v56 = vpop.f32.mrb[61].mxu0  ;;  %v1208_v37 = vadd.f32 %v6773_v30, %v9453_v0  ;;  %v1202_v47 = vpop.f32.mrb[35].mxu1  ;;  %v692_v30 = vadd.f32 %v9411_v33, %v9317_v24 }
 0x165   : > { %7785 = vmatprep.subr.bf16.mxu1 %v7784_v42  ;;  %v766_v14 = vadd.f32 %v765_v56, %v9325_v29  ;;  %v1203_v53 = vadd.f32 %v1202_v47, %v9453_v0  ;;  %v6776_v49 = vpop.f32.mrb[36].mxu1 }
 0x166   : > { %7787 = vmatpush3.bf16.xpose.msra.mxu1 %v7784_v42  ;;  %v9555_v42 = vpack.c.bf16 %v1198_v38, %v1193_v40  ;;  %v1218_v54 = vadd.f32 %v6776_v49, %v9453_v0  ;;  %v1212_v56 = vpop.f32.mrb[37].mxu1 }
 0x167   : > { %v9538_v4 = vpop.f32.mrb[62].mxu0  ;;  %v9561_v58 = vpack.c.bf16 %v1208_v37, %v1203_v53  ;;  %v1213_v62 = vadd.f32 %v1212_v56, %v9453_v0  ;;  %v6779_v63 = vpop.f32.mrb[38].mxu1  ;;  %v698_v56 = vadd.f32 %v9417_v39, %v9317_v24 }
 0x168   : > { %v771_v23 = vpop.f32.mrb[63].mxu0  ;;  %12309 = vst [vmem:[#allocation18_spill] sm:$0xff] %v9555_v42  ;;  %v1228_v1 = vadd.f32 %v6779_v63, %v9453_v0  ;;  %v1222_v6 = vpop.f32.mrb[39].mxu1 }
 0x169   : > { %v772_v16 = vadd.f32 %v771_v23, %v9325_v29  ;;  %12310 = vst [vmem:[#allocation19_spill] sm:$0xff] %v9561_v58  ;;  %v9567_v11 = vpack.c.bf16 %v1218_v54, %v1213_v62  ;;  %v1223_v8 = vadd.f32 %v1222_v6, %v9453_v0 }
 0x16b   : > { %v7788_v32 = vpack.c.bf16 %v772_v16, %v766_v14  ;;  %v775_v34 = vpop.f32.mrb[64].mxu0  ;;  %12311 = vst [vmem:[#allocation20_spill] sm:$0xff] %v9567_v11  ;;  %v6782_v14 = vpop.f32.mrb[40].mxu1 }
 0x16c   : > { %v776_v41 = vadd.f32 %v775_v34, %v9317_v24  ;;  %v777_v45 = vpop.f32.mrb[65].mxu0  ;;  %v1238_v16 = vadd.f32 %v6782_v14, %v9453_v0  ;;  %v1232_v22 = vpop.f32.mrb[41].mxu1  ;;  %v9575_v34 = vpack.c.bf16 %v1228_v1, %v1223_v8  ;;  %v704_v1 = vadd.f32 %v9425_v46, %v9317_v24 }
 0x16d   : > { %7789 = vmatprep.subr.bf16.mxu1 %v7788_v32  ;;  %v778_v10 = vadd.f32 %v777_v45, %v9325_v29  ;;  %v1233_v38 = vadd.f32 %v1232_v22, %v9453_v0  ;;  %v6785_v40 = vpop.f32.mrb[42].mxu1  ;;  %v710_v46 = vadd.f32 %v9431_v48, %v9317_v24 }
 0x16e   : > { %7791 = vmatpush3.bf16.xpose.msra.mxu1 %v7788_v32  ;;  %6960 = vmatprep.mubr.f32.mxu0 %v776_v41  ;;  %12312 = vst [vmem:[#allocation21_spill] sm:$0xff] %v9575_v34  ;;  %v1248_v45 = vadd.f32 %v6785_v40, %v9453_v0  ;;  %v1242_v37 = vpop.f32.mrb[43].mxu1 }
 0x16f   : > { %v9559_v60 = vpop.f32.mrb[66].mxu0  ;;  %v9581_v47 = vpack.c.bf16 %v1238_v16, %v1233_v38  ;;  %v1243_v25 = vadd.f32 %v1242_v37, %v9453_v0  ;;  %v6788_v53 = vpop.f32.mrb[44].mxu1  ;;  %v716_v37 = vadd.f32 %v9439_v55, %v9317_v24 }
 0x170   : > { %v783_v2 = vpop.f32.mrb[67].mxu0  ;;  %v1258_v49 = vadd.f32 %v6788_v53, %v9453_v0  ;;  %v1252_v54 = vpop.f32.mrb[45].mxu1 }
 0x171   : > { %v784_v23 = vadd.f32 %v783_v2, %v9325_v29  ;;  %12313 = vst [vmem:[#allocation22_spill] sm:$0xff] %v9581_v47  ;;  %v9589_v62 = vpack.c.bf16 %v1248_v45, %v1243_v25  ;;  %v1253_v63 = vadd.f32 %v1252_v54, %v9453_v0  ;;  %v6791_v2 = vpop.f32.mrb[46].mxu1  ;;  %v9884_v47 = vld [vmem:[%s9692_s25 + $0x100] sm:$0xff] }
 0x172   : > { %12327 = vst [vmem:[#allocation34_spill] sm:$0xff] %v9884_v47 }
 0x173   : > { %v7792_v27 = vpack.c.bf16 %v784_v23, %v778_v10  ;;  %v9573_v32 = vpop.f32.mrb[68].mxu0  ;;  %12314 = vst [vmem:[#allocation23_spill] sm:$0xff] %v9589_v62  ;;  %v1268_v10 = vadd.f32 %v6791_v2, %v9453_v0  ;;  %v1262_v23 = vpop.f32.mrb[47].mxu1  ;;  %v9597_v39 = vpack.c.bf16 %v1258_v49, %v1253_v63 }
 0x174   : > { %v789_v41 = vpop.f32.mrb[69].mxu0  ;;  %v1263_v16 = vadd.f32 %v1262_v23, %v9453_v0  ;;  %v6794_v22 = vpop.f32.mrb[48].mxu1 }
 0x175   : > { %6905 = vmatmul.mubr.f32.vlgmr.msra.gmra.mrb[80].mxu1 %v686_v26  ;;  %7793 = vmatprep.subr.bf16.mxu0 %v7792_v27  ;;  %v790_v8 = vadd.f32 %v789_v41, %v9325_v29  ;;  %12315 = vst [vmem:[#allocation24_spill] sm:$0xff] %v9597_v39  ;;  %v1278_v26 = vadd.f32 %v6794_v22, %v9453_v0 }
 0x176   : > { %6907 = vmatprep.mubr.f32.mxu1 %v692_v30  ;;  %7795 = vmatpush3.bf16.xpose.msra.mxu0 %v7792_v27  ;;  %v1272_v27 = vpop.f32.mrb[49].mxu1  ;;  %v9605_v30 = vpack.c.bf16 %v1268_v10, %v1263_v16 }
 0x177   : > { %v9587_v33 = vpop.f32.mrb[70].mxu0  ;;  %v1273_v41 = vadd.f32 %v1272_v27, %v9453_v0  ;;  %v6797_v45 = vpop.f32.mrb[50].mxu1 }
 0x178   : > { %v795_v6 = vpop.f32.mrb[71].mxu0  ;;  %12316 = vst [vmem:[#allocation25_spill] sm:$0xff] %v9605_v30  ;;  %v1288_v53 = vadd.f32 %v6797_v45, %v9453_v0  ;;  %v1282_v49 = vpop.f32.mrb[51].mxu1 }
 0x179   : > { %v796_v14 = vadd.f32 %v795_v6, %v9325_v29  ;;  %6908 = vmatmul.mubr.f32.gmra.mrb[82].mxu1 %v698_v56  ;;  %v9611_v54 = vpack.c.bf16 %v1278_v26, %v1273_v41  ;;  %v1283_v48 = vadd.f32 %v1282_v49, %v9453_v0  ;;  %v6800_v56 = vpop.f32.mrb[52].mxu1 }
 0x17a   : > { %6910 = vmatprep.mubr.f32.mxu1 %v704_v1  ;;  %v1298_v63 = vadd.f32 %v6800_v56, %v9453_v0  ;;  %v1292_v2 = vpop.f32.mrb[53].mxu1  ;;  %v722_v1 = vadd.f32 %v9445_v59, %v9317_v24  ;;  %v740_v56 = vadd.f32 %v9483_v43, %v9317_v24 }
 0x17b   : > { %v7796_v38 = vpack.c.bf16 %v796_v14, %v790_v8  ;;  %v9603_v40 = vpop.f32.mrb[72].mxu0  ;;  %12317 = vst [vmem:[#allocation26_spill] sm:$0xff] %v9611_v54  ;;  %v9619_v6 = vpack.c.bf16 %v1288_v53, %v1283_v48  ;;  %v1293_v10 = vadd.f32 %v1292_v2, %v9453_v0  ;;  %v6803_v23 = vpop.f32.mrb[54].mxu1  ;;  %v728_v8 = vadd.f32 %v9457_v21, %v9317_v24 }
 0x17c   : > { %v801_v25 = vpop.f32.mrb[73].mxu0  ;;  %v1308_v16 = vadd.f32 %v6803_v23, %v9453_v0  ;;  %v1302_v22 = vpop.f32.mrb[55].mxu1  ;;  %v734_v21 = vadd.f32 %v9470_v13, %v9317_v24 }
 0x17d   : > { %6911 = vmatmul.mubr.f32.gmra.mrb[84].mxu1 %v710_v46  ;;  %7797 = vmatprep.subr.bf16.mxu0 %v7796_v38  ;;  %12318 = vst [vmem:[#allocation27_spill] sm:$0xff] %v9619_v6  ;;  %v802_v26 = vadd.f32 %v801_v25, %v9325_v29  ;;  %v9627_v59 = vpack.c.bf16 %v1298_v63, %v1293_v10  ;;  %v9863_v6 = vld [vmem:[%s9692_s25 + $0x78] sm:$0xff] }
 0x17e   : > { %6913 = vmatprep.mubr.f32.mxu1 %v716_v37  ;;  %7799 = vmatpush3.bf16.xpose.msra.mxu0 %v7796_v38  ;;  %v1303_v46 = vadd.f32 %v1302_v22, %v9453_v0  ;;  %v6806_v38 = vpop.f32.mrb[56].mxu1 }
 0x17f   : > { %v9617_v55 = vpop.f32.mrb[74].mxu0  ;;  %12319 = vst [vmem:[#allocation28_spill] sm:$0xff] %v9627_v59  ;;  %v1318_v41 = vadd.f32 %v6806_v38, %v9453_v0  ;;  %v1312_v45 = vpop.f32.mrb[57].mxu1  ;;  %v9860_v59 = vld [vmem:[%s9692_s25 + $0x70] sm:$0xff] }
 0x180   : > { %v807_v14 = vpop.f32.mrb[75].mxu0  ;;  %v9635_v49 = vpack.c.bf16 %v1308_v16, %v1303_v46  ;;  %v1313_v25 = vadd.f32 %v1312_v45, %v9453_v0  ;;  %v6809_v48 = vpop.f32.mrb[58].mxu1  ;;  %v746_v16 = vadd.f32 %v9494_v51, %v9317_v24  ;;  %v752_v46 = vadd.f32 %v9505_v7, %v9317_v24 }
 0x181   : > { %v808_v27 = vadd.f32 %v807_v14, %v9325_v29  ;;  %6914 = vmatmul.mubr.f32.gmra.mrb[86].mxu1 %v722_v1  ;;  %v1328_v2 = vadd.f32 %v6809_v48, %v9453_v0  ;;  %v1322_v1 = vpop.f32.mrb[59].mxu1  ;;  %v758_v48 = vadd.f32 %v9516_v28, %v9317_v24  ;;  %v7898_v39 = vpack.c.bf16 %v9863_v6, %v9860_v59 }
 0x182   : > { %6916 = vmatprep.mubr.f32.mxu1 %v728_v8  ;;  %12320 = vst [vmem:[#allocation29_spill] sm:$0xff] %v9635_v49  ;;  %v9641_v10 = vpack.c.bf16 %v1318_v41, %v1313_v25  ;;  %v1323_v13 = vadd.f32 %v1322_v1, %v9453_v0  ;;  %v6812_v23 = vpop.f32.mrb[60].mxu1  ;;  %v764_v1 = vadd.f32 %v9527_v50, %v9317_v24 }
 0x183   : > { %v7800_v37 = vpack.c.bf16 %v808_v27, %v802_v26  ;;  %v9633_v53 = vpop.f32.mrb[76].mxu0  ;;  %v1338_v8 = vadd.f32 %v6812_v23, %v9453_v0  ;;  %v1332_v14 = vpop.f32.mrb[61].mxu1 }
 0x184   : > { %v813_v63 = vpop.f32.mrb[77].mxu0  ;;  %12321 = vst [vmem:[#allocation30_spill] sm:$0xff] %v9641_v10  ;;  %v9649_v22 = vpack.c.bf16 %v1328_v2, %v1323_v13  ;;  %v1333_v26 = vadd.f32 %v1332_v14, %v9453_v0  ;;  %v6815_v27 = vpop.f32.mrb[62].mxu1 }
 0x185   : > { %6917 = vmatmul.mubr.f32.gmra.mrb[88].mxu1 %v734_v21  ;;  %7801 = vmatprep.subr.bf16.mxu0 %v7800_v37  ;;  %v1348_v41 = vadd.f32 %v6815_v27, %v9453_v0  ;;  %v1342_v45 = vpop.f32.mrb[63].mxu1  ;;  %v814_v21 = vadd.f32 %v813_v63, %v9325_v29 }
 0x186   : > { %6919 = vmatprep.mubr.f32.mxu1 %v740_v56  ;;  %7803 = vmatpush3.bf16.xpose.msra.mxu0 %v7800_v37  ;;  %12322 = vst [vmem:[#allocation31_spill] sm:$0xff] %v9649_v22  ;;  %v9657_v51 = vpack.c.bf16 %v1338_v8, %v1333_v26  ;;  %v1343_v25 = vadd.f32 %v1342_v45, %v9453_v0  ;;  %v9845_v22 = vld [vmem:[%s9692_s25 + $0x68] sm:$0xff] }
 0x187   : > { %v9647_v43 = vpop.f32.mrb[78].mxu0  ;;  %v770_v0 = vadd.f32 %v9538_v4, %v9317_v24 }
 0x188   : > { %v819_v38 = vpop.f32.mrb[79].mxu0  ;;  %12323 = vst [vmem:[#allocation32_spill] sm:$0xff] %v9657_v51  ;;  %v9664_v7 = vpack.c.bf16 %v1348_v41, %v1343_v25 }
 0x189   : > { %v820_v37 = vadd.f32 %v819_v38, %v9325_v29  ;;  %6920 = vmatmul.mubr.f32.gmra.mrb[90].mxu1 %v746_v16 }
 0x18a   : > { %6922 = vmatprep.mubr.f32.mxu1 %v752_v46  ;;  %12324 = vst [vmem:[#allocation33_spill] sm:$0xff] %v9664_v7 }
 0x18b   : > { %v7804_v56 = vpack.c.bf16 %v820_v37, %v814_v21  ;;  %v9662_v2 = vpop.f32.mrb[80].mxu0 }
 0x18c   : > { %v825_v63 = vpop.f32.mrb[81].mxu0 }
 0x18d   : > { %6923 = vmatmul.mubr.f32.gmra.mrb[92].mxu1 %v758_v48  ;;  %7805 = vmatprep.subr.bf16.mxu0 %v7804_v56  ;;  %v826_v28 = vadd.f32 %v825_v63, %v9325_v29 }
 0x18e   : > { %6925 = vmatprep.mubr.f32.mxu1 %v764_v1  ;;  %7807 = vmatpush3.bf16.xpose.msra.mxu0 %v7804_v56 }
 0x18f   : > { %v9670_v13 = vpop.f32.mrb[82].mxu0 }
 0x190   : > { %v831_v23 = vpop.f32.mrb[83].mxu0 }
 0x191   : > { %v832_v8 = vadd.f32 %v831_v23, %v9325_v29  ;;  %6926 = vmatmul.mubr.f32.gmra.mrb[94].mxu1 %v770_v0 }
 0x193   : > { %v7808_v14 = vpack.c.bf16 %v832_v8, %v826_v28  ;;  %v9674_v16 = vpop.f32.mrb[84].mxu0  ;;  %v9697_v28 = vld [vmem:[%s9692_s25] sm:$0xff]  ;;  %v9700_v8 = vld [vmem:[%s9692_s25 + $0x8] sm:$0xff] }
 0x194   : > { %v837_v50 = vpop.f32.mrb[85].mxu0 }
 0x195   : > { %7809 = vmatprep.subr.bf16.mxu0 %v7808_v14  ;;  %v838_v4 = vadd.f32 %v837_v50, %v9325_v29 }
 0x196   : > { %7811 = vmatpush3.bf16.xpose.msra.mxu0 %v7808_v14 }
 0x197   : > { %v9676_v26 = vpop.f32.mrb[86].mxu0 }
 0x198   : > { %v843_v27 = vpop.f32.mrb[87].mxu0 }
 0x199   : > { %v844_v46 = vadd.f32 %v843_v27, %v9325_v29 }
 0x19b   : > { %v7812_v38 = vpack.c.bf16 %v844_v46, %v838_v4  ;;  %v9680_v41 = vpop.f32.mrb[88].mxu0  ;;  %v7856_v46 = vpack.c.bf16 %v9700_v8, %v9697_v28 }
 0x19c   : > { %v849_v45 = vpop.f32.mrb[89].mxu0 }
 0x19d   : > { %7813 = vmatprep.subr.bf16.mxu0 %v7812_v38  ;;  %v850_v25 = vadd.f32 %v849_v45, %v9325_v29 }
 0x19e   : > { %7815 = vmatpush3.bf16.xpose.msra.mxu0 %v7812_v38 }
 0x19f   : > { %v9682_v21 = vpop.f32.mrb[90].mxu0 }
 0x1a0   : > { %v855_v37 = vpop.f32.mrb[91].mxu0 }
 0x1a1   : > { %v856_v48 = vadd.f32 %v855_v37, %v9325_v29 }
 0x1a3   : > { %v7816_v56 = vpack.c.bf16 %v856_v48, %v850_v25  ;;  %v9686_v1 = vpop.f32.mrb[92].mxu0 }
 0x1a4   : > { %v861_v63 = vpop.f32.mrb[93].mxu0 }
 0x1a5   : > { %7817 = vmatprep.subr.bf16.mxu0 %v7816_v56  ;;  %v862_v14 = vadd.f32 %v861_v63, %v9325_v29 }
 0x1a6   : > { %7819 = vmatpush3.bf16.xpose.msra.mxu0 %v7816_v56 }
 0x1a7   : > { %v9694_v0 = vpop.f32.mrb[94].mxu0 }
 0x1a8   : > { %v867_v23 = vpop.f32.mrb[95].mxu0 }
 0x1a9   : > { %v868_v50 = vadd.f32 %v867_v23, %v9325_v29  ;;  %v9720_v23 = vld [vmem:[%s9692_s25 + $0x10] sm:$0xff] }
 0x1ab   : > { %v7820_v27 = vpack.c.bf16 %v868_v50, %v862_v14  ;;  %v871_v4 = vpop.f32.mrb[96].mxu0  ;;  %v9723_v14 = vld [vmem:[%s9692_s25 + $0x18] sm:$0xff]  ;;  %v782_v50 = vadd.f32 %v9559_v60, %v9317_v24 }
 0x1ac   : > { %v872_v38 = vadd.f32 %v871_v4, %v9317_v24  ;;  %v873_v45 = vpop.f32.mrb[97].mxu0 }
 0x1ad   : > { %7821 = vmatprep.subr.bf16.mxu0 %v7820_v27  ;;  %v874_v56 = vadd.f32 %v873_v45, %v9325_v29  ;;  %v7862_v45 = vpack.c.bf16 %v9723_v14, %v9720_v23 }
 0x1ae   : > { %7823 = vmatpush3.bf16.xpose.msra.mxu0 %v7820_v27  ;;  %7016 = vmatprep.mubr.f32.mxu1 %v872_v38  ;;  %v788_v38 = vadd.f32 %v9573_v32, %v9317_v24  ;;  %v800_v32 = vadd.f32 %v9603_v40, %v9317_v24  ;;  %v812_v40 = vadd.f32 %v9633_v53, %v9317_v24 }
 0x1af   : > { %v9713_v25 = vpop.f32.mrb[98].mxu0  ;;  %7858 = vmatprep.subr.msk.bf16.mxu0 %vm9709_vm2, %v7856_v46  ;;  %v824_v53 = vadd.f32 %v9662_v2, %v9317_v24  ;;  %v836_v2 = vadd.f32 %v9674_v16, %v9317_v24  ;;  %v848_v16 = vadd.f32 %v9680_v41, %v9317_v24 }
 0x1b0   : > { %v879_v48 = vpop.f32.mrb[99].mxu0 }
 0x1b1   : > { %v880_v63 = vadd.f32 %v879_v48, %v9325_v29  ;;  %v794_v48 = vadd.f32 %v9587_v33, %v9317_v24  ;;  %v9749_v33 = vld [vmem:[%s9692_s25 + $0x28] sm:$0xff] }
 0x1b3   : > { %v7824_v4 = vpack.c.bf16 %v880_v63, %v874_v56  ;;  %v9727_v27 = vpop.f32.mrb[100].mxu0 }
 0x1b4   : > { %v885_v7 = vpop.f32.mrb[101].mxu0  ;;  %v884_v18 = vadd.f32 %v9727_v27, %v9317_v24  ;;  %v9946_v27 = vld [vmem:[%s9692_s25 + $0xa0] sm:$0xff] }
 0x1b5   : > { %6961 = vmatmul.mubr.f32.vlgmr.msra.gmra.mrb[128].mxu0 %v782_v50  ;;  %7825 = vmatprep.subr.bf16.mxu1 %v7824_v4  ;;  %v886_v63 = vadd.f32 %v885_v7, %v9325_v29 }
 0x1b6   : > { %6963 = vmatprep.mubr.f32.mxu0 %v788_v38  ;;  %7827 = vmatpush3.bf16.xpose.msra.mxu1 %v7824_v4  ;;  %v9746_v4 = vld [vmem:[%s9692_s25 + $0x20] sm:$0xff] }
 0x1b7   : > { %7861 = vmatpush3.bf16.xpose.msk.msra.mxu0 %vm9709_vm2, %v7856_v46  ;;  %v9737_v60 = vpop.f32.mrb[102].mxu0  ;;  %v806_v46 = vadd.f32 %v9617_v55, %v9317_v24 }
 0x1b8   : > { %v891_v56 = vpop.f32.mrb[103].mxu0  ;;  %7864 = vmatprep.subr.msk.bf16.mxu0 %vm9709_vm2, %v7862_v45  ;;  %v890_v5 = vadd.f32 %v9737_v60, %v9317_v24  ;;  %v9955_v60 = vld [vmem:[%s9692_s25 + $0x128] sm:$0xff] }
 0x1b9   : > { %v892_v50 = vadd.f32 %v891_v56, %v9325_v29  ;;  %6964 = vmatmul.mubr.f32.gmra.mrb[130].mxu0 %v794_v48  ;;  %v7868_v48 = vpack.c.bf16 %v9749_v33, %v9746_v4 }
 0x1ba   : > { %6966 = vmatprep.mubr.f32.mxu0 %v800_v32  ;;  %v818_v32 = vadd.f32 %v9647_v43, %v9317_v24  ;;  %v830_v43 = vadd.f32 %v9670_v13, %v9317_v24 }
 0x1bb   : > { %v7828_v38 = vpack.c.bf16 %v892_v50, %v886_v63  ;;  %v9753_v51 = vpop.f32.mrb[104].mxu0 }
 0x1bc   : > { %v897_v7 = vpop.f32.mrb[105].mxu0 }
 0x1bd   : > { %6967 = vmatmul.mubr.f32.gmra.mrb[132].mxu0 %v806_v46  ;;  %7829 = vmatprep.subr.bf16.mxu1 %v7828_v38  ;;  %v898_v63 = vadd.f32 %v897_v7, %v9325_v29  ;;  %v9772_v46 = vld [vmem:[%s9692_s25 + $0x30] sm:$0xff] }
 0x1be   : > { %7831 = vmatpush3.bf16.xpose.msra.mxu1 %v7828_v38  ;;  %6969 = vmatprep.mubr.f32.mxu0 %v812_v40  ;;  %v9775_v38 = vld [vmem:[%s9692_s25 + $0x38] sm:$0xff] }
 0x1bf   : > { %7867 = vmatpush3.bf16.xpose.msk.msra.mxu0 %vm9709_vm2, %v7862_v45  ;;  %v9763_v55 = vpop.f32.mrb[106].mxu0 }
 0x1c0   : > { %v903_v56 = vpop.f32.mrb[107].mxu0  ;;  %7870 = vmatprep.subr.msk.bf16.mxu0 %vm9709_vm2, %v7868_v48 }
 0x1c1   : > { %v904_v50 = vadd.f32 %v903_v56, %v9325_v29  ;;  %6970 = vmatmul.mubr.f32.gmra.mrb[134].mxu0 %v818_v32  ;;  %v7874_v56 = vpack.c.bf16 %v9775_v38, %v9772_v46  ;;  %v842_v32 = vadd.f32 %v9676_v26, %v9317_v24  ;;  %v854_v26 = vadd.f32 %v9682_v21, %v9317_v24 }
 0x1c2   : > { %6972 = vmatprep.mubr.f32.mxu0 %v824_v53 }
 0x1c3   : > { %v7832_v45 = vpack.c.bf16 %v904_v50, %v898_v63  ;;  %v9779_v40 = vpop.f32.mrb[108].mxu0 }
 0x1c4   : > { %v909_v7 = vpop.f32.mrb[109].mxu0  ;;  %v908_v52 = vadd.f32 %v9779_v40, %v9317_v24  ;;  %v9998_v40 = vld [vmem:[%s9692_s25 + $0xb0] sm:$0xff] }
 0x1c5   : > { %7833 = vmatprep.subr.bf16.mxu1 %v7832_v45  ;;  %6973 = vmatmul.mubr.f32.gmra.mrb[136].mxu0 %v830_v43  ;;  %v910_v63 = vadd.f32 %v909_v7, %v9325_v29  ;;  %v9798_v43 = vld [vmem:[%s9692_s25 + $0x40] sm:$0xff] }
 0x1c6   : > { %7835 = vmatpush3.bf16.xpose.msra.mxu1 %v7832_v45  ;;  %6975 = vmatprep.mubr.f32.mxu0 %v836_v2  ;;  %v9801_v45 = vld [vmem:[%s9692_s25 + $0x48] sm:$0xff]  ;;  %v860_v2 = vadd.f32 %v9686_v1, %v9317_v24 }
 0x1c7   : > { %7873 = vmatpush3.bf16.xpose.msk.msra.mxu0 %vm9709_vm2, %v7868_v48  ;;  %v9789_v13 = vpop.f32.mrb[110].mxu0 }
 0x1c8   : > { %v915_v53 = vpop.f32.mrb[111].mxu0  ;;  %7876 = vmatprep.subr.msk.bf16.mxu0 %vm9709_vm2, %v7874_v56  ;;  %v914_v35 = vadd.f32 %v9789_v13, %v9317_v24  ;;  %v10007_v13 = vld [vmem:[%s9692_s25 + $0x138] sm:$0xff] }
 0x1c9   : > { %v916_v50 = vadd.f32 %v915_v53, %v9325_v29  ;;  %6976 = vmatmul.mubr.f32.gmra.mrb[138].mxu0 %v842_v32  ;;  %v7880_v53 = vpack.c.bf16 %v9801_v45, %v9798_v43  ;;  %v866_v32 = vadd.f32 %v9694_v0, %v9317_v24 }
 0x1ca   : > { %6978 = vmatprep.mubr.f32.mxu0 %v848_v16 }
 0x1cb   : > { %v7836_v48 = vpack.c.bf16 %v916_v50, %v910_v63  ;;  %v9805_v41 = vpop.f32.mrb[112].mxu0  ;;  %v9822_v50 = vld [vmem:[%s9692_s25 + $0x50] sm:$0xff] }
 0x1cc   : > { %v921_v7 = vpop.f32.mrb[113].mxu0 }
 0x1cd   : > { %7837 = vmatprep.subr.bf16.mxu1 %v7836_v48  ;;  %6979 = vmatmul.mubr.f32.gmra.mrb[140].mxu0 %v854_v26  ;;  %v922_v1 = vadd.f32 %v921_v7, %v9325_v29  ;;  %v9825_v26 = vld [vmem:[%s9692_s25 + $0x58] sm:$0xff] }
 0x1ce   : > { %7839 = vmatpush3.bf16.xpose.msra.mxu1 %v7836_v48  ;;  %6981 = vmatprep.mubr.f32.mxu0 %v860_v2  ;;  %v7886_v2 = vpack.c.bf16 %v9825_v26, %v9822_v50 }
 0x1cf   : > { %7879 = vmatpush3.bf16.xpose.msk.msra.mxu0 %vm9709_vm2, %v7874_v56  ;;  %v9815_v21 = vpop.f32.mrb[114].mxu0 }
 0x1d0   : > { %v927_v16 = vpop.f32.mrb[115].mxu0  ;;  %7882 = vmatprep.subr.msk.bf16.mxu0 %vm9709_vm2, %v7880_v53 }
 0x1d1   : > { %v928_v63 = vadd.f32 %v927_v16, %v9325_v29  ;;  %6982 = vmatmul.mubr.f32.gmra.mrb[142].mxu0 %v866_v32 }
 0x1d2   : > { %7072 = vmatprep.mubr.msk.f32.mxu0 %vm2059_vm1, %v9697_v28 }
 0x1d3   : > { %v7840_v0 = vpack.c.bf16 %v928_v63, %v922_v1  ;;  %v9829_v56 = vpop.f32.mrb[116].mxu0  ;;  %v9842_v63 = vld [vmem:[%s9692_s25 + $0x60] sm:$0xff] }
 0x1d4   : > { %v933_v48 = vpop.f32.mrb[117].mxu0  ;;  %v7892_v49 = vpack.c.bf16 %v9845_v22, %v9842_v63  ;;  %v932_v17 = vadd.f32 %v9829_v56, %v9317_v24  ;;  %v10052_v56 = vld [vmem:[%s9692_s25 + $0xc0] sm:$0xff] }
 0x1d5   : > { %7841 = vmatprep.subr.bf16.mxu1 %v7840_v0  ;;  %v934_v32 = vadd.f32 %v933_v48, %v9325_v29 }
 0x1d6   : > { %7843 = vmatpush3.bf16.xpose.msra.mxu1 %v7840_v0 }
 0x1d7   : > { %7885 = vmatpush3.bf16.xpose.msk.msra.mxu0 %vm9709_vm2, %v7880_v53  ;;  %v9835_v7 = vpop.f32.mrb[118].mxu0 }
 0x1d8   : > { %v939_v16 = vpop.f32.mrb[119].mxu0  ;;  %7888 = vmatprep.subr.msk.bf16.mxu0 %vm9709_vm2, %v7886_v2  ;;  %v938_v42 = vadd.f32 %v9835_v7, %v9317_v24 }
 0x1d9   : > { %v940_v1 = vadd.f32 %v939_v16, %v9325_v29 }
 0x1db   : > { %v7844_v0 = vpack.c.bf16 %v940_v1, %v934_v32  ;;  %v9847_v10 = vpop.f32.mrb[120].mxu0 }
 0x1dc   : > { %v945_v53 = vpop.f32.mrb[121].mxu0 }
 0x1dd   : > { %7845 = vmatprep.subr.bf16.mxu1 %v7844_v0  ;;  %v946_v32 = vadd.f32 %v945_v53, %v9325_v29 }
 0x1de   : > { %7847 = vmatpush3.bf16.xpose.msra.mxu1 %v7844_v0 }
 0x1df   : > { %7891 = vmatpush3.bf16.xpose.msk.msra.mxu0 %vm9709_vm2, %v7886_v2  ;;  %v9853_v48 = vpop.f32.mrb[122].mxu0 }
 0x1e0   : > { %v951_v16 = vpop.f32.mrb[123].mxu0  ;;  %7894 = vmatprep.subr.msk.bf16.mxu0 %vm9709_vm2, %v7892_v49 }
 0x1e1   : > { %v952_v1 = vadd.f32 %v951_v16, %v9325_v29 }
 0x1e3   : > { %v7848_v0 = vpack.c.bf16 %v952_v1, %v946_v32  ;;  %v9865_v2 = vpop.f32.mrb[124].mxu0  ;;  %v9876_v32 = vld [vmem:[%s9692_s25 + $0x80] sm:$0xff]  ;;  %v9879_v1 = vld [vmem:[%s9692_s25 + $0x88] sm:$0xff] }
 0x1e4   : > { %v957_v30 = vpop.f32.mrb[125].mxu0  ;;  %v7904_v11 = vpack.c.bf16 %v9879_v1, %v9876_v32  ;;  %v9921_v54 = vmul.f32 %v9879_v1, %v9879_v1  ;;  %v956_v44 = vadd.f32 %v9865_v2, %v9317_v24  ;;  %v10110_v2 = vld [vmem:[%s9692_s25 + $0xd0] sm:$0xff] }
 0x1e5   : > { %7849 = vmatprep.subr.bf16.mxu1 %v7848_v0  ;;  %v958_v62 = vadd.f32 %v957_v30, %v9325_v29  ;;  %v9906_v30 = vld [vmem:[%s9692_s25 + $0x110] sm:$0xff] }
 0x1e6   : > { %7851 = vmatpush3.bf16.xpose.msra.mxu1 %v7848_v0 }
 0x1e7   : > { %7897 = vmatpush3.bf16.xpose.msk.msra.mxu0 %vm9709_vm2, %v7892_v49  ;;  %v9871_v53 = vpop.f32.mrb[126].mxu0  ;;  %v9887_v49 = vld [vmem:[%s9692_s25 + $0x108] sm:$0xff] }
 0x1e8   : > { %v963_v16 = vpop.f32.mrb[127].mxu0  ;;  %7900 = vmatprep.subr.msk.bf16.mxu0 %vm9709_vm2, %v7898_v39  ;;  %v7952_v58 = vpack.c.bf16 %v9887_v49, %v9884_v47 }
 0x1e9   : > { %v964_v0 = vadd.f32 %v963_v16, %v9325_v29  ;;  %v9900_v29 = vld [vmem:[%s9692_s25 + $0x90] sm:$0xff]  ;;  %v9909_v16 = vld [vmem:[%s9692_s25 + $0x118] sm:$0xff] }
 0x1ea   : > { %v7958_v36 = vpack.c.bf16 %v9909_v16, %v9906_v30 }
 0x1eb   : > { %v7852_v34 = vpack.c.bf16 %v964_v0, %v958_v62  ;;  %v9903_v62 = vld [vmem:[%s9692_s25 + $0x98] sm:$0xff]  ;;  %v9917_v0 = vmul.f32 %v9876_v32, %v9876_v32 }
 0x1ed   : > { %7853 = vmatprep.subr.bf16.mxu1 %v7852_v34 }
 0x1ee   : > { %7855 = vmatpush3.bf16.xpose.msra.mxu1 %v7852_v34  ;;  %v878_v34 = vadd.f32 %v9713_v25, %v9317_v24  ;;  %v9927_v25 = vpack.c.bf16 %v9921_v54, %v9917_v0 }
 0x1ef   : > { %7903 = vmatpush3.bf16.xpose.msk.msra.mxu0 %vm9709_vm2, %v7898_v39  ;;  %7906 = vmatprep.subr.msk.bf16.mxu1 %vm9709_vm2, %v7904_v11  ;;  %v7910_v39 = vpack.c.bf16 %v9903_v62, %v9900_v29 }
 0x1f0   : > { %7954 = vmatprep.subr.msk.bf16.mxu0 %vm9709_vm2, %v7952_v58  ;;  %12328 = vst [vmem:[#allocation35_spill] sm:$0xff] %v9927_v25 }
 0x1f5   : > { %7017 = vmatmul.mubr.f32.vlgmr.msra.gmra.mrb[96].mxu1 %v878_v34  ;;  %v896_v34 = vadd.f32 %v9753_v51, %v9317_v24  ;;  %v7916_v51 = vpack.c.bf16 %v9949_v61, %v9946_v27 }
 0x1f6   : > { %7073 = vmatmul.mubr.msk.f32.vlgmr.msra.gmra.mrb[144].mxu0 %vm2059_vm1, %v9700_v8  ;;  %7909 = vmatpush3.bf16.xpose.msk.msra.mxu1 %vm9709_vm2, %v7904_v11  ;;  %v9952_v11 = vld [vmem:[%s9692_s25 + $0x120] sm:$0xff] }
 0x1f7   : > { %7957 = vmatpush3.bf16.xpose.msk.msra.mxu0 %vm9709_vm2, %v7952_v58  ;;  %7912 = vmatprep.subr.msk.bf16.mxu1 %vm9709_vm2, %v7910_v39  ;;  %v902_v58 = vadd.f32 %v9763_v55, %v9317_v24  ;;  %v7964_v55 = vpack.c.bf16 %v9955_v60, %v9952_v11 }
 0x1f8   : > { %7960 = vmatprep.subr.msk.bf16.mxu0 %vm9709_vm2, %v7958_v36  ;;  %7019 = vmatprep.mubr.f32.mxu1 %v884_v18  ;;  %v9969_v18 = vmul.f32 %v9900_v29, %v9900_v29 }
 0x1f9   : > { %7075 = vmatprep.mubr.msk.f32.mxu0 %vm2059_vm1, %v9720_v23  ;;  %7020 = vmatmul.mubr.f32.gmra.mrb[98].mxu1 %v890_v5  ;;  %v9973_v5 = vmul.f32 %v9903_v62, %v9903_v62 }
 0x1fa   : > { %7076 = vmatmul.mubr.msk.f32.gmra.mrb[146].mxu0 %vm2059_vm1, %v9723_v14  ;;  %7022 = vmatprep.mubr.f32.mxu1 %v896_v34 }
 0x1fb   : > { %7078 = vmatprep.mubr.msk.f32.mxu0 %vm2059_vm1, %v9746_v4  ;;  %v9979_v34 = vpack.c.bf16 %v9973_v5, %v9969_v18 }
 0x1fd   : > { %7023 = vmatmul.mubr.f32.gmra.mrb[100].mxu1 %v902_v58  ;;  %12329 = vst [vmem:[#allocation36_spill] sm:$0xff] %v9979_v34  ;;  %v920_v58 = vadd.f32 %v9805_v41, %v9317_v24 }
 0x1fe   : > { %7915 = vmatpush3.bf16.xpose.msk.msra.mxu1 %vm9709_vm2, %v7910_v39  ;;  %7079 = vmatmul.mubr.msk.f32.gmra.mrb[148].mxu0 %vm2059_vm1, %v9749_v33  ;;  %v10001_v39 = vld [vmem:[%s9692_s25 + $0xb8] sm:$0xff] }
 0x1ff   : > { %7963 = vmatpush3.bf16.xpose.msk.msra.mxu0 %vm9709_vm2, %v7958_v36  ;;  %7918 = vmatprep.subr.msk.bf16.mxu1 %vm9709_vm2, %v7916_v51  ;;  %v926_v36 = vadd.f32 %v9815_v21, %v9317_v24  ;;  %v7922_v41 = vpack.c.bf16 %v10001_v39, %v9998_v40 }
 0x200   : > { %7966 = vmatprep.subr.msk.bf16.mxu0 %vm9709_vm2, %v7964_v55  ;;  %7025 = vmatprep.mubr.f32.mxu1 %v908_v52  ;;  %v10021_v52 = vmul.f32 %v9946_v27, %v9946_v27 }
 0x201   : > { %7081 = vmatprep.mubr.msk.f32.mxu0 %vm2059_vm1, %v9772_v46  ;;  %7026 = vmatmul.mubr.f32.gmra.mrb[102].mxu1 %v914_v35  ;;  %v10025_v35 = vmul.f32 %v9949_v61, %v9949_v61 }
 0x202   : > { %7082 = vmatmul.mubr.msk.f32.gmra.mrb[150].mxu0 %vm2059_vm1, %v9775_v38  ;;  %7028 = vmatprep.mubr.f32.mxu1 %v920_v58  ;;  %v7970_v58 = vpack.c.bf16 %v10007_v13, %v10004_v31 }
 0x203   : > { %7084 = vmatprep.mubr.msk.f32.mxu0 %vm2059_vm1, %v9798_v43  ;;  %v10031_v21 = vpack.c.bf16 %v10025_v35, %v10021_v52 }
 0x205   : > { %7029 = vmatmul.mubr.f32.gmra.mrb[104].mxu1 %v926_v36  ;;  %12330 = vst [vmem:[#allocation37_spill] sm:$0xff] %v10031_v21  ;;  %v944_v36 = vadd.f32 %v9847_v10, %v9317_v24  ;;  %v950_v10 = vadd.f32 %v9853_v48, %v9317_v24  ;;  %v10197_v21 = vld [vmem:[%s9692_s25 + $0x170] sm:$0xff] }
 0x206   : > { %7921 = vmatpush3.bf16.xpose.msk.msra.mxu1 %vm9709_vm2, %v7916_v51  ;;  %7085 = vmatmul.mubr.msk.f32.gmra.mrb[152].mxu0 %vm2059_vm1, %v9801_v45  ;;  %v10055_v51 = vld [vmem:[%s9692_s25 + $0xc8] sm:$0xff] }
 0x207   : > { %7969 = vmatpush3.bf16.xpose.msk.msra.mxu0 %vm9709_vm2, %v7964_v55  ;;  %7924 = vmatprep.subr.msk.bf16.mxu1 %vm9709_vm2, %v7922_v41  ;;  %v10063_v55 = vld [vmem:[%s9692_s25 + $0x148] sm:$0xff] }
 0x208   : > { %v10047_v9 = vpop.f32.mrb[64].mxu1  ;;  %7972 = vmatprep.subr.msk.bf16.mxu0 %vm9709_vm2, %v7970_v58  ;;  %7031 = vmatprep.mubr.f32.mxu1 %v932_v17  ;;  %v7928_v17 = vpack.c.bf16 %v10055_v51, %v10052_v56  ;;  %v7976_v48 = vpack.c.bf16 %v10063_v55, %v10060_v3 }
 0x209   : > { %12331 = vst [vmem:[#allocation38_spill] sm:$0xff] %v10047_v9  ;;  %v10057_v7 = vpop.f32.mrb[65].mxu1  ;;  %7087 = vmatprep.mubr.msk.f32.mxu0 %vm2059_vm1, %v9822_v50  ;;  %7032 = vmatmul.mubr.f32.gmra.mrb[106].mxu1 %v938_v42  ;;  %v10081_v42 = vmul.f32 %v10001_v39, %v10001_v39 }
 0x20a   : > { %12332 = vst [vmem:[#allocation39_spill] sm:$0xff] %v10057_v7  ;;  %7088 = vmatmul.mubr.msk.f32.gmra.mrb[154].mxu0 %vm2059_vm1, %v9825_v26  ;;  %7034 = vmatprep.mubr.f32.mxu1 %v944_v36  ;;  %v10077_v7 = vmul.f32 %v9998_v40, %v9998_v40 }
 0x20b   : > { %7090 = vmatprep.mubr.msk.f32.mxu0 %vm2059_vm1, %v9842_v63 }
 0x20c   : > { %v10083_v36 = vpop.f32.mrb[66].mxu1  ;;  %v10091_v57 = vpack.c.bf16 %v10081_v42, %v10077_v7 }
 0x20d   : > { %12333 = vst [vmem:[#allocation40_spill] sm:$0xff] %v10083_v36  ;;  %v10087_v9 = vpop.f32.mrb[67].mxu1  ;;  %7035 = vmatmul.mubr.f32.gmra.mrb[108].mxu1 %v950_v10  ;;  %v962_v36 = vadd.f32 %v9871_v53, %v9317_v24  ;;  %v10121_v24 = vld [vmem:[%s9692_s25 + $0x158] sm:$0xff] }
 0x20e   : > { %12334 = vst [vmem:[#allocation41_spill] sm:$0xff] %v10087_v9  ;;  %12335 = vst [vmem:[#allocation42_spill] sm:$0xff] %v10091_v57  ;;  %7927 = vmatpush3.bf16.xpose.msk.msra.mxu1 %vm9709_vm2, %v7922_v41  ;;  %7091 = vmatmul.mubr.msk.f32.gmra.mrb[156].mxu0 %vm2059_vm1, %v9845_v22  ;;  %v10113_v41 = vld [vmem:[%s9692_s25 + $0xd8] sm:$0xff] }
 0x20f   : > { %7975 = vmatpush3.bf16.xpose.msk.msra.mxu0 %vm9709_vm2, %v7970_v58  ;;  %7930 = vmatprep.subr.msk.bf16.mxu1 %vm9709_vm2, %v7928_v17  ;;  %v7982_v58 = vpack.c.bf16 %v10121_v24, %v10118_v20 }
 0x210   : > { %v10105_v10 = vpop.f32.mrb[68].mxu1  ;;  %7978 = vmatprep.subr.msk.bf16.mxu0 %vm9709_vm2, %v7976_v48  ;;  %7037 = vmatprep.mubr.f32.mxu1 %v956_v44  ;;  %v7934_v44 = vpack.c.bf16 %v10113_v41, %v10110_v2 }
 0x211   : > { %12336 = vst [vmem:[#allocation43_spill] sm:$0xff] %v10105_v10  ;;  %v10115_v9 = vpop.f32.mrb[69].mxu1  ;;  %7093 = vmatprep.mubr.msk.f32.mxu0 %vm2059_vm1, %v9860_v59  ;;  %7038 = vmatmul.mubr.f32.gmra.mrb[110].mxu1 %v962_v36  ;;  %v10161_v10 = vld [vmem:[%s9692_s25 + $0x168] sm:$0xff] }
 0x212   : > { %12337 = vst [vmem:[#allocation44_spill] sm:$0xff] %v10115_v9  ;;  %7094 = vmatmul.mubr.msk.f32.gmra.mrb[158].mxu0 %vm2059_vm1, %v9863_v6  ;;  %7128 = vmatprep.mubr.msk.f32.mxu1 %vm2059_vm1, %v9876_v32  ;;  %v10153_v9 = vld [vmem:[%s9692_s25 + $0xe8] sm:$0xff] }
 0x213   : > { %7184 = vmatprep.mubr.msk.f32.mxu0 %vm2059_vm1, %v9884_v47 }
 0x214   : > { %v10133_v53 = vpop.f32.mrb[70].mxu1 }
 0x215   : > { %12338 = vst [vmem:[#allocation45_spill] sm:$0xff] %v10133_v53  ;;  %v10137_v36 = vpop.f32.mrb[71].mxu1  ;;  %v10150_v53 = vld [vmem:[%s9692_s25 + $0xe0] sm:$0xff] }
 0x216   : > { %12339 = vst [vmem:[#allocation46_spill] sm:$0xff] %v10137_v36  ;;  %7933 = vmatpush3.bf16.xpose.msk.msra.mxu1 %vm9709_vm2, %v7928_v17  ;;  %v10158_v17 = vld [vmem:[%s9692_s25 + $0x160] sm:$0xff] }
 0x217   : > { %7981 = vmatpush3.bf16.xpose.msk.msra.mxu0 %vm9709_vm2, %v7976_v48  ;;  %7936 = vmatprep.subr.msk.bf16.mxu1 %vm9709_vm2, %v7934_v44  ;;  %v7940_v48 = vpack.c.bf16 %v10153_v9, %v10150_v53 }
 0x218   : > { %v10145_v32 = vpop.f32.mrb[72].mxu1  ;;  %7984 = vmatprep.subr.msk.bf16.mxu0 %vm9709_vm2, %v7982_v58 }
 0x219   : > { %12340 = vst [vmem:[#allocation47_spill] sm:$0xff] %v10145_v32  ;;  %v10155_v36 = vpop.f32.mrb[73].mxu1  ;;  %v7988_v32 = vpack.c.bf16 %v10161_v10, %v10158_v17 }
 0x21a   : > { %12341 = vst [vmem:[#allocation48_spill] sm:$0xff] %v10155_v36  ;;  %v1995_v36 = vmul.f32 %v9697_v28, %v9697_v28  ;;  %v10187_v28 = vld [vmem:[%s9692_s25 + $0xf0] sm:$0xff] }
 0x21c   : > { %v10165_v15 = vpop.f32.mrb[74].mxu1  ;;  %v2060_v12 = vsel %vm2059_vm1, %v1995_v36, 0.0 }
 0x21d   : > { %12342 = vst [vmem:[#allocation49_spill] sm:$0xff] %v10165_v15  ;;  %v10169_v19 = vpop.f32.mrb[75].mxu1  ;;  %v2108_v15 = vsel %vm2059_vm1, %v9917_v0, 0.0  ;;  %v10200_v0 = vld [vmem:[%s9692_s25 + $0x178] sm:$0xff]  ;;  %2061 = vadd.xlane.f32.xlu0 %v2060_v12  ;;  %v1997_v12 = vmul.f32 %v9720_v23, %v9720_v23  ;;  %v10228_v23 = vld [vmem:[%s9692_s25 + $0x180] sm:$0xff] }
 0x21e   : > { %12343 = vst [vmem:[#allocation50_spill] sm:$0xff] %v10169_v19  ;;  %7939 = vmatpush3.bf16.xpose.msk.msra.mxu1 %vm9709_vm2, %v7934_v44  ;;  %v10190_v19 = vld [vmem:[%s9692_s25 + $0xf8] sm:$0xff]  ;;  %v1996_v44 = vmul.f32 %v9700_v8, %v9700_v8  ;;  %2109 = vadd.xlane.f32.xlu1 %v2108_v15  ;;  %v7994_v15 = vpack.c.bf16 %v10200_v0, %v10197_v21 }
 0x21f   : > { %7987 = vmatpush3.bf16.xpose.msk.msra.mxu0 %vm9709_vm2, %v7982_v58  ;;  %7942 = vmatprep.subr.msk.bf16.mxu1 %vm9709_vm2, %v7940_v48  ;;  %v7946_v25 = vpack.c.bf16 %v10190_v19, %v10187_v28 }
 0x220   : > { %v10182_v57 = vpop.f32.mrb[76].mxu1  ;;  %7990 = vmatprep.subr.msk.bf16.mxu0 %vm9709_vm2, %v7988_v32  ;;  %v2063_v34 = vsel %vm2059_vm1, %v1996_v44, 0.0 }
 0x221   : > { %12344 = vst [vmem:[#allocation51_spill] sm:$0xff] %v10182_v57  ;;  %v10194_v58 = vpop.f32.mrb[77].mxu1  ;;  %v2111_v57 = vsel %vm2059_vm1, %v9921_v54, 0.0  ;;  %v1998_v54 = vmul.f32 %v9723_v14, %v9723_v14  ;;  %2064 = vadd.xlane.f32.xlu0 %v2063_v34  ;;  %v10231_v14 = vld [vmem:[%s9692_s25 + $0x188] sm:$0xff]  ;;  %v2117_v34 = vsel %vm2059_vm1, %v9973_v5, 0.0  ;;  %v10253_v5 = vld [vmem:[%s9692_s25 + $0x190] sm:$0xff] }
 0x222   : > { %12345 = vst [vmem:[#allocation52_spill] sm:$0xff] %v10194_v58  ;;  %2112 = vadd.xlane.f32.xlu1 %v2111_v57  ;;  %v2000_v58 = vmul.f32 %v9749_v33, %v9749_v33  ;;  %v10256_v33 = vld [vmem:[%s9692_s25 + $0x198] sm:$0xff] }
 0x223   : > { %v2069_v57 = vsel %vm2059_vm1, %v1998_v54, 0.0 }
 0x224   : > { %v10207_v47 = vpop.f32.mrb[78].mxu1 }
 0x225   : > { %12346 = vst [vmem:[#allocation53_spill] sm:$0xff] %v10207_v47  ;;  %v10211_v8 = vpop.f32.mrb[79].mxu1  ;;  %v8048_v47 = vpack.c.bf16 %v1996_v44, %v1995_v36  ;;  %v2120_v36 = vsel %vm2059_vm1, %v10021_v52, 0.0  ;;  %v8006_v44 = vpack.c.bf16 %v10256_v33, %v10253_v5  ;;  %v2001_v52 = vmul.f32 %v9772_v46, %v9772_v46 }
 0x226   : > { %12347 = vst [vmem:[#allocation54_spill] sm:$0xff] %v10211_v8  ;;  %7945 = vmatpush3.bf16.xpose.msk.msra.mxu1 %vm9709_vm2, %v7940_v48  ;;  %v2066_v8 = vsel %vm2059_vm1, %v1997_v12, 0.0  ;;  %2070 = vadd.xlane.f32.xlu1 %v2069_v57  ;;  %v8000_v48 = vpack.c.bf16 %v10231_v14, %v10228_v23  ;;  %v2002_v57 = vmul.f32 %v9775_v38, %v9775_v38  ;;  %v10283_v38 = vld [vmem:[%s9692_s25 + $0x1a0] sm:$0xff] }
 0x227   : > { %7993 = vmatpush3.bf16.xpose.msk.msra.mxu0 %vm9709_vm2, %v7988_v32  ;;  %7948 = vmatprep.subr.msk.bf16.mxu1 %vm9709_vm2, %v7946_v25  ;;  %v2114_v32 = vsel %vm2059_vm1, %v9969_v18, 0.0  ;;  %v2075_v18 = vsel %vm2059_vm1, %v2000_v58, 0.0 }
 0x228   : > { %7996 = vmatprep.subr.msk.bf16.mxu0 %vm9709_vm2, %v7994_v15  ;;  %2067 = vadd.xlane.f32.xlu0 %v2066_v8  ;;  %v1999_v8 = vmul.f32 %v9746_v4, %v9746_v4  ;;  %v2123_v4 = vsel %vm2059_vm1, %v10025_v35, 0.0  ;;  %v10286_v35 = vld [vmem:[%s9692_s25 + $0x1a8] sm:$0xff] }
 0x229   : > { %v8012_v46 = vpack.c.bf16 %v10286_v35, %v10283_v38 }
 0x22a   : > { %2118 = vadd.xlane.f32.xlu1 %v2117_v34  ;;  %v10362_v34 = vld [vmem:[%s9692_s25 + $0x1c0] sm:$0xff] }
 0x22c   : > { %2115 = vadd.xlane.f32.xlu0 %v2114_v32  ;;  %v10365_v32 = vld [vmem:[%s9692_s25 + $0x1c8] sm:$0xff] }
 0x22e   : > { %7951 = vmatpush3.bf16.xpose.msk.msra.mxu1 %vm9709_vm2, %v7946_v25  ;;  %2076 = vadd.xlane.f32.xlu1 %v2075_v18  ;;  %v2072_v25 = vsel %vm2059_vm1, %v1999_v8, 0.0  ;;  %v8024_v18 = vpack.c.bf16 %v10365_v32, %v10362_v34 }
 0x22f   : > { %7999 = vmatpush3.bf16.xpose.msk.msra.mxu0 %vm9709_vm2, %v7994_v15  ;;  %8002 = vmatprep.subr.msk.bf16.mxu1 %vm9709_vm2, %v8000_v48  ;;  %v8054_v15 = vpack.c.bf16 %v1998_v54, %v1997_v12  ;;  %v8060_v12 = vpack.c.bf16 %v2000_v58, %v1999_v8  ;;  %v10323_v58 = vld [vmem:[%s9692_s25 + $0x1b8] sm:$0xff]  ;;  %v10350_v54 = vmul.f32 %v10055_v51, %v10055_v51 }
 0x230   : > { %8050 = vmatprep.subr.msk.bf16.mxu0 %vm9709_vm2, %v8048_v47  ;;  %2073 = vadd.xlane.f32.xlu0 %v2072_v25 }
 0x232   : > { %2124 = vadd.xlane.f32.xlu1 %v2123_v4 }
 0x234   : > { %2121 = vadd.xlane.f32.xlu0 %v2120_v36  ;;  %v10393_v36 = vmul.f32 %v10052_v56, %v10052_v56 }
 0x235   : > { %7129 = vmatmul.mubr.msk.f32.vlgmr.msra.gmra.mrb[112].mxu1 %vm2059_vm1, %v9879_v1  ;;  %v2081_v1 = vsel %vm2059_vm1, %v2002_v57, 0.0 }
 0x236   : > { %7185 = vmatmul.mubr.msk.f32.vlgmr.msra.gmra.mrb[160].mxu0 %vm2059_vm1, %v9887_v49  ;;  %8005 = vmatpush3.bf16.xpose.msk.msra.mxu1 %vm9709_vm2, %v8000_v48  ;;  %v2135_v48 = vsel %vm2059_vm1, %v10350_v54, 0.0 }
 0x237   : > { %8053 = vmatpush3.bf16.xpose.msk.msra.mxu0 %vm9709_vm2, %v8048_v47  ;;  %8008 = vmatprep.subr.msk.bf16.mxu1 %vm9709_vm2, %v8006_v44  ;;  %v2078_v47 = vsel %vm2059_vm1, %v2001_v52, 0.0 }
 0x238   : > { %8056 = vmatprep.subr.msk.bf16.mxu0 %vm9709_vm2, %v8054_v15  ;;  %7187 = vmatprep.mubr.msk.f32.mxu0 %vm2059_vm1, %v9906_v30 }
 0x239   : > { %7131 = vmatprep.mubr.msk.f32.mxu1 %vm2059_vm1, %v9900_v29  ;;  %2082 = vadd.xlane.f32.xlu1 %v2081_v1  ;;  %v2129_v29 = vsel %vm2059_vm1, %v10081_v42, 0.0  ;;  %v10320_v42 = vld [vmem:[%s9692_s25 + $0x1b0] sm:$0xff] }
 0x23a   : > { %7188 = vmatmul.mubr.msk.f32.gmra.mrb[162].mxu0 %vm2059_vm1, %v9909_v16  ;;  %7132 = vmatmul.mubr.msk.f32.gmra.mrb[114].mxu1 %vm2059_vm1, %v9903_v62  ;;  %v2004_v62 = vmul.f32 %v9801_v45, %v9801_v45 }
 0x23b   : > { %7190 = vmatprep.mubr.msk.f32.mxu0 %vm2059_vm1, %v9952_v11  ;;  %7134 = vmatprep.mubr.msk.f32.mxu1 %vm2059_vm1, %v9946_v27  ;;  %v2126_v27 = vsel %vm2059_vm1, %v10077_v7, 0.0  ;;  %v8018_v7 = vpack.c.bf16 %v10323_v58, %v10320_v42 }
 0x23c   : > { %2079 = vadd.xlane.f32.xlu0 %v2078_v47  ;;  %v2087_v45 = vsel %vm2059_vm1, %v2004_v62, 0.0 }
 0x23d   : > { %2130 = vadd.xlane.f32.xlu1 %v2129_v29  ;;  %v10436_v29 = vmul.f32 %v10113_v41, %v10113_v41 }
 0x23e   : > { %8011 = vmatpush3.bf16.xpose.msk.msra.mxu1 %vm9709_vm2, %v8006_v44  ;;  %7191 = vmatmul.mubr.msk.f32.gmra.mrb[164].mxu0 %vm2059_vm1, %v9955_v60  ;;  %v2006_v44 = vmul.f32 %v9825_v26, %v9825_v26  ;;  %v10415_v26 = vld [vmem:[%s9692_s25 + $0x1d8] sm:$0xff] }
 0x23f   : > { %8059 = vmatpush3.bf16.xpose.msk.msra.mxu0 %vm9709_vm2, %v8054_v15  ;;  %8014 = vmatprep.subr.msk.bf16.mxu1 %vm9709_vm2, %v8012_v46  ;;  %v2132_v15 = vsel %vm2059_vm1, %v10393_v36, 0.0 }
 0x240   : > { %8062 = vmatprep.subr.msk.bf16.mxu0 %vm9709_vm2, %v8060_v12  ;;  %7135 = vmatmul.mubr.msk.f32.gmra.mrb[116].mxu1 %vm2059_vm1, %v9949_v61  ;;  %v8066_v61 = vpack.c.bf16 %v2002_v57, %v2001_v52  ;;  %v10412_v57 = vld [vmem:[%s9692_s25 + $0x1d0] sm:$0xff]  ;;  %v2005_v52 = vmul.f32 %v9822_v50, %v9822_v50  ;;  %v2093_v1 = vsel %vm2059_vm1, %v2006_v44, 0.0 }
 0x241   : > { %7193 = vmatprep.mubr.msk.f32.mxu0 %vm2059_vm1, %v10004_v31  ;;  %7137 = vmatprep.mubr.msk.f32.mxu1 %vm2059_vm1, %v9998_v40  ;;  %v2003_v40 = vmul.f32 %v9798_v43, %v9798_v43  ;;  %v8030_v50 = vpack.c.bf16 %v10415_v26, %v10412_v57 }
 0x242   : > { %7194 = vmatmul.mubr.msk.f32.gmra.mrb[166].mxu0 %vm2059_vm1, %v10007_v13  ;;  %2127 = vadd.xlane.f32.xlu0 %v2126_v27  ;;  %v8078_v27 = vpack.c.bf16 %v2006_v44, %v2005_v52 }
 0x243   : > { %7196 = vmatprep.mubr.msk.f32.mxu0 %vm2059_vm1, %v10060_v3  ;;  %2088 = vadd.xlane.f32.xlu1 %v2087_v45  ;;  %v2084_v43 = vsel %vm2059_vm1, %v2003_v40, 0.0  ;;  %v8072_v25 = vpack.c.bf16 %v2004_v62, %v2003_v40 }
 0x244   : > { %7138 = vmatmul.mubr.msk.f32.gmra.mrb[118].mxu1 %vm2059_vm1, %v10001_v39 }
 0x245   : > { %7140 = vmatprep.mubr.msk.f32.mxu1 %vm2059_vm1, %v10052_v56 }
 0x246   : > { %8017 = vmatpush3.bf16.xpose.msk.msra.mxu1 %vm9709_vm2, %v8012_v46  ;;  %7197 = vmatmul.mubr.msk.f32.gmra.mrb[168].mxu0 %vm2059_vm1, %v10063_v55  ;;  %v12269_v46 = vmov 1.0  }
 0x247   : > { %8065 = vmatpush3.bf16.xpose.msk.msra.mxu0 %vm9709_vm2, %v8060_v12  ;;  %8020 = vmatprep.subr.msk.bf16.mxu1 %vm9709_vm2, %v8018_v7  ;;  %v2090_v12 = vsel %vm2059_vm1, %v2005_v52, 0.0 }
 0x248   : > { %v10357_v39 = vpop.f32.mrb[80].mxu1  ;;  %8068 = vmatprep.subr.msk.bf16.mxu0 %vm9709_vm2, %v8066_v61  ;;  %7141 = vmatmul.mubr.msk.f32.gmra.mrb[120].mxu1 %vm2059_vm1, %v10055_v51 }
 0x249   : > { %12348 = vst [vmem:[#allocation55_spill] sm:$0xff] %v10357_v39  ;;  %v10371_v8 = vpop.f32.mrb[81].mxu1  ;;  %7199 = vmatprep.mubr.msk.f32.mxu0 %vm2059_vm1, %v10118_v20  ;;  %7143 = vmatprep.mubr.msk.f32.mxu1 %vm2059_vm1, %v10110_v2 }
 0x24a   : > { %12349 = vst [vmem:[#allocation56_spill] sm:$0xff] %v10371_v8  ;;  %7200 = vmatmul.mubr.msk.f32.gmra.mrb[170].mxu0 %vm2059_vm1, %v10121_v24  ;;  %2085 = vadd.xlane.f32.xlu0 %v2084_v43  ;;  %v10468_v43 = vld [vmem:[%s9692_s25 + $0x1e0] sm:$0xff] }
 0x24b   : > { %7202 = vmatprep.mubr.msk.f32.mxu0 %vm2059_vm1, %v10158_v17  ;;  %2136 = vadd.xlane.f32.xlu1 %v2135_v48  ;;  %v10471_v48 = vld [vmem:[%s9692_s25 + $0x1e8] sm:$0xff] }
 0x24c   : > { %v10383_v51 = vpop.f32.mrb[82].mxu1  ;;  %7144 = vmatmul.mubr.msk.f32.gmra.mrb[122].mxu1 %vm2059_vm1, %v10113_v41  ;;  %v10449_v41 = vmul.f32 %v10110_v2, %v10110_v2  ;;  %v8036_v44 = vpack.c.bf16 %v10471_v48, %v10468_v43 }
 0x24d   : > { %12350 = vst [vmem:[#allocation57_spill] sm:$0xff] %v10383_v51  ;;  %v10387_v4 = vpop.f32.mrb[83].mxu1  ;;  %7146 = vmatprep.mubr.msk.f32.mxu1 %vm2059_vm1, %v10150_v53 }
 0x24e   : > { %12351 = vst [vmem:[#allocation58_spill] sm:$0xff] %v10387_v4  ;;  %8023 = vmatpush3.bf16.xpose.msk.msra.mxu1 %vm9709_vm2, %v8018_v7  ;;  %7203 = vmatmul.mubr.msk.f32.gmra.mrb[172].mxu0 %vm2059_vm1, %v10161_v10  ;;  %v2141_v7 = vsel %vm2059_vm1, %v10436_v29, 0.0  ;;  %v2138_v2 = vsel %vm2059_vm1, %v10449_v41, 0.0 }
 0x24f   : > { %8071 = vmatpush3.bf16.xpose.msk.msra.mxu0 %vm9709_vm2, %v8066_v61  ;;  %8026 = vmatprep.subr.msk.bf16.mxu1 %vm9709_vm2, %v8024_v18  ;;  %v2008_v61 = vmul.f32 %v9845_v22, %v9845_v22 }
 0x250   : > { %v10407_v56 = vpop.f32.mrb[84].mxu1  ;;  %8074 = vmatprep.subr.msk.bf16.mxu0 %vm9709_vm2, %v8072_v25  ;;  %7147 = vmatmul.mubr.msk.f32.gmra.mrb[124].mxu1 %vm2059_vm1, %v10153_v9 }
 0x251   : > { %12352 = vst [vmem:[#allocation59_spill] sm:$0xff] %v10407_v56  ;;  %v10422_v47 = vpop.f32.mrb[85].mxu1  ;;  %7205 = vmatprep.mubr.msk.f32.mxu0 %vm2059_vm1, %v10197_v21  ;;  %7149 = vmatprep.mubr.msk.f32.mxu1 %vm2059_vm1, %v10187_v28  ;;  %v2099_v22 = vsel %vm2059_vm1, %v2008_v61, 0.0 }
 0x252   : > { %12353 = vst [vmem:[#allocation60_spill] sm:$0xff] %v10422_v47  ;;  %7206 = vmatmul.mubr.msk.f32.gmra.mrb[174].mxu0 %vm2059_vm1, %v10200_v0  ;;  %2133 = vadd.xlane.f32.xlu0 %v2132_v15  ;;  %v10482_v15 = vmul.f32 %v10153_v9, %v10153_v9  ;;  %v2010_v9 = vmul.f32 %v9863_v6, %v9863_v6 }
 0x253   : > { %7296 = vmatprep.mubr.msk.f32.mxu0 %vm2059_vm1, %v12269_v46  ;;  %2094 = vadd.xlane.f32.xlu1 %v2093_v1  ;;  %v10524_v46 = vmul.f32 %v10190_v19, %v10190_v19 }
 0x254   : > { %v10439_v62 = vpop.f32.mrb[86].mxu1  ;;  %7150 = vmatmul.mubr.msk.f32.gmra.mrb[126].mxu1 %vm2059_vm1, %v10190_v19  ;;  %v2105_v6 = vsel %vm2059_vm1, %v2010_v9, 0.0  ;;  %v2028_v19 = vmul.f32 %v9887_v49, %v9887_v49 }
 0x255   : > { %12354 = vst [vmem:[#allocation61_spill] sm:$0xff] %v10439_v62  ;;  %v10443_v45 = vpop.f32.mrb[87].mxu1  ;;  %7240 = vmatprep.mubr.msk.f32.mxu1 %vm2059_vm1, %v10228_v23 }
 0x256   : > { %12355 = vst [vmem:[#allocation62_spill] sm:$0xff] %v10443_v45  ;;  %8029 = vmatpush3.bf16.xpose.msk.msra.mxu1 %vm9709_vm2, %v8024_v18  ;;  %2091 = vadd.xlane.f32.xlu0 %v2090_v12  ;;  %v2007_v18 = vmul.f32 %v9842_v63, %v9842_v63 }
 0x257   : > { %8077 = vmatpush3.bf16.xpose.msk.msra.mxu0 %vm9709_vm2, %v8072_v25  ;;  %8032 = vmatprep.subr.msk.bf16.mxu1 %vm9709_vm2, %v8030_v50 }
 0x258   : > { %v10463_v40 = vpop.f32.mrb[88].mxu1  ;;  %8080 = vmatprep.subr.msk.bf16.mxu0 %vm9709_vm2, %v8078_v27  ;;  %2142 = vadd.xlane.f32.xlu1 %v2141_v7  ;;  %v2096_v52 = vsel %vm2059_vm1, %v2007_v18, 0.0  ;;  %v8084_v63 = vpack.c.bf16 %v2008_v61, %v2007_v18  ;;  %v10491_v7 = vmul.f32 %v10150_v53, %v10150_v53  ;;  %v10510_v18 = vld [vmem:[%s9692_s25 + $0x1f0] sm:$0xff] }
 0x259   : > { %12356 = vst [vmem:[#allocation63_spill] sm:$0xff] %v10463_v40  ;;  %v10475_v25 = vpop.f32.mrb[89].mxu1 }
 0x25a   : > { %12357 = vst [vmem:[#allocation64_spill] sm:$0xff] %v10475_v25  ;;  %2139 = vadd.xlane.f32.xlu0 %v2138_v2  ;;  %v2147_v2 = vsel %vm2059_vm1, %v10482_v15, 0.0  ;;  %v2144_v53 = vsel %vm2059_vm1, %v10491_v7, 0.0 }
 0x25c   : > { %v10485_v1 = vpop.f32.mrb[90].mxu1  ;;  %2100 = vadd.xlane.f32.xlu1 %v2099_v22 }
 0x25d   : > { %12358 = vst [vmem:[#allocation65_spill] sm:$0xff] %v10485_v1  ;;  %v10487_v12 = vpop.f32.mrb[91].mxu1 }
 0x25e   : > { %12359 = vst [vmem:[#allocation66_spill] sm:$0xff] %v10487_v12  ;;  %8035 = vmatpush3.bf16.xpose.msk.msra.mxu1 %vm9709_vm2, %v8030_v50  ;;  %2097 = vadd.xlane.f32.xlu0 %v2096_v52  ;;  %v10513_v50 = vld [vmem:[%s9692_s25 + $0x1f8] sm:$0xff] }
 0x25f   : > { %8083 = vmatpush3.bf16.xpose.msk.msra.mxu0 %vm9709_vm2, %v8078_v27  ;;  %8038 = vmatprep.subr.msk.bf16.mxu1 %vm9709_vm2, %v8036_v44  ;;  %v2009_v27 = vmul.f32 %v9860_v59, %v9860_v59  ;;  %v8042_v52 = vpack.c.bf16 %v10513_v50, %v10510_v18 }
 0x260   : > { %v10505_v61 = vpop.f32.mrb[92].mxu1  ;;  %8086 = vmatprep.subr.msk.bf16.mxu0 %vm9709_vm2, %v8084_v63  ;;  %2148 = vadd.xlane.f32.xlu1 %v2147_v2  ;;  %v10533_v2 = vmul.f32 %v10187_v28, %v10187_v28 }
 0x261   : > { %12360 = vst [vmem:[#allocation67_spill] sm:$0xff] %v10505_v61  ;;  %v10517_v22 = vpop.f32.mrb[93].mxu1  ;;  %v2102_v61 = vsel %vm2059_vm1, %v2009_v27, 0.0  ;;  %v8090_v1 = vpack.c.bf16 %v2010_v9, %v2009_v27  ;;  %v12364_v9 = vld [vmem:[#allocation34_spill] sm:$0xff] }
 0x262   : > { %12361 = vst [vmem:[#allocation68_spill] sm:$0xff] %v10517_v22  ;;  %2145 = vadd.xlane.f32.xlu0 %v2144_v53  ;;  %v2153_v53 = vsel %vm2059_vm1, %v10524_v46, 0.0  ;;  %v2150_v28 = vsel %vm2059_vm1, %v10533_v2, 0.0  ;;  %v2027_v27 = vmul.f32 %v12364_v9, %v12364_v9  ;;  %v12366_v9 = vmov 1.0  }
 0x264   : > { %v10527_v12 = vpop.f32.mrb[94].mxu1  ;;  %2106 = vadd.xlane.f32.xlu1 %v2105_v6  ;;  %v8144_v49 = vpack.c.bf16 %v2028_v19, %v2027_v27  ;;  %v10559_v6 = vmul.f32 %v10228_v23, %v10228_v23 }
 0x265   : > { %12362 = vst [vmem:[#allocation69_spill] sm:$0xff] %v10527_v12  ;;  %v10529_v59 = vpop.f32.mrb[95].mxu1 }
 0x266   : > { %12363 = vst [vmem:[#allocation70_spill] sm:$0xff] %v10529_v59  ;;  %8041 = vmatpush3.bf16.xpose.msk.msra.mxu1 %vm9709_vm2, %v8036_v44  ;;  %2103 = vadd.xlane.f32.xlu0 %v2102_v61  ;;  %v2159_v44 = vsel %vm2059_vm1, %v2028_v19, 0.0  ;;  %v2156_v61 = vsel %vm2059_vm1, %v2027_v27, 0.0  ;;  %v2030_v19 = vmul.f32 %v9909_v16, %v9909_v16  ;;  %v2204_v23 = vsel %vm2059_vm1, %v10559_v6, 0.0 }
 0x267   : > { %8089 = vmatpush3.bf16.xpose.msk.msra.mxu0 %vm9709_vm2, %v8084_v63  ;;  %8044 = vmatprep.subr.msk.bf16.mxu1 %vm9709_vm2, %v8042_v52  ;;  %v10554_v63 = vmul.f32 %v10231_v14, %v10231_v14  ;;  %v2032_v27 = vmul.f32 %v9955_v60, %v9955_v60 }
 0x268   : > { %8092 = vmatprep.subr.msk.bf16.mxu0 %vm9709_vm2, %v8090_v1  ;;  %2154 = vadd.xlane.f32.xlu1 %v2153_v53  ;;  %v12365_v53 = vld [vmem:[#allocation35_spill] sm:$0xff] }
 0x269   : > { %v2207_v59 = vsel %vm2059_vm1, %v10554_v63, 0.0 }
 0x26a   : > { %2151 = vadd.xlane.f32.xlu0 %v2150_v28  ;;  %v2165_v28 = vsel %vm2059_vm1, %v2030_v19, 0.0 }
 0x26c   : > { %2160 = vadd.xlane.f32.xlu1 %v2159_v44  ;;  %v10606_v44 = vmul.f32 %v10253_v5, %v10253_v5 }
 0x26e   : > { %8047 = vmatpush3.bf16.xpose.msk.msra.mxu1 %vm9709_vm2, %v8042_v52  ;;  %2157 = vadd.xlane.f32.xlu0 %v2156_v61  ;;  %v2029_v52 = vmul.f32 %v9906_v30, %v9906_v30  ;;  %v10593_v30 = vmul.f32 %v10256_v33, %v10256_v33 }
 0x26f   : > { %8095 = vmatpush3.bf16.xpose.msk.msra.mxu0 %vm9709_vm2, %v8090_v1  ;;  %8098 = vmatprep.subr.msk.bf16.mxu1 %vm9709_vm2, %v12365_v53 }
 0x270   : > { %8146 = vmatprep.subr.msk.bf16.mxu0 %vm9709_vm2, %v8144_v49  ;;  %2208 = vadd.xlane.f32.xlu1 %v2207_v59  ;;  %v8150_v1 = vpack.c.bf16 %v2030_v19, %v2029_v52  ;;  %v2162_v16 = vsel %vm2059_vm1, %v2029_v52, 0.0  ;;  %v2031_v59 = vmul.f32 %v9952_v11, %v9952_v11  ;;  %v2213_v61 = vsel %vm2059_vm1, %v10593_v30, 0.0 }
 0x271   : > { %v2210_v11 = vsel %vm2059_vm1, %v10606_v44, 0.0  ;;  %v10643_v19 = vmul.f32 %v10286_v35, %v10286_v35  ;;  %v10658_v52 = vmul.f32 %v10283_v38, %v10283_v38 }
 0x272   : > { %2205 = vadd.xlane.f32.xlu0 %v2204_v23  ;;  %v8156_v60 = vpack.c.bf16 %v2032_v27, %v2031_v59  ;;  %v2168_v23 = vsel %vm2059_vm1, %v2031_v59, 0.0 }
 0x274   : > { %2166 = vadd.xlane.f32.xlu1 %v2165_v28  ;;  %v12370_v28 = vld [vmem:[#allocation42_spill] sm:$0xff] }
 0x275   : > { %7241 = vmatmul.mubr.msk.f32.vlgmr.msra.gmra.mrb[128].mxu1 %vm2059_vm1, %v10231_v14  ;;  %v12367_v14 = vld [vmem:[#allocation36_spill] sm:$0xff] }
 0x276   : > { %7297 = vmatmul.mubr.msk.f32.vlgmr.msra.gmra.mrb[176].mxu0 %vm2059_vm1, %v12366_v9  ;;  %8101 = vmatpush3.bf16.xpose.msk.msra.mxu1 %vm9709_vm2, %v12365_v53  ;;  %v2034_v53 = vmul.f32 %v10007_v13, %v10007_v13 }
 0x277   : > { %8149 = vmatpush3.bf16.xpose.msk.msra.mxu0 %vm9709_vm2, %v8144_v49  ;;  %7299 = vmatprep.mubr.msk.f32.mxu0 %vm2059_vm1, %v12366_v9  ;;  %v2033_v49 = vmul.f32 %v10004_v31, %v10004_v31  ;;  %v2219_v31 = vsel %vm2059_vm1, %v10643_v19, 0.0 }
 0x278   : > { %8104 = vmatprep.subr.msk.bf16.mxu1 %vm9709_vm2, %v12367_v14  ;;  %8152 = vmatprep.subr.msk.bf16.mxu0 %vm9709_vm2, %v8150_v1  ;;  %v2177_v59 = vsel %vm2059_vm1, %v2034_v53, 0.0 }
 0x279   : > { %7243 = vmatprep.mubr.msk.f32.mxu1 %vm2059_vm1, %v10253_v5  ;;  %2163 = vadd.xlane.f32.xlu0 %v2162_v16  ;;  %v2171_v5 = vsel %vm2059_vm1, %v2032_v27, 0.0  ;;  %v8162_v13 = vpack.c.bf16 %v2034_v53, %v2033_v49  ;;  %v2036_v16 = vmul.f32 %v10063_v55, %v10063_v55  ;;  %v2174_v27 = vsel %vm2059_vm1, %v2033_v49, 0.0 }
 0x27a   : > { %7300 = vmatmul.mubr.msk.f32.gmra.mrb[178].mxu0 %vm2059_vm1, %v12366_v9  ;;  %7244 = vmatmul.mubr.msk.f32.gmra.mrb[130].mxu1 %vm2059_vm1, %v10256_v33  ;;  %v12368_v33 = vld [vmem:[#allocation37_spill] sm:$0xff]  ;;  %v8120_v55 = vpack.c.bf16 %v10350_v54, %v10393_v36  ;;  %v2038_v36 = vmul.f32 %v10121_v24, %v10121_v24  ;;  %v8126_v24 = vpack.c.bf16 %v10436_v29, %v10449_v41 }
 0x27b   : > { %7302 = vmatprep.mubr.msk.f32.mxu0 %vm2059_vm1, %v12366_v9  ;;  %7246 = vmatprep.mubr.msk.f32.mxu1 %vm2059_vm1, %v10283_v38  ;;  %v2039_v41 = vmul.f32 %v10158_v17, %v10158_v17 }
 0x27c   : > { %2214 = vadd.xlane.f32.xlu1 %v2213_v61  ;;  %v2189_v17 = vsel %vm2059_vm1, %v2038_v36, 0.0 }
 0x27d   : > { %2211 = vadd.xlane.f32.xlu0 %v2210_v11  ;;  %v10704_v11 = vmul.f32 %v10323_v58, %v10323_v58 }
 0x27e   : > { %7303 = vmatmul.mubr.msk.f32.gmra.mrb[180].mxu0 %vm2059_vm1, %v12366_v9  ;;  %8107 = vmatpush3.bf16.xpose.msk.msra.mxu1 %vm9709_vm2, %v12367_v14 }
 0x27f   : > { %8155 = vmatpush3.bf16.xpose.msk.msra.mxu0 %vm9709_vm2, %v8150_v1  ;;  %7305 = vmatprep.mubr.msk.f32.mxu0 %vm2059_vm1, %v12366_v9  ;;  %v2035_v1 = vmul.f32 %v10060_v3, %v10060_v3  ;;  %v2225_v54 = vsel %vm2059_vm1, %v10704_v11, 0.0 }
 0x280   : > { %8110 = vmatprep.subr.msk.bf16.mxu1 %vm9709_vm2, %v12368_v33  ;;  %8158 = vmatprep.subr.msk.bf16.mxu0 %vm9709_vm2, %v8156_v60 }
 0x281   : > { %7247 = vmatmul.mubr.msk.f32.gmra.mrb[132].mxu1 %vm2059_vm1, %v10286_v35  ;;  %2172 = vadd.xlane.f32.xlu1 %v2171_v5  ;;  %v2216_v35 = vsel %vm2059_vm1, %v10658_v52, 0.0  ;;  %v8168_v61 = vpack.c.bf16 %v2036_v16, %v2035_v1  ;;  %v10715_v5 = vmul.f32 %v10320_v42, %v10320_v42 }
 0x282   : > { %7306 = vmatmul.mubr.msk.f32.gmra.mrb[182].mxu0 %vm2059_vm1, %v12366_v9  ;;  %7249 = vmatprep.mubr.msk.f32.mxu1 %vm2059_vm1, %v10320_v42  ;;  %v2037_v42 = vmul.f32 %v10118_v20, %v10118_v20  ;;  %v2183_v20 = vsel %vm2059_vm1, %v2036_v16, 0.0 }
 0x283   : > { %7308 = vmatprep.mubr.msk.f32.mxu0 %vm2059_vm1, %v12366_v9  ;;  %2169 = vadd.xlane.f32.xlu0 %v2168_v23 }
 0x284   : > { %v8174_v53 = vpack.c.bf16 %v2038_v36, %v2037_v42 }
 0x285   : > { %7250 = vmatmul.mubr.msk.f32.gmra.mrb[134].mxu1 %vm2059_vm1, %v10323_v58  ;;  %2220 = vadd.xlane.f32.xlu1 %v2219_v31  ;;  %v10752_v31 = vmul.f32 %v10365_v32, %v10365_v32 }
 0x286   : > { %7309 = vmatmul.mubr.msk.f32.gmra.mrb[184].mxu0 %vm2059_vm1, %v12366_v9  ;;  %8113 = vmatpush3.bf16.xpose.msk.msra.mxu1 %vm9709_vm2, %v12368_v33  ;;  %v2222_v33 = vsel %vm2059_vm1, %v10715_v5, 0.0 }
 0x287   : > { %8161 = vmatpush3.bf16.xpose.msk.msra.mxu0 %vm9709_vm2, %v8156_v60  ;;  %7311 = vmatprep.mubr.msk.f32.mxu0 %vm2059_vm1, %v12366_v9  ;;  %v2231_v29 = vsel %vm2059_vm1, %v10752_v31, 0.0 }
 0x288   : > { %v10673_v38 = vpop.f32.mrb[128].mxu0  ;;  %8116 = vmatprep.subr.msk.bf16.mxu1 %vm9709_vm2, %v12370_v28  ;;  %8164 = vmatprep.subr.msk.bf16.mxu0 %vm9709_vm2, %v8162_v13 }
 0x289   : > { %12369 = vst [vmem:[#allocation34_spill] sm:$0xff] %v10673_v38  ;;  %v10684_v14 = vpop.f32.mrb[129].mxu0  ;;  %7252 = vmatprep.mubr.msk.f32.mxu1 %vm2059_vm1, %v10362_v34  ;;  %2217 = vadd.xlane.f32.xlu0 %v2216_v35  ;;  %v2180_v35 = vsel %vm2059_vm1, %v2035_v1, 0.0 }
 0x28a   : > { %12371 = vst [vmem:[#allocation35_spill] sm:$0xff] %v10684_v14  ;;  %7312 = vmatmul.mubr.msk.f32.gmra.mrb[186].mxu0 %vm2059_vm1, %v12366_v9  ;;  %7253 = vmatmul.mubr.msk.f32.gmra.mrb[136].mxu1 %vm2059_vm1, %v10365_v32  ;;  %v10771_v32 = vmul.f32 %v10362_v34, %v10362_v34 }
 0x28b   : > { %7314 = vmatprep.mubr.msk.f32.mxu0 %vm2059_vm1, %v12366_v9  ;;  %7255 = vmatprep.mubr.msk.f32.mxu1 %vm2059_vm1, %v10412_v57 }
 0x28c   : > { %v10698_v3 = vpop.f32.mrb[130].mxu0  ;;  %2178 = vadd.xlane.f32.xlu1 %v2177_v59  ;;  %v2228_v34 = vsel %vm2059_vm1, %v10771_v32, 0.0 }
 0x28d   : > { %12372 = vst [vmem:[#allocation36_spill] sm:$0xff] %v10698_v3  ;;  %v10706_v60 = vpop.f32.mrb[131].mxu0  ;;  %2175 = vadd.xlane.f32.xlu0 %v2174_v27  ;;  %v10794_v27 = vmul.f32 %v10415_v26, %v10415_v26 }
 0x28e   : > { %12373 = vst [vmem:[#allocation37_spill] sm:$0xff] %v10706_v60  ;;  %7315 = vmatmul.mubr.msk.f32.gmra.mrb[188].mxu0 %vm2059_vm1, %v12366_v9  ;;  %8119 = vmatpush3.bf16.xpose.msk.msra.mxu1 %vm9709_vm2, %v12370_v28  ;;  %v2040_v28 = vmul.f32 %v10161_v10, %v10161_v10  ;;  %v8132_v10 = vpack.c.bf16 %v10482_v15, %v10491_v7 }
 0x28f   : > { %8167 = vmatpush3.bf16.xpose.msk.msra.mxu0 %vm9709_vm2, %v8162_v13  ;;  %7317 = vmatprep.mubr.msk.f32.mxu0 %vm2059_vm1, %v12366_v9  ;;  %v2237_v36 = vsel %vm2059_vm1, %v10794_v27, 0.0  ;;  %v2041_v15 = vmul.f32 %v10197_v21, %v10197_v21  ;;  %v2042_v7 = vmul.f32 %v10200_v0, %v10200_v0  ;;  %v10830_v21 = vmul.f32 %v10471_v48, %v10471_v48 }
 0x290   : > { %v10723_v58 = vpop.f32.mrb[132].mxu0  ;;  %8122 = vmatprep.subr.msk.bf16.mxu1 %vm9709_vm2, %v8120_v55  ;;  %8170 = vmatprep.subr.msk.bf16.mxu0 %vm9709_vm2, %v8168_v61  ;;  %v8180_v59 = vpack.c.bf16 %v2040_v28, %v2039_v41 }
 0x291   : > { %12374 = vst [vmem:[#allocation42_spill] sm:$0xff] %v10723_v58  ;;  %v10735_v49 = vpop.f32.mrb[133].mxu0  ;;  %7256 = vmatmul.mubr.msk.f32.gmra.mrb[138].mxu1 %vm2059_vm1, %v10415_v26  ;;  %2226 = vadd.xlane.f32.xlu1 %v2225_v54  ;;  %v2186_v54 = vsel %vm2059_vm1, %v2037_v42, 0.0  ;;  %v10811_v26 = vmul.f32 %v10412_v57, %v10412_v57  ;;  %v2195_v57 = vsel %vm2059_vm1, %v2040_v28, 0.0  ;;  %v2243_v28 = vsel %vm2059_vm1, %v10830_v21, 0.0 }
 0x292   : > { %12375 = vst [vmem:[#allocation71_spill] sm:$0xff] %v10735_v49  ;;  %7318 = vmatmul.mubr.msk.f32.gmra.mrb[190].mxu0 %vm2059_vm1, %v12366_v9  ;;  %7258 = vmatprep.mubr.msk.f32.mxu1 %vm2059_vm1, %v10468_v43 }
 0x293   : > { %7408 = vmatprep.mubr.msk.f32.mxu0 %vm2059_vm1, %v12366_v9  ;;  %2223 = vadd.xlane.f32.xlu0 %v2222_v33 }
 0x294   : > { %v10748_v23 = vpop.f32.mrb[134].mxu0 }
 0x295   : > { %12376 = vst [vmem:[#allocation72_spill] sm:$0xff] %v10748_v23  ;;  %v10754_v13 = vpop.f32.mrb[135].mxu0  ;;  %7259 = vmatmul.mubr.msk.f32.gmra.mrb[140].mxu1 %vm2059_vm1, %v10471_v48  ;;  %2184 = vadd.xlane.f32.xlu1 %v2183_v20  ;;  %v2234_v20 = vsel %vm2059_vm1, %v10811_v26, 0.0 }
 0x296   : > { %12377 = vst [vmem:[#allocation73_spill] sm:$0xff] %v10754_v13  ;;  %8125 = vmatpush3.bf16.xpose.msk.msra.mxu1 %vm9709_vm2, %v8120_v55  ;;  %7261 = vmatprep.mubr.msk.f32.mxu1 %vm2059_vm1, %v10510_v18 }
 0x297   : > { %8173 = vmatpush3.bf16.xpose.msk.msra.mxu0 %vm9709_vm2, %v8168_v61  ;;  %8128 = vmatprep.subr.msk.bf16.mxu1 %vm9709_vm2, %v8126_v24 }
 0x298   : > { %8176 = vmatprep.subr.msk.bf16.mxu0 %vm9709_vm2, %v8174_v53  ;;  %v10779_v1 = vpop.f32.mrb[136].mxu0  ;;  %2181 = vadd.xlane.f32.xlu0 %v2180_v35  ;;  %v2192_v35 = vsel %vm2059_vm1, %v2039_v41, 0.0  ;;  %v8192_v41 = vpack.c.bf16 %v10554_v63, %v10559_v6  ;;  %v8198_v63 = vpack.c.bf16 %v10593_v30, %v10606_v44  ;;  %v12387_v6 = vld [vmem:[#allocation3_spill] sm:$0xff]  ;;  %v12388_v30 = vld [vmem:[#allocation4_spill] sm:$0xff]  ;;  %v8204_v44 = vpack.c.bf16 %v10643_v19, %v10658_v52  ;;  %v12390_v19 = vld [vmem:[#allocation6_spill] sm:$0xff] }
 0x299   : > { %12378 = vst [vmem:[#allocation74_spill] sm:$0xff] %v10779_v1  ;;  %7262 = vmatmul.mubr.msk.f32.gmra.mrb[142].mxu1 %vm2059_vm1, %v10513_v50  ;;  %v10783_v16 = vpop.f32.mrb[137].mxu0  ;;  %2232 = vadd.xlane.f32.xlu1 %v2231_v29  ;;  %v8210_v52 = vpack.c.bf16 %v10704_v11, %v10715_v5 }
 0x29a   : > { %12379 = vst [vmem:[#allocation75_spill] sm:$0xff] %v10783_v16  ;;  %7352 = vmatprep.mubr.msk.f32.mxu1 %vm2059_vm1, %v12366_v9 }
 0x29c   : > { %v10796_v55 = vpop.f32.mrb[138].mxu0  ;;  %2229 = vadd.xlane.f32.xlu0 %v2228_v34  ;;  %v2198_v34 = vsel %vm2059_vm1, %v2041_v15, 0.0 }
 0x29d   : > { %12380 = vst [vmem:[#allocation76_spill] sm:$0xff] %v10796_v55  ;;  %v10798_v61 = vpop.f32.mrb[139].mxu0  ;;  %2190 = vadd.xlane.f32.xlu1 %v2189_v17  ;;  %v12389_v17 = vld [vmem:[#allocation5_spill] sm:$0xff] }
 0x29e   : > { %12381 = vst [vmem:[#allocation77_spill] sm:$0xff] %v10798_v61  ;;  %8131 = vmatpush3.bf16.xpose.msk.msra.mxu1 %vm9709_vm2, %v8126_v24  ;;  %v8138_v24 = vpack.c.bf16 %v10524_v46, %v10533_v2  ;;  %v10847_v46 = vmul.f32 %v10468_v43, %v10468_v43  ;;  %v2201_v2 = vsel %vm2059_vm1, %v2042_v7, 0.0  ;;  %v12386_v43 = vld [vmem:[#allocation2_spill] sm:$0xff] }
 0x29f   : > { %8179 = vmatpush3.bf16.xpose.msk.msra.mxu0 %vm9709_vm2, %v8174_v53  ;;  %8134 = vmatprep.subr.msk.bf16.mxu1 %vm9709_vm2, %v8132_v10  ;;  %v8186_v53 = vpack.c.bf16 %v2042_v7, %v2041_v15  ;;  %v8216_v7 = vpack.c.bf16 %v10752_v31, %v10771_v32 }
 0x2a0   : > { %8182 = vmatprep.subr.msk.bf16.mxu0 %vm9709_vm2, %v8180_v59  ;;  %v10819_v42 = vpop.f32.mrb[140].mxu0  ;;  %2187 = vadd.xlane.f32.xlu0 %v2186_v54  ;;  %v2240_v48 = vsel %vm2059_vm1, %v10847_v46, 0.0 }
 0x2a1   : > { %12382 = vst [vmem:[#allocation78_spill] sm:$0xff] %v10819_v42  ;;  %v10821_v33 = vpop.f32.mrb[141].mxu0  ;;  %2238 = vadd.xlane.f32.xlu1 %v2237_v36  ;;  %v12394_v36 = vld [vmem:[#allocation8_spill] sm:$0xff] }
 0x2a2   : > { %12383 = vst [vmem:[#allocation79_spill] sm:$0xff] %v10821_v33 }
 0x2a4   : > { %2235 = vadd.xlane.f32.xlu0 %v2234_v20  ;;  %v10832_v0 = vpop.f32.mrb[142].mxu0 }
 0x2a5   : > { %12384 = vst [vmem:[#allocation80_spill] sm:$0xff] %v10832_v0  ;;  %2196 = vadd.xlane.f32.xlu1 %v2195_v57  ;;  %v10835_v29 = vpop.f32.mrb[143].mxu0 }
 0x2a6   : > { %12385 = vst [vmem:[#allocation81_spill] sm:$0xff] %v10835_v29  ;;  %8137 = vmatpush3.bf16.xpose.msk.msra.mxu1 %vm9709_vm2, %v8132_v10  ;;  %v12391_v10 = vld [vmem:[#allocation7_spill] sm:$0xff] }
 0x2a7   : > { %8185 = vmatpush3.bf16.xpose.msk.msra.mxu0 %vm9709_vm2, %v8180_v59  ;;  %8140 = vmatprep.subr.msk.bf16.mxu1 %vm9709_vm2, %v8138_v24 }
 0x2a8   : > { %8188 = vmatprep.subr.msk.bf16.mxu0 %vm9709_vm2, %v8186_v53  ;;  %2193 = vadd.xlane.f32.xlu0 %v2192_v35 }
 0x2a9   : > { %2244 = vadd.xlane.f32.xlu1 %v2243_v28 }
 0x2aa   : > { %v11068_v37 = vpop.xlane.xlu0 %2061 }
 0x2ac   : > { %2241 = vadd.xlane.f32.xlu0 %v2240_v48  ;;  %v8222_v48 = vpack.c.bf16 %v10794_v27, %v10811_v26  ;;  %v2057_v27 = vmul.f32 %v10510_v18, %v10510_v18 }
 0x2ad   : > { %2202 = vadd.xlane.f32.xlu1 %v2201_v2  ;;  %v12400_v2 = vld [vmem:[#allocation18_spill] sm:$0xff] }
 0x2ae   : > { %8143 = vmatpush3.bf16.xpose.msk.msra.mxu1 %vm9709_vm2, %v8138_v24 }
 0x2af   : > { %8191 = vmatpush3.bf16.xpose.msk.msra.mxu0 %vm9709_vm2, %v8186_v53  ;;  %8194 = vmatprep.subr.msk.bf16.mxu1 %vm9709_vm2, %v8192_v41  ;;  %v12397_v53 = vld [vmem:[#allocation9_spill] sm:$0xff] }
 0x2b0   : > { %8241 = vmatprep.subr.bf16.mxu0 %v12386_v43  ;;  %2199 = vadd.xlane.f32.xlu0 %v2198_v34 }
 0x2b5   : > { %7353 = vmatmul.mubr.msk.f32.vlgmr.msra.gmra.mrb[144].mxu1 %vm2059_vm1, %v12366_v9 }
 0x2b6   : > { %7409 = vmatmul.mubr.msk.f32.vlgmr.msra.gmra.mrb[192].mxu0 %vm2059_vm1, %v12366_v9  ;;  %8197 = vmatpush3.bf16.xpose.msk.msra.mxu1 %vm9709_vm2, %v8192_v41 }
 0x2b7   : > { %8243 = vmatpush3.bf16.msra.mxu0 %v12386_v43  ;;  %7355 = vmatprep.mubr.msk.f32.mxu1 %vm2059_vm1, %v12366_v9 }
 0x2b8   : > { %8245 = vmatprep.subr.bf16.mxu0 %v12387_v6  ;;  %7411 = vmatprep.mubr.msk.f32.mxu0 %vm2059_vm1, %v12366_v9 }
 0x2b9   : > { %7356 = vmatmul.mubr.msk.f32.gmra.mrb[146].mxu1 %vm2059_vm1, %v12366_v9  ;;  %8200 = vmatprep.subr.msk.bf16.mxu1 %vm9709_vm2, %v8198_v63 }
 0x2ba   : > { %7412 = vmatmul.mubr.msk.f32.gmra.mrb[194].mxu0 %vm2059_vm1, %v12366_v9  ;;  %7358 = vmatprep.mubr.msk.f32.mxu1 %vm2059_vm1, %v12366_v9 }
 0x2bb   : > { %8247 = vmatpush3.bf16.msra.mxu0 %v12387_v6  ;;  %7414 = vmatprep.mubr.msk.f32.mxu0 %vm2059_vm1, %v12366_v9 }
 0x2bc   : > { %8249 = vmatprep.subr.bf16.mxu0 %v12388_v30 }
 0x2bd   : > { %7359 = vmatmul.mubr.msk.f32.gmra.mrb[148].mxu1 %vm2059_vm1, %v12366_v9 }
 0x2be   : > { %7415 = vmatmul.mubr.msk.f32.gmra.mrb[196].mxu0 %vm2059_vm1, %v12366_v9  ;;  %8203 = vmatpush3.bf16.xpose.msk.msra.mxu1 %vm9709_vm2, %v8198_v63  ;;  %v2058_v63 = vmul.f32 %v10513_v50, %v10513_v50 }
 0x2bf   : > { %8251 = vmatpush3.bf16.msra.mxu0 %v12388_v30  ;;  %7361 = vmatprep.mubr.msk.f32.mxu1 %vm2059_vm1, %v12366_v9 }
 0x2c0   : > { %8253 = vmatprep.subr.bf16.mxu0 %v12389_v17  ;;  %7417 = vmatprep.mubr.msk.f32.mxu0 %vm2059_vm1, %v12366_v9  ;;  %v2249_v26 = vsel %vm2059_vm1, %v2058_v63, 0.0 }
 0x2c1   : > { %7362 = vmatmul.mubr.msk.f32.gmra.mrb[150].mxu1 %vm2059_vm1, %v12366_v9  ;;  %8206 = vmatprep.subr.msk.bf16.mxu1 %vm9709_vm2, %v8204_v44 }
 0x2c2   : > { %7418 = vmatmul.mubr.msk.f32.gmra.mrb[198].mxu0 %vm2059_vm1, %v12366_v9  ;;  %7364 = vmatprep.mubr.msk.f32.mxu1 %vm2059_vm1, %v12366_v9 }
 0x2c3   : > { %8255 = vmatpush3.bf16.msra.mxu0 %v12389_v17  ;;  %7420 = vmatprep.mubr.msk.f32.mxu0 %vm2059_vm1, %v12366_v9  ;;  %v2246_v17 = vsel %vm2059_vm1, %v2057_v27, 0.0 }
 0x2c4   : > { %8257 = vmatprep.subr.bf16.mxu0 %v12390_v19  ;;  %2250 = vadd.xlane.f32.xlu1 %v2249_v26 }
 0x2c5   : > { %7365 = vmatmul.mubr.msk.f32.gmra.mrb[152].mxu1 %vm2059_vm1, %v12366_v9  ;;  %2247 = vadd.xlane.f32.xlu0 %v2246_v17 }
 0x2c6   : > { %7421 = vmatmul.mubr.msk.f32.gmra.mrb[200].mxu0 %vm2059_vm1, %v12366_v9  ;;  %8209 = vmatpush3.bf16.xpose.msk.msra.mxu1 %vm9709_vm2, %v8204_v44 }
 0x2c7   : > { %8259 = vmatpush3.bf16.msra.mxu0 %v12390_v19  ;;  %7367 = vmatprep.mubr.msk.f32.mxu1 %vm2059_vm1, %v12366_v9 }
 0x2c8   : > { %8261 = vmatprep.subr.bf16.mxu0 %v12391_v10  ;;  %7423 = vmatprep.mubr.msk.f32.mxu0 %vm2059_vm1, %v12366_v9  ;;  %v10930_v59 = vpop.f32.mrb[96].mxu1 }
 0x2c9   : > { %12392 = vst [vmem:[#allocation2_spill] sm:$0xff] %v10930_v59  ;;  %7368 = vmatmul.mubr.msk.f32.gmra.mrb[154].mxu1 %vm2059_vm1, %v12366_v9  ;;  %8212 = vmatprep.subr.msk.bf16.mxu1 %vm9709_vm2, %v8210_v52  ;;  %v10936_v11 = vpop.f32.mrb[144].mxu0  ;;  %v10938_v5 = vpop.f32.mrb[97].mxu1 }
 0x2ca   : > { %12393 = vst [vmem:[#allocation3_spill] sm:$0xff] %v10938_v5  ;;  %7424 = vmatmul.mubr.msk.f32.gmra.mrb[202].mxu0 %vm2059_vm1, %v12366_v9  ;;  %7370 = vmatprep.mubr.msk.f32.mxu1 %vm2059_vm1, %v12366_v9  ;;  %v10944_v54 = vpop.f32.mrb[145].mxu0  ;;  %v12422_v5 = vld [vmem:[#allocation17_spill] sm:$0xff] }
 0x2cb   : > { %8263 = vmatpush3.bf16.msra.mxu0 %v12391_v10  ;;  %7426 = vmatprep.mubr.msk.f32.mxu0 %vm2059_vm1, %v12366_v9 }
 0x2cc   : > { %8265 = vmatprep.subr.bf16.mxu0 %v12394_v36  ;;  %v10950_v15 = vpop.f32.mrb[98].mxu1 }
 0x2cd   : > { %12395 = vst [vmem:[#allocation4_spill] sm:$0xff] %v10950_v15  ;;  %7371 = vmatmul.mubr.msk.f32.gmra.mrb[156].mxu1 %vm2059_vm1, %v12366_v9  ;;  %v10956_v20 = vpop.f32.mrb[146].mxu0  ;;  %v10958_v57 = vpop.f32.mrb[99].mxu1 }
 0x2ce   : > { %12396 = vst [vmem:[#allocation5_spill] sm:$0xff] %v10958_v57  ;;  %7427 = vmatmul.mubr.msk.f32.gmra.mrb[204].mxu0 %vm2059_vm1, %v12366_v9  ;;  %8215 = vmatpush3.bf16.xpose.msk.msra.mxu1 %vm9709_vm2, %v8210_v52  ;;  %v10964_v24 = vpop.f32.mrb[147].mxu0  ;;  %v8228_v52 = vpack.c.bf16 %v10830_v21, %v10847_v46  ;;  %v8234_v46 = vpack.c.bf16 %v2058_v63, %v2057_v27  ;;  %v12412_v63 = vld [vmem:[#allocation11_spill] sm:$0xff]  ;;  %v11061_v27 = vpop.xlane.xlu1 %2109 }
 0x2cf   : > { %8267 = vmatpush3.bf16.msra.mxu0 %v12394_v36  ;;  %7373 = vmatprep.mubr.msk.f32.mxu1 %vm2059_vm1, %v12366_v9 }
 0x2d0   : > { %8269 = vmatprep.subr.bf16.mxu0 %v12397_v53  ;;  %7429 = vmatprep.mubr.msk.f32.mxu0 %vm2059_vm1, %v12366_v9  ;;  %v10972_v31 = vpop.f32.mrb[100].mxu1 }
 0x2d1   : > { %12398 = vst [vmem:[#allocation6_spill] sm:$0xff] %v10972_v31  ;;  %7374 = vmatmul.mubr.msk.f32.gmra.mrb[158].mxu1 %vm2059_vm1, %v12366_v9  ;;  %8218 = vmatprep.subr.msk.bf16.mxu1 %vm9709_vm2, %v8216_v7  ;;  %v10978_v32 = vpop.f32.mrb[148].mxu0  ;;  %v10980_v35 = vpop.f32.mrb[101].mxu1 }
 0x2d2   : > { %12399 = vst [vmem:[#allocation7_spill] sm:$0xff] %v10980_v35  ;;  %7430 = vmatmul.mubr.msk.f32.gmra.mrb[206].mxu0 %vm2059_vm1, %v12366_v9  ;;  %7464 = vmatprep.mubr.msk.f32.mxu1 %vm2059_vm1, %v12366_v9  ;;  %v10986_v28 = vpop.f32.mrb[149].mxu0 }
 0x2d3   : > { %8271 = vmatpush3.bf16.msra.mxu0 %v12397_v53 }
 0x2d4   : > { %8305 = vmatprep.subr.bf16.mxu0 %v12400_v2  ;;  %v10992_v41 = vpop.f32.mrb[102].mxu1 }
 0x2d5   : > { %12401 = vst [vmem:[#allocation8_spill] sm:$0xff] %v10992_v41  ;;  %v10994_v34 = vpop.f32.mrb[150].mxu0  ;;  %v10996_v43 = vpop.f32.mrb[103].mxu1  ;;  %v12420_v41 = vld [vmem:[#allocation16_spill] sm:$0xff] }
 0x2d6   : > { %12402 = vst [vmem:[#allocation9_spill] sm:$0xff] %v10996_v43  ;;  %8221 = vmatpush3.bf16.xpose.msk.msra.mxu1 %vm9709_vm2, %v8216_v7  ;;  %v11002_v6 = vpop.f32.mrb[151].mxu0 }
 0x2d7   : > { %8224 = vmatprep.subr.msk.bf16.mxu1 %vm9709_vm2, %v8222_v48 }
 0x2d8   : > { %v11009_v30 = vpop.f32.mrb[104].mxu1 }
 0x2d9   : > { %12403 = vst [vmem:[#allocation82_spill] sm:$0xff] %v11009_v30  ;;  %v11011_v44 = vpop.f32.mrb[152].mxu0  ;;  %v11014_v19 = vpop.f32.mrb[105].mxu1 }
 0x2da   : > { %12404 = vst [vmem:[#allocation83_spill] sm:$0xff] %v11014_v19  ;;  %v11016_v50 = vpop.f32.mrb[153].mxu0 }
 0x2dc   : > { %v11020_v10 = vpop.f32.mrb[106].mxu1 }
 0x2dd   : > { %12405 = vst [vmem:[#allocation84_spill] sm:$0xff] %v11020_v10  ;;  %v11022_v18 = vpop.f32.mrb[154].mxu0  ;;  %v11024_v36 = vpop.f32.mrb[107].mxu1 }
 0x2de   : > { %12406 = vst [vmem:[#allocation85_spill] sm:$0xff] %v11024_v36  ;;  %8227 = vmatpush3.bf16.xpose.msk.msra.mxu1 %vm9709_vm2, %v8222_v48  ;;  %v11028_v7 = vpop.f32.mrb[155].mxu0 }
 0x2df   : > { %8230 = vmatprep.subr.msk.bf16.mxu1 %vm9709_vm2, %v8228_v52 }
 0x2e0   : > { %v11032_v53 = vpop.f32.mrb[108].mxu1 }
 0x2e1   : > { %12407 = vst [vmem:[#allocation86_spill] sm:$0xff] %v11032_v53  ;;  %v11034_v26 = vpop.f32.mrb[156].mxu0  ;;  %v11036_v17 = vpop.f32.mrb[109].mxu1  ;;  %v12418_v53 = vld [vmem:[#allocation15_spill] sm:$0xff] }
 0x2e2   : > { %12408 = vst [vmem:[#allocation87_spill] sm:$0xff] %v11036_v17  ;;  %v11038_v21 = vpop.f32.mrb[157].mxu0  ;;  %v12411_v17 = vld [vmem:[#allocation10_spill] sm:$0xff] }
 0x2e3   : > { %12413 = vst [vmem:[#allocation10_spill] sm:$0xff] %v11061_v27 }
 0x2e4   : > { %v11040_v2 = vpop.f32.mrb[110].mxu1 }
 0x2e5   : > { %12409 = vst [vmem:[#allocation88_spill] sm:$0xff] %v11040_v2  ;;  %v11042_v36 = vpop.f32.mrb[158].mxu0  ;;  %v11048_v10 = vpop.f32.mrb[111].mxu1 }
 0x2e6   : > { %8233 = vmatpush3.bf16.xpose.msk.msra.mxu1 %vm9709_vm2, %v8228_v52  ;;  %v11046_v48 = vpop.f32.mrb[159].mxu0  ;;  %12410 = vst [vmem:[#allocation89_spill] sm:$0xff] %v11048_v10  ;;  %v12414_v52 = vld [vmem:[#allocation12_spill] sm:$0xff]  ;;  %v12417_v10 = vld [vmem:[#allocation14_spill] sm:$0xff] }
 0x2e7   : > { %8236 = vmatprep.subr.msk.bf16.mxu1 %vm9709_vm2, %v8234_v46 }
 0x2ee   : > { %8239 = vmatpush3.bf16.xpose.msk.msra.mxu1 %vm9709_vm2, %v8234_v46  ;;  %v12416_v46 = vld [vmem:[#allocation13_spill] sm:$0xff] }
 0x2ef   : > { %8273 = vmatprep.subr.bf16.mxu1 %v12411_v17 }
 0x2f5   : > { %7465 = vmatmul.mubr.msk.f32.vlgmr.msra.gmra.mrb[160].mxu1 %vm2059_vm1, %v12366_v9 }
 0x2f6   : > { %8275 = vmatpush3.bf16.msra.mxu1 %v12411_v17  ;;  %7467 = vmatprep.mubr.msk.f32.mxu1 %vm2059_vm1, %v12366_v9  ;;  %v11076_v17 = vpop.xlane.xlu1 %2112 }
 0x2f7   : > { %8277 = vmatprep.subr.bf16.mxu1 %v12412_v63  ;;  %12415 = vst [vmem:[#allocation11_spill] sm:$0xff] %v11076_v17 }
 0x2f9   : > { %7468 = vmatmul.mubr.msk.f32.gmra.mrb[162].mxu1 %vm2059_vm1, %v12366_v9 }
 0x2fa   : > { %8279 = vmatpush3.bf16.msra.mxu1 %v12412_v63  ;;  %7470 = vmatprep.mubr.msk.f32.mxu1 %vm2059_vm1, %v12366_v9  ;;  %v11079_v63 = vpop.xlane.xlu0 %2064 }
 0x2fb   : > { %8281 = vmatprep.subr.bf16.mxu1 %v12414_v52 }
 0x2fd   : > { %7471 = vmatmul.mubr.msk.f32.gmra.mrb[164].mxu1 %vm2059_vm1, %v12366_v9 }
 0x2fe   : > { %8283 = vmatpush3.bf16.msra.mxu1 %v12414_v52  ;;  %7473 = vmatprep.mubr.msk.f32.mxu1 %vm2059_vm1, %v12366_v9  ;;  %v11087_v52 = vpop.xlane.xlu1 %2070  ;;  %v11094_v2 = vpop.xlane.xlu0 %2067 }
 0x2ff   : > { %8285 = vmatprep.subr.bf16.mxu1 %v12416_v46 }
 0x301   : > { %7474 = vmatmul.mubr.msk.f32.gmra.mrb[166].mxu1 %vm2059_vm1, %v12366_v9 }
 0x302   : > { %8287 = vmatpush3.bf16.msra.mxu1 %v12416_v46  ;;  %7476 = vmatprep.mubr.msk.f32.mxu1 %vm2059_vm1, %v12366_v9  ;;  %v11113_v35 = vpop.xlane.xlu0 %2115 }
 0x303   : > { %8289 = vmatprep.subr.bf16.mxu1 %v12417_v10  ;;  %12421 = vst [vmem:[#allocation13_spill] sm:$0xff] %v11113_v35 }
 0x305   : > { %7477 = vmatmul.mubr.msk.f32.gmra.mrb[168].mxu1 %vm2059_vm1, %v12366_v9 }
 0x306   : > { %8291 = vmatpush3.bf16.msra.mxu1 %v12417_v10  ;;  %7479 = vmatprep.mubr.msk.f32.mxu1 %vm2059_vm1, %v12366_v9  ;;  %v11108_v10 = vpop.xlane.xlu1 %2118  ;;  %v11141_v22 = vpop.xlane.xlu0 %2073 }
 0x307   : > { %8293 = vmatprep.subr.bf16.mxu1 %v12418_v53  ;;  %12419 = vst [vmem:[#allocation12_spill] sm:$0xff] %v11108_v10 }
 0x308   : > { %v11097_v46 = vpop.f32.mrb[112].mxu1 }
 0x309   : > { %7480 = vmatmul.mubr.msk.f32.gmra.mrb[170].mxu1 %vm2059_vm1, %v12366_v9  ;;  %v11101_v19 = vpop.f32.mrb[160].mxu0  ;;  %v11103_v30 = vpop.f32.mrb[113].mxu1 }
 0x30a   : > { %8295 = vmatpush3.bf16.msra.mxu1 %v12418_v53  ;;  %7482 = vmatprep.mubr.msk.f32.mxu1 %vm2059_vm1, %v12366_v9  ;;  %v11110_v43 = vpop.f32.mrb[161].mxu0  ;;  %v11129_v59 = vpop.xlane.xlu1 %2076 }
 0x30b   : > { %8297 = vmatprep.subr.bf16.mxu1 %v12420_v41  ;;  %v11157_v1 = vpop.xlane.xlu0 %2121 }
 0x30c   : > { %12425 = vst [vmem:[#allocation15_spill] sm:$0xff] %v11157_v1 }
 0x30d   : > { %7483 = vmatmul.mubr.msk.f32.gmra.mrb[172].mxu1 %vm2059_vm1, %v12366_v9  ;;  %v11117_v31 = vpop.f32.mrb[162].mxu0  ;;  %v11119_v57 = vpop.f32.mrb[114].mxu1 }
 0x30e   : > { %8299 = vmatpush3.bf16.msra.mxu1 %v12420_v41  ;;  %7485 = vmatprep.mubr.msk.f32.mxu1 %vm2059_vm1, %v12366_v9  ;;  %v11124_v53 = vpop.f32.mrb[163].mxu0  ;;  %v11126_v15 = vpop.f32.mrb[115].mxu1  ;;  %v12423_v41 = vld [vmem:[#allocation26_spill] sm:$0xff] }
 0x30f   : > { %8301 = vmatprep.subr.bf16.mxu1 %v12422_v5  ;;  %v11149_v55 = vpop.xlane.xlu1 %2124  ;;  %v11173_v49 = vpop.xlane.xlu0 %2079 }
 0x310   : > { %12424 = vst [vmem:[#allocation14_spill] sm:$0xff] %v11149_v55 }
 0x311   : > { %7486 = vmatmul.mubr.msk.f32.gmra.mrb[174].mxu1 %vm2059_vm1, %v12366_v9  ;;  %v11133_v29 = vpop.f32.mrb[164].mxu0 }
 0x312   : > { %8303 = vmatpush3.bf16.msra.mxu1 %v12422_v5  ;;  %v11136_v12 = vpop.f32.mrb[165].mxu0 }
 0x313   : > { %8337 = vmatprep.subr.bf16.mxu1 %v12423_v41  ;;  %v11139_v0 = vpop.f32.mrb[116].mxu1  ;;  %v11163_v40 = vpop.xlane.xlu1 %2082 }
 0x314   : > { %v11143_v33 = vpop.f32.mrb[117].mxu1  ;;  %v11191_v38 = vpop.xlane.xlu0 %2127 }
 0x315   : > { %v11145_v42 = vpop.f32.mrb[166].mxu0  ;;  %12438 = vst [vmem:[#allocation100_spill] sm:$0xff] %v11191_v38 }
 0x316   : > { %v11147_v61 = vpop.f32.mrb[167].mxu0 }
 0x317   : > { %v11151_v9 = vpop.f32.mrb[118].mxu1  ;;  %v11181_v60 = vpop.xlane.xlu1 %2130 }
 0x318   : > { %v11153_v16 = vpop.f32.mrb[119].mxu1  ;;  %12433 = vst [vmem:[#allocation95_spill] sm:$0xff] %v11181_v60  ;;  %v11199_v55 = vpop.xlane.xlu0 %2085 }
 0x319   : > { %v11155_v5 = vpop.f32.mrb[168].mxu0 }
 0x31a   : > { %v11159_v41 = vpop.f32.mrb[169].mxu0 }
 0x31b   : > { %v11161_v25 = vpop.f32.mrb[120].mxu1  ;;  %v11195_v39 = vpop.xlane.xlu1 %2088 }
 0x31c   : > { %12426 = vst [vmem:[#allocation16_spill] sm:$0xff] %v11161_v25  ;;  %v11165_v13 = vpop.f32.mrb[121].mxu1  ;;  %v11203_v60 = vpop.xlane.xlu0 %2133 }
 0x31d   : > { %12427 = vst [vmem:[#allocation17_spill] sm:$0xff] %v11165_v13  ;;  %v11167_v23 = vpop.f32.mrb[170].mxu0  ;;  %12442 = vst [vmem:[#allocation104_spill] sm:$0xff] %v11203_v60  ;;  %v3864_v60 = vmul.f32 2.0, %v10936_v11 }
 0x31e   : > { %v11169_v45 = vpop.f32.mrb[171].mxu0 }
 0x31f   : > { %12428 = vst [vmem:[#allocation90_spill] sm:$0xff] %v11169_v45  ;;  %v11171_v62 = vpop.f32.mrb[122].mxu1  ;;  %v11201_v35 = vpop.xlane.xlu1 %2136 }
 0x320   : > { %12429 = vst [vmem:[#allocation91_spill] sm:$0xff] %v11171_v62  ;;  %v11175_v58 = vpop.f32.mrb[123].mxu1  ;;  %12441 = vst [vmem:[#allocation103_spill] sm:$0xff] %v11201_v35 }
 0x321   : > { %12430 = vst [vmem:[#allocation92_spill] sm:$0xff] %v11175_v58  ;;  %v11177_v47 = vpop.f32.mrb[172].mxu0 }
 0x322   : > { %12431 = vst [vmem:[#allocation93_spill] sm:$0xff] %v11177_v47  ;;  %v11179_v56 = vpop.f32.mrb[173].mxu0 }
 0x323   : > { %12432 = vst [vmem:[#allocation94_spill] sm:$0xff] %v11179_v56  ;;  %v11183_v3 = vpop.f32.mrb[124].mxu1  ;;  %v11205_v10 = vpop.xlane.xlu1 %2094 }
 0x324   : > { %12434 = vst [vmem:[#allocation96_spill] sm:$0xff] %v11183_v3  ;;  %v11185_v4 = vpop.f32.mrb[125].mxu1 }
 0x325   : > { %12435 = vst [vmem:[#allocation97_spill] sm:$0xff] %v11185_v4  ;;  %v11187_v51 = vpop.f32.mrb[174].mxu0  ;;  %v11207_v4 = vpop.xlane.xlu0 %2091 }
 0x326   : > { %12436 = vst [vmem:[#allocation98_spill] sm:$0xff] %v11187_v51  ;;  %v11189_v14 = vpop.f32.mrb[175].mxu0 }
 0x327   : > { %12437 = vst [vmem:[#allocation99_spill] sm:$0xff] %v11189_v14  ;;  %v11193_v8 = vpop.f32.mrb[126].mxu1  ;;  %v11209_v51 = vpop.xlane.xlu1 %2142 }
 0x328   : > { %12439 = vst [vmem:[#allocation101_spill] sm:$0xff] %v11193_v8  ;;  %v11197_v1 = vpop.f32.mrb[127].mxu1  ;;  %12443 = vst [vmem:[#allocation105_spill] sm:$0xff] %v11209_v51 }
 0x329   : > { %12440 = vst [vmem:[#allocation102_spill] sm:$0xff] %v11197_v1  ;;  %v11211_v14 = vpop.xlane.xlu0 %2139 }
 0x32a   : > { %12444 = vst [vmem:[#allocation106_spill] sm:$0xff] %v11211_v14  ;;  %v3863_v14 = vmul.f32 2.0, %v10944_v54 }
 0x32b   : > { %v11213_v38 = vpop.xlane.xlu1 %2100 }
 0x32d   : > { %v11215_v8 = vpop.xlane.xlu0 %2097 }
 0x32f   : > { %v11217_v27 = vpop.xlane.xlu1 %2148 }
 0x330   : > { %12445 = vst [vmem:[#allocation107_spill] sm:$0xff] %v11217_v27 }
 0x331   : > { %v11225_v58 = vpop.xlane.xlu0 %2145 }
 0x332   : > { %12448 = vst [vmem:[#allocation110_spill] sm:$0xff] %v11225_v58  ;;  %v3865_v58 = vmul.f32 2.0, %v10964_v24 }
 0x333   : > { %v11229_v47 = vpop.xlane.xlu1 %2106 }
 0x348   : > { %v11219_v1 = vpop.f32.mrb[128].mxu1 }
 0x349   : > { %12446 = vst [vmem:[#allocation108_spill] sm:$0xff] %v11219_v1  ;;  %v7298_v3 = vpop.f32.mrb[176].mxu0  ;;  %v11221_v35 = vpop.f32.mrb[129].mxu1 }
 0x34a   : > { %12447 = vst [vmem:[#allocation109_spill] sm:$0xff] %v11221_v35  ;;  %v3800_v56 = vadd.f32 %v7298_v3, %v11079_v63  ;;  %v3141_v17 = vpop.f32.mrb[177].mxu0  ;;  %v3866_v35 = vmul.f32 2.0, %v10956_v20  ;;  %v3868_v20 = vmul.f32 2.0, %v10978_v32 }
 0x34b   : > { %v3799_v51 = vadd.f32 %v3141_v17, %v11068_v37  ;;  %v11239_v17 = vpop.xlane.xlu0 %2103 }
 0x34c   : > { %v3928_v62 = vsub.f32 %v3800_v56, %v3864_v60 }
 0x34d   : > { %v3927_v27 = vsub.f32 %v3799_v51, %v3863_v14  ;;  %v7301_v13 = vpop.f32.mrb[178].mxu0  ;;  %v11231_v1 = vpop.f32.mrb[130].mxu1 }
 0x34e   : > { %12449 = vst [vmem:[#allocation111_spill] sm:$0xff] %v11231_v1  ;;  %v3992_v25 = vmax.f32 %v3928_v62, 0.0  ;;  %v3802_v11 = vadd.f32 %v7301_v13, %v11087_v52  ;;  %v3151_v3 = vpop.f32.mrb[179].mxu0  ;;  %v11235_v63 = vpop.f32.mrb[131].mxu1 }
 0x34f   : > { %12450 = vst [vmem:[#allocation112_spill] sm:$0xff] %v11235_v63  ;;  %v3991_v54 = vmax.f32 %v3927_v27, 0.0  ;;  %v3801_v37 = vadd.f32 %v3151_v3, %v11094_v2  ;;  %v3867_v63 = vmul.f32 2.0, %v10986_v28 }
 0x350   : > { %v4056_v56 = vsub.f32 0.0, %v3992_v25  ;;  %v3930_v60 = vsub.f32 %v3802_v11, %v3866_v35  ;;  %v11245_v11 = vpop.xlane.xlu1 %2154 }
 0x351   : > { %v4055_v51 = vsub.f32 0.0, %v3991_v54  ;;  %v3929_v14 = vsub.f32 %v3801_v37, %v3865_v58  ;;  %v7304_v1 = vpop.f32.mrb[180].mxu0 }
 0x352   : > { %v4121_v62 = vmul.f32 1.442695, %v4056_v56  ;;  %v3994_v45 = vmax.f32 %v3930_v60, 0.0  ;;  %v3804_v13 = vadd.f32 %v7304_v1, %v11129_v59  ;;  %v3161_v52 = vpop.f32.mrb[181].mxu0  ;;  %v3870_v1 = vmul.f32 2.0, %v10994_v34  ;;  %v11253_v60 = vpop.xlane.xlu0 %2151 }
 0x353   : > { %v4119_v24 = vmul.f32 1.442695, %v4055_v51  ;;  %v3993_v27 = vmax.f32 %v3929_v14, 0.0  ;;  %v3803_v2 = vadd.f32 %v3161_v52, %v11141_v22 }
 0x354   : > { %8378 = vpow2.f32 %v4121_v62  ;;  %v4058_v25 = vsub.f32 0.0, %v3994_v45  ;;  %v3932_v35 = vsub.f32 %v3804_v13, %v3868_v20  ;;  %v11247_v58 = vpop.f32.mrb[132].mxu1  ;;  %v3869_v45 = vmul.f32 2.0, %v11002_v6 }
 0x355   : > { %12451 = vst [vmem:[#allocation113_spill] sm:$0xff] %v11247_v58  ;;  %8380 = vpow2.f32 %v4119_v24  ;;  %v4057_v32 = vsub.f32 0.0, %v3993_v27  ;;  %v3931_v3 = vsub.f32 %v3803_v2, %v3867_v63  ;;  %v7307_v54 = vpop.f32.mrb[182].mxu0  ;;  %v11249_v37 = vpop.f32.mrb[133].mxu1 }
 0x356   : > { %12452 = vst [vmem:[#allocation114_spill] sm:$0xff] %v11249_v37  ;;  %v4125_v59 = vmul.f32 1.442695, %v4058_v25  ;;  %v3996_v28 = vmax.f32 %v3932_v35, 0.0  ;;  %v3806_v56 = vadd.f32 %v7307_v54, %v11163_v40  ;;  %v3171_v22 = vpop.f32.mrb[183].mxu0  ;;  %v3872_v40 = vmul.f32 2.0, %v11011_v44 }
 0x357   : > { %v4123_v51 = vmul.f32 1.442695, %v4057_v32  ;;  %v3995_v14 = vmax.f32 %v3931_v3, 0.0  ;;  %v3805_v20 = vadd.f32 %v3171_v22, %v11173_v49  ;;  %v11263_v32 = vpop.xlane.xlu1 %2160  ;;  %v3871_v49 = vmul.f32 2.0, %v11016_v50  ;;  %v12515_v37 = vld [vmem:[#allocation12_spill] sm:$0xff] }
 0x358   : > { %8382 = vpow2.f32 %v4125_v59  ;;  %v4060_v63 = vsub.f32 0.0, %v3996_v28  ;;  %v3934_v62 = vsub.f32 %v3806_v56, %v3870_v1  ;;  %v11257_v13 = vpop.f32.mrb[134].mxu1  ;;  %v11267_v56 = vpop.xlane.xlu0 %2157  ;;  %v3874_v44 = vmul.f32 2.0, %v11022_v18 }
 0x359   : > { %12453 = vst [vmem:[#allocation115_spill] sm:$0xff] %v11257_v13  ;;  %8384 = vpow2.f32 %v4123_v51  ;;  %v4059_v34 = vsub.f32 0.0, %v3995_v14  ;;  %v3933_v52 = vsub.f32 %v3805_v20, %v3869_v45  ;;  %v7310_v24 = vpop.f32.mrb[184].mxu0  ;;  %v11259_v27 = vpop.f32.mrb[135].mxu1  ;;  %v3873_v50 = vmul.f32 2.0, %v11028_v7  ;;  %v12514_v13 = vld [vmem:[#allocation102_spill] sm:$0xff] }
 0x35a   : > { %12454 = vst [vmem:[#allocation116_spill] sm:$0xff] %v11259_v27  ;;  %v4129_v2 = vmul.f32 1.442695, %v4060_v63  ;;  %v3998_v25 = vmax.f32 %v3934_v62, 0.0  ;;  %v3808_v6 = vadd.f32 %v7310_v24, %v11195_v39  ;;  %v3181_v35 = vpop.f32.mrb[185].mxu0 }
 0x35b   : > { %v4127_v3 = vmul.f32 1.442695, %v4059_v34  ;;  %v3997_v54 = vmax.f32 %v3933_v52, 0.0  ;;  %v3807_v1 = vadd.f32 %v3181_v35, %v11199_v55 }
 0x35c   : > { %8386 = vpow2.f32 %v4129_v2  ;;  %v4062_v59 = vsub.f32 0.0, %v3998_v25  ;;  %v3936_v28 = vsub.f32 %v3808_v6, %v3872_v40  ;;  %v12457_v2 = vld [vmem:[#allocation38_spill] sm:$0xff] }
 0x35d   : > { %8388 = vpow2.f32 %v4127_v3  ;;  %v4061_v22 = vsub.f32 0.0, %v3997_v54  ;;  %v3935_v45 = vsub.f32 %v3807_v1, %v3871_v49  ;;  %v7313_v39 = vpop.f32.mrb[186].mxu0  ;;  %v11270_v51 = vpop.f32.mrb[136].mxu1  ;;  %v12459_v49 = vld [vmem:[#allocation39_spill] sm:$0xff] }
 0x35e   : > { %12455 = vst [vmem:[#allocation117_spill] sm:$0xff] %v11270_v51  ;;  %v8379_v14 = vpop.eup %8378  ;;  %v4133_v20 = vmul.f32 1.442695, %v4062_v59  ;;  %v4000_v63 = vmax.f32 %v3936_v28, 0.0  ;;  %v3810_v55 = vadd.f32 %v7313_v39, %v11205_v10  ;;  %v3191_v62 = vpop.f32.mrb[187].mxu0  ;;  %v3876_v10 = vmul.f32 2.0, %v11034_v26 }
 0x35f   : > { %v11274_v34 = vpop.f32.mrb[137].mxu1  ;;  %v8381_v52 = vpop.eup %8380  ;;  %v4131_v24 = vmul.f32 1.442695, %v4061_v22  ;;  %v3999_v40 = vmax.f32 %v3935_v45, 0.0  ;;  %v3809_v18 = vadd.f32 %v3191_v62, %v11207_v4  ;;  %v11278_v25 = vmul.f32 %v8379_v14, %v12457_v2  ;;  %v12511_v51 = vld [vmem:[#allocation97_spill] sm:$0xff] }
 0x360   : > { %12456 = vst [vmem:[#allocation118_spill] sm:$0xff] %v11274_v34  ;;  %8390 = vpow2.f32 %v4133_v20  ;;  %v4064_v6 = vsub.f32 0.0, %v4000_v63  ;;  %v3938_v35 = vsub.f32 %v3810_v55, %v3874_v44  ;;  %v11281_v7 = vmul.f32 %v8381_v52, %v12459_v49  ;;  %v11283_v3 = vpop.xlane.xlu1 %2208  ;;  %v11290_v14 = vpop.xlane.xlu0 %2205  ;;  %v12461_v55 = vld [vmem:[#allocation40_spill] sm:$0xff]  ;;  %v12510_v34 = vld [vmem:[#allocation98_spill] sm:$0xff] }
 0x361   : > { %12458 = vst [vmem:[#allocation38_spill] sm:$0xff] %v11278_v25  ;;  %8392 = vpow2.f32 %v4131_v24  ;;  %v4063_v54 = vsub.f32 0.0, %v3999_v40  ;;  %v3937_v1 = vsub.f32 %v3809_v18, %v3873_v50  ;;  %v7316_v59 = vpop.f32.mrb[188].mxu0  ;;  %4313 = vmax.xlane.f32.xlu1 %v11278_v25  ;;  %v3875_v28 = vmul.f32 2.0, %v11038_v21  ;;  %v12463_v24 = vld [vmem:[#allocation41_spill] sm:$0xff] }
 0x362   : > { %12460 = vst [vmem:[#allocation39_spill] sm:$0xff] %v11281_v7  ;;  %v8383_v4 = vpop.eup %8382  ;;  %v4137_v22 = vmul.f32 1.442695, %v4064_v6  ;;  %v4002_v45 = vmax.f32 %v3938_v35, 0.0  ;;  %v3812_v44 = vadd.f32 %v7316_v59, %v11213_v38  ;;  %v3201_v39 = vpop.f32.mrb[189].mxu0  ;;  %4311 = vmax.xlane.f32.xlu0 %v11281_v7  ;;  %v3878_v18 = vmul.f32 2.0, %v11042_v36 }
 0x363   : > { %v8385_v20 = vpop.eup %8384  ;;  %v4135_v26 = vmul.f32 1.442695, %v4063_v54  ;;  %v4001_v63 = vmax.f32 %v3937_v1, 0.0  ;;  %v3811_v50 = vadd.f32 %v3201_v39, %v11215_v8  ;;  %v11294_v62 = vmul.f32 %v8383_v4, %v12461_v55  ;;  %v12467_v39 = vld [vmem:[#allocation43_spill] sm:$0xff] }
 0x364   : > { %8394 = vpow2.f32 %v4137_v22  ;;  %v4066_v52 = vsub.f32 0.0, %v4002_v45  ;;  %v3940_v21 = vsub.f32 %v3812_v44, %v3876_v10  ;;  %v11297_v40 = vmul.f32 %v8385_v20, %v12463_v24  ;;  %v11299_v38 = vpop.f32.mrb[138].mxu1  ;;  %v11308_v22 = vpop.xlane.xlu1 %2166 }
 0x365   : > { %12462 = vst [vmem:[#allocation40_spill] sm:$0xff] %v11294_v62  ;;  %12465 = vst [vmem:[#allocation119_spill] sm:$0xff] %v11299_v38  ;;  %8396 = vpow2.f32 %v4135_v26  ;;  %v4065_v2 = vsub.f32 0.0, %v4001_v63  ;;  %v3939_v6 = vsub.f32 %v3811_v50, %v3875_v28  ;;  %v7319_v35 = vpop.f32.mrb[190].mxu0  ;;  %4317 = vmax.xlane.f32.xlu1 %v11294_v62  ;;  %v11303_v8 = vpop.f32.mrb[139].mxu1  ;;  %v3877_v54 = vmul.f32 2.0, %v11046_v48 }
 0x366   : > { %12464 = vst [vmem:[#allocation41_spill] sm:$0xff] %v11297_v40  ;;  %12466 = vst [vmem:[#allocation120_spill] sm:$0xff] %v11303_v8  ;;  %v8387_v49 = vpop.eup %8386  ;;  %v4141_v1 = vmul.f32 1.442695, %v4066_v52  ;;  %v4004_v10 = vmax.f32 %v3940_v21, 0.0  ;;  %v3814_v59 = vadd.f32 %v7319_v35, %v11229_v47  ;;  %v3211_v4 = vpop.f32.mrb[191].mxu0  ;;  %4315 = vmax.xlane.f32.xlu0 %v11297_v40 }
 0x367   : > { %v8389_v36 = vpop.eup %8388  ;;  %v4139_v45 = vmul.f32 1.442695, %v4065_v2  ;;  %v4003_v28 = vmax.f32 %v3939_v6, 0.0  ;;  %v3813_v44 = vadd.f32 %v3211_v4, %v11239_v17  ;;  %v11312_v20 = vmul.f32 %v8387_v49, %v12467_v39  ;;  %v12469_v63 = vld [vmem:[#allocation44_spill] sm:$0xff]  ;;  %v11317_v47 = vpop.xlane.xlu0 %2163  ;;  %v12475_v4 = vld [vmem:[#allocation46_spill] sm:$0xff] }
 0x368   : > { %8398 = vpow2.f32 %v4141_v1  ;;  %v4068_v26 = vsub.f32 0.0, %v4004_v10  ;;  %v3942_v48 = vsub.f32 %v3814_v59, %v3878_v18  ;;  %v11315_v50 = vmul.f32 %v8389_v36, %v12469_v63  ;;  %v11319_v55 = vpop.f32.mrb[140].mxu1  ;;  %v12473_v1 = vld [vmem:[#allocation45_spill] sm:$0xff] }
 0x369   : > { %12468 = vst [vmem:[#allocation43_spill] sm:$0xff] %v11312_v20  ;;  %12471 = vst [vmem:[#allocation121_spill] sm:$0xff] %v11319_v55  ;;  %8400 = vpow2.f32 %v4139_v45  ;;  %v4067_v52 = vsub.f32 0.0, %v4003_v28  ;;  %v3941_v21 = vsub.f32 %v3813_v44, %v3877_v54  ;;  %4321 = vmax.xlane.f32.xlu1 %v11312_v20  ;;  %v11322_v24 = vpop.f32.mrb[141].mxu1  ;;  %v11331_v54 = vpop.xlane.xlu1 %2214  ;;  %v12503_v20 = vld [vmem:[#allocation93_spill] sm:$0xff] }
 0x36a   : > { %12470 = vst [vmem:[#allocation44_spill] sm:$0xff] %v11315_v50  ;;  %12472 = vst [vmem:[#allocation122_spill] sm:$0xff] %v11322_v24  ;;  %v8391_v17 = vpop.eup %8390  ;;  %v4145_v2 = vmul.f32 1.442695, %v4068_v26  ;;  %v4006_v6 = vmax.f32 %v3942_v48, 0.0  ;;  %4319 = vmax.xlane.f32.xlu0 %v11315_v50  ;;  %v11448_v40 = vmul.f32 2.0, %v12503_v20 }
 0x36b   : > { %v8393_v18 = vpop.eup %8392  ;;  %v4143_v35 = vmul.f32 1.442695, %v4067_v52  ;;  %v4005_v49 = vmax.f32 %v3941_v21, 0.0  ;;  %v11326_v10 = vmul.f32 %v8391_v17, %v12473_v1  ;;  %v11339_v48 = vpop.xlane.xlu0 %2211  ;;  %v12480_v21 = vld [vmem:[#allocation47_spill] sm:$0xff]  ;;  %v12484_v1 = vld [vmem:[#allocation49_spill] sm:$0xff]  ;;  %v12508_v24 = vld [vmem:[#allocation96_spill] sm:$0xff] }
 0x36c   : > { %8402 = vpow2.f32 %v4145_v2  ;;  %v4070_v59 = vsub.f32 0.0, %v4006_v6  ;;  %v11329_v36 = vmul.f32 %v8393_v18, %v12475_v4  ;;  %v11333_v45 = vpop.f32.mrb[142].mxu1  ;;  %12479 = vst [vmem:[#allocation125_spill] sm:$0xff] %v11339_v48  ;;  %v12482_v2 = vld [vmem:[#allocation48_spill] sm:$0xff]  ;;  %v12486_v4 = vld [vmem:[#allocation50_spill] sm:$0xff] }
 0x36d   : > { %12474 = vst [vmem:[#allocation45_spill] sm:$0xff] %v11326_v10  ;;  %12477 = vst [vmem:[#allocation123_spill] sm:$0xff] %v11333_v45  ;;  %8404 = vpow2.f32 %v4143_v35  ;;  %v4069_v28 = vsub.f32 0.0, %v4005_v49  ;;  %4325 = vmax.xlane.f32.xlu1 %v11326_v10  ;;  %v11336_v44 = vpop.f32.mrb[143].mxu1  ;;  %v11349_v35 = vpop.xlane.xlu1 %2172  ;;  %v12507_v45 = vld [vmem:[#allocation94_spill] sm:$0xff] }
 0x36e   : > { %12476 = vst [vmem:[#allocation46_spill] sm:$0xff] %v11329_v36  ;;  %12478 = vst [vmem:[#allocation124_spill] sm:$0xff] %v11336_v44  ;;  %v8395_v39 = vpop.eup %8394  ;;  %v4149_v26 = vmul.f32 1.442695, %v4070_v59  ;;  %4323 = vmax.xlane.f32.xlu0 %v11329_v36  ;;  %v12509_v20 = vld [vmem:[#allocation10_spill] sm:$0xff] }
 0x36f   : > { %v8397_v63 = vpop.eup %8396  ;;  %v4147_v52 = vmul.f32 1.442695, %v4069_v28  ;;  %v11342_v17 = vmul.f32 %v8395_v39, %v12480_v21  ;;  %v11357_v39 = vpop.xlane.xlu0 %2169 }
 0x370   : > { %8406 = vpow2.f32 %v4149_v26  ;;  %v11345_v6 = vmul.f32 %v8397_v63, %v12482_v2  ;;  %v12490_v2 = vld [vmem:[#allocation52_spill] sm:$0xff] }
 0x371   : > { %12481 = vst [vmem:[#allocation47_spill] sm:$0xff] %v11342_v17  ;;  %8408 = vpow2.f32 %v4147_v52  ;;  %4329 = vmax.xlane.f32.xlu1 %v11342_v17  ;;  %v12488_v52 = vld [vmem:[#allocation51_spill] sm:$0xff]  ;;  %v11367_v17 = vpop.xlane.xlu1 %2220 }
 0x372   : > { %12483 = vst [vmem:[#allocation48_spill] sm:$0xff] %v11345_v6  ;;  %v8399_v18 = vpop.eup %8398  ;;  %4327 = vmax.xlane.f32.xlu0 %v11345_v6  ;;  %12492 = vst [vmem:[#allocation126_spill] sm:$0xff] %v11367_v17 }
 0x373   : > { %v8401_v49 = vpop.eup %8400  ;;  %v11352_v59 = vmul.f32 %v8399_v18, %v12484_v1 }
 0x374   : > { %v11355_v28 = vmul.f32 %v8401_v49, %v12486_v4  ;;  %v11371_v49 = vpop.xlane.xlu0 %2217  ;;  %v12494_v4 = vld [vmem:[#allocation53_spill] sm:$0xff] }
 0x375   : > { %12485 = vst [vmem:[#allocation49_spill] sm:$0xff] %v11352_v59  ;;  %4333 = vmax.xlane.f32.xlu1 %v11352_v59  ;;  %12493 = vst [vmem:[#allocation127_spill] sm:$0xff] %v11371_v49 }
 0x376   : > { %12487 = vst [vmem:[#allocation50_spill] sm:$0xff] %v11355_v28  ;;  %v8403_v26 = vpop.eup %8402  ;;  %4331 = vmax.xlane.f32.xlu0 %v11355_v28  ;;  %v12496_v28 = vld [vmem:[#allocation54_spill] sm:$0xff] }
 0x377   : > { %v8405_v63 = vpop.eup %8404  ;;  %v11362_v21 = vmul.f32 %v8403_v26, %v12488_v52  ;;  %v11381_v26 = vpop.xlane.xlu1 %2178  ;;  %v3896_v52 = vmul.f32 2.0, %v11101_v19  ;;  %v11404_v19 = vmul.f32 2.0, %v11136_v12  ;;  %v11424_v12 = vmul.f32 2.0, %v11155_v5  ;;  %v12502_v5 = vld [vmem:[#allocation17_spill] sm:$0xff] }
 0x378   : > { %v11365_v6 = vmul.f32 %v8405_v63, %v12490_v2  ;;  %v11383_v63 = vpop.xlane.xlu0 %2175  ;;  %v3880_v2 = vmul.f32 2.0, %v11097_v46  ;;  %v11419_v46 = vmul.f32 2.0, %v11143_v33  ;;  %v11445_v50 = vmul.f32 2.0, %v12502_v5 }
 0x379   : > { %12489 = vst [vmem:[#allocation51_spill] sm:$0xff] %v11362_v21  ;;  %4337 = vmax.xlane.f32.xlu1 %v11362_v21  ;;  %v12501_v21 = vld [vmem:[#allocation16_spill] sm:$0xff]  ;;  %v11461_v5 = vmul.f32 2.0, %v12508_v24  ;;  %v12513_v24 = vld [vmem:[#allocation101_spill] sm:$0xff] }
 0x37a   : > { %12491 = vst [vmem:[#allocation52_spill] sm:$0xff] %v11365_v6  ;;  %v8407_v18 = vpop.eup %8406  ;;  %4335 = vmax.xlane.f32.xlu0 %v11365_v6  ;;  %v3895_v6 = vmul.f32 2.0, %v11110_v43  ;;  %v11407_v43 = vmul.f32 2.0, %v11126_v15  ;;  %v11427_v15 = vmul.f32 2.0, %v11159_v41  ;;  %v11442_v10 = vmul.f32 2.0, %v12501_v21 }
 0x37b   : > { %v8409_v1 = vpop.eup %8408  ;;  %v11374_v59 = vmul.f32 %v8407_v18, %v12494_v4  ;;  %v11389_v18 = vmul.f32 2.0, %v11117_v31  ;;  %v11395_v4 = vpop.xlane.xlu1 %2226  ;;  %v11410_v31 = vmul.f32 2.0, %v11145_v42  ;;  %v11430_v42 = vmul.f32 2.0, %v11151_v9  ;;  %v12504_v9 = vld [vmem:[#allocation91_spill] sm:$0xff] }
 0x37c   : > { %v11377_v36 = vmul.f32 %v8409_v1, %v12496_v28  ;;  %v3879_v28 = vmul.f32 2.0, %v11103_v30  ;;  %v11393_v1 = vmul.f32 2.0, %v11119_v57  ;;  %12498 = vst [vmem:[#allocation128_spill] sm:$0xff] %v11395_v4  ;;  %v11413_v57 = vmul.f32 2.0, %v11147_v61 }
 0x37d   : > { %12495 = vst [vmem:[#allocation53_spill] sm:$0xff] %v11374_v59  ;;  %4341 = vmax.xlane.f32.xlu1 %v11374_v59  ;;  %v11401_v59 = vmul.f32 2.0, %v11133_v29  ;;  %v11416_v30 = vmul.f32 2.0, %v11139_v0  ;;  %v11421_v29 = vpop.xlane.xlu0 %2223  ;;  %v11433_v61 = vmul.f32 2.0, %v11153_v16  ;;  %v11436_v0 = vmul.f32 2.0, %v11167_v23  ;;  %v12505_v16 = vld [vmem:[#allocation92_spill] sm:$0xff] }
 0x37e   : > { %12497 = vst [vmem:[#allocation54_spill] sm:$0xff] %v11377_v36  ;;  %4339 = vmax.xlane.f32.xlu0 %v11377_v36  ;;  %v11398_v36 = vmul.f32 2.0, %v11124_v53  ;;  %12499 = vst [vmem:[#allocation129_spill] sm:$0xff] %v11421_v29  ;;  %v12500_v53 = vld [vmem:[#allocation90_spill] sm:$0xff]  ;;  %v11451_v62 = vmul.f32 2.0, %v12504_v9  ;;  %v11454_v7 = vmul.f32 2.0, %v12505_v16 }
 0x37f   : > { %v11439_v33 = vmul.f32 2.0, %v12500_v53  ;;  %v12506_v23 = vld [vmem:[#allocation11_spill] sm:$0xff]  ;;  %v11458_v21 = vmul.f32 2.0, %v12507_v45  ;;  %v11465_v9 = vpop.xlane.xlu1 %2184  ;;  %v11468_v16 = vmul.f32 2.0, %v12510_v34  ;;  %v11478_v4 = vmul.f32 2.0, %v12513_v24  ;;  %v12516_v24 = vld [vmem:[#allocation13_spill] sm:$0xff] }
 0x380   : > { %v12512_v29 = vld [vmem:[#allocation99_spill] sm:$0xff]  ;;  %v11483_v34 = vmul.f32 2.0, %v12514_v13 }
 0x381   : > { %v11475_v27 = vmul.f32 2.0, %v12512_v29 }
 0x388   : > { %v7354_v41 = vpop.f32.mrb[144].mxu1 }
 0x389   : > { %v3816_v25 = vadd.f32 %v7354_v41, %v12506_v23  ;;  %v7410_v53 = vpop.f32.mrb[192].mxu0  ;;  %v3334_v44 = vpop.f32.mrb[145].mxu1  ;;  %v11471_v41 = vmul.f32 2.0, %v12511_v51 }
 0x38a   : > { %v3832_v55 = vadd.f32 %v7410_v53, %v11263_v32  ;;  %v3815_v8 = vadd.f32 %v3334_v44, %v12509_v20  ;;  %v3527_v38 = vpop.f32.mrb[193].mxu0  ;;  %v11480_v20 = vpop.xlane.xlu0 %2181 }
 0x38b   : > { %v3944_v23 = vsub.f32 %v3816_v25, %v3880_v2  ;;  %v3831_v45 = vadd.f32 %v3527_v38, %v11267_v56 }
 0x38c   : > { %v3960_v32 = vsub.f32 %v3832_v55, %v3896_v52  ;;  %v3943_v44 = vsub.f32 %v3815_v8, %v3879_v28  ;;  %v7357_v53 = vpop.f32.mrb[146].mxu1 }
 0x38d   : > { %v4008_v49 = vmax.f32 %v3944_v23, 0.0  ;;  %v3959_v51 = vsub.f32 %v3831_v45, %v3895_v6  ;;  %v3818_v25 = vadd.f32 %v7357_v53, %v12515_v37  ;;  %v7413_v2 = vpop.f32.mrb[194].mxu0  ;;  %v3344_v56 = vpop.f32.mrb[147].mxu1 }
 0x38e   : > { %v4024_v38 = vmax.f32 %v3960_v32, 0.0  ;;  %v4007_v29 = vmax.f32 %v3943_v44, 0.0  ;;  %v3834_v17 = vadd.f32 %v7413_v2, %v11308_v22  ;;  %v3817_v58 = vadd.f32 %v3344_v56, %v12516_v24  ;;  %v3537_v55 = vpop.f32.mrb[195].mxu0  ;;  %v11492_v45 = vpop.xlane.xlu1 %2232 }
 0x38f   : > { %v4072_v8 = vsub.f32 0.0, %v4008_v49  ;;  %v4023_v52 = vmax.f32 %v3959_v51, 0.0  ;;  %v3946_v28 = vsub.f32 %v3818_v25, %v11393_v1  ;;  %v3833_v13 = vadd.f32 %v3537_v55, %v11317_v47  ;;  %v12517_v55 = vld [vmem:[#allocation14_spill] sm:$0xff] }
 0x390   : > { %v4088_v48 = vsub.f32 0.0, %v4024_v38  ;;  %v4071_v23 = vsub.f32 0.0, %v4007_v29  ;;  %v3962_v6 = vsub.f32 %v3834_v17, %v11389_v18  ;;  %v3945_v37 = vsub.f32 %v3817_v58, %v11407_v43  ;;  %v7360_v32 = vpop.f32.mrb[148].mxu1  ;;  %v11495_v38 = vpop.xlane.xlu0 %2229 }
 0x391   : > { %v4153_v44 = vmul.f32 1.442695, %v4072_v8  ;;  %v4087_v22 = vsub.f32 0.0, %v4023_v52  ;;  %v4010_v53 = vmax.f32 %v3946_v28, 0.0  ;;  %v3961_v2 = vsub.f32 %v3833_v13, %v11398_v36  ;;  %v7416_v49 = vpop.f32.mrb[196].mxu0  ;;  %v3354_v51 = vpop.f32.mrb[149].mxu1 }
 0x392   : > { %v4185_v56 = vmul.f32 1.442695, %v4088_v48  ;;  %v4151_v1 = vmul.f32 1.442695, %v4071_v23  ;;  %v4026_v25 = vmax.f32 %v3962_v6, 0.0  ;;  %v4009_v47 = vmax.f32 %v3945_v37, 0.0 }
 0x393   : > { %8410 = vpow2.f32 %v4153_v44  ;;  %v4183_v17 = vmul.f32 1.442695, %v4087_v22  ;;  %v4074_v18 = vsub.f32 0.0, %v4010_v53  ;;  %v4025_v58 = vmax.f32 %v3961_v2, 0.0  ;;  %v3547_v43 = vpop.f32.mrb[197].mxu0  ;;  %v11500_v22 = vpop.xlane.xlu1 %2190 }
 0x394   : > { %8412 = vpow2.f32 %v4185_v56  ;;  %v4090_v29 = vsub.f32 0.0, %v4026_v25  ;;  %v4073_v24 = vsub.f32 0.0, %v4009_v47  ;;  %v3820_v8 = vadd.f32 %v7360_v32, %v12517_v55  ;;  %v7363_v52 = vpop.f32.mrb[150].mxu1  ;;  %v12518_v56 = vld [vmem:[#allocation15_spill] sm:$0xff] }
 0x395   : > { %8414 = vpow2.f32 %v4151_v1  ;;  %v4157_v36 = vmul.f32 1.442695, %v4074_v18  ;;  %v4089_v28 = vsub.f32 0.0, %v4025_v58  ;;  %v3836_v48 = vadd.f32 %v7416_v49, %v11349_v35  ;;  %v7419_v13 = vpop.f32.mrb[198].mxu0  ;;  %v3364_v23 = vpop.f32.mrb[151].mxu1  ;;  %v12519_v49 = vld [vmem:[#allocation95_spill] sm:$0xff] }
 0x396   : > { %8416 = vpow2.f32 %v4183_v17  ;;  %v4189_v6 = vmul.f32 1.442695, %v4090_v29  ;;  %v4155_v37 = vmul.f32 1.442695, %v4073_v24  ;;  %v3948_v44 = vsub.f32 %v3820_v8, %v11416_v30  ;;  %v3557_v53 = vpop.f32.mrb[199].mxu0  ;;  %v11506_v17 = vpop.xlane.xlu0 %2187 }
 0x397   : > { %8418 = vpow2.f32 %v4157_v36  ;;  %v4187_v2 = vmul.f32 1.442695, %v4089_v28  ;;  %v3964_v32 = vsub.f32 %v3836_v48, %v11401_v59  ;;  %v3819_v1 = vadd.f32 %v3354_v51, %v12518_v56  ;;  %v12520_v28 = vld [vmem:[#allocation100_spill] sm:$0xff] }
 0x398   : > { %8420 = vpow2.f32 %v4189_v6  ;;  %v4012_v25 = vmax.f32 %v3948_v44, 0.0  ;;  %v3835_v35 = vadd.f32 %v3547_v43, %v11357_v39  ;;  %v3822_v47 = vadd.f32 %v7363_v52, %v12519_v49  ;;  %v7366_v18 = vpop.f32.mrb[152].mxu1 }
 0x399   : > { %8422 = vpow2.f32 %v4155_v37  ;;  %v4028_v30 = vmax.f32 %v3964_v32, 0.0  ;;  %v3947_v58 = vsub.f32 %v3819_v1, %v11419_v46  ;;  %v3838_v29 = vadd.f32 %v7419_v13, %v11381_v26  ;;  %v7422_v24 = vpop.f32.mrb[200].mxu0  ;;  %v3374_v55 = vpop.f32.mrb[153].mxu1 }
 0x39a   : > { %8424 = vpow2.f32 %v4187_v2  ;;  %v4076_v59 = vsub.f32 0.0, %v4012_v25  ;;  %v3963_v51 = vsub.f32 %v3835_v35, %v11404_v19  ;;  %v3950_v8 = vsub.f32 %v3822_v47, %v11430_v42  ;;  %v3567_v39 = vpop.f32.mrb[201].mxu0  ;;  %v11515_v13 = vpop.xlane.xlu1 %2238 }
 0x39b   : > { %v4092_v43 = vsub.f32 0.0, %v4028_v30  ;;  %v4011_v52 = vmax.f32 %v3947_v58, 0.0  ;;  %v3966_v36 = vsub.f32 %v3838_v29, %v11410_v31  ;;  %v3821_v48 = vadd.f32 %v3364_v23, %v12520_v28 }
 0x39c   : > { %v4161_v6 = vmul.f32 1.442695, %v4076_v59  ;;  %v4027_v37 = vmax.f32 %v3963_v51, 0.0  ;;  %v4014_v46 = vmax.f32 %v3950_v8, 0.0  ;;  %v3837_v26 = vadd.f32 %v3557_v53, %v11383_v63  ;;  %v7369_v44 = vpop.f32.mrb[154].mxu1  ;;  %v11523_v63 = vpop.xlane.xlu0 %2235 }
 0x39d   : > { %v11517_v2 = vpop.eup %8410  ;;  %v4193_v19 = vmul.f32 1.442695, %v4092_v43  ;;  %v4075_v32 = vsub.f32 0.0, %v4011_v52  ;;  %v4030_v42 = vmax.f32 %v3966_v36, 0.0  ;;  %v3949_v56 = vsub.f32 %v3821_v48, %v11433_v61  ;;  %v7425_v1 = vpop.f32.mrb[202].mxu0  ;;  %v12521_v43 = vld [vmem:[#allocation103_spill] sm:$0xff] }
 0x39e   : > { %v3384_v25 = vpop.f32.mrb[155].mxu1  ;;  %v11520_v31 = vpop.eup %8412  ;;  %8426 = vpow2.f32 %v4161_v6  ;;  %v4091_v23 = vsub.f32 0.0, %v4027_v37  ;;  %v4078_v35 = vsub.f32 0.0, %v4014_v46  ;;  %v3965_v49 = vsub.f32 %v3837_v26, %v11413_v57 }
 0x39f   : > { %v3577_v53 = vpop.f32.mrb[203].mxu0  ;;  %v11525_v47 = vpop.eup %8414  ;;  %8428 = vpow2.f32 %v4193_v19  ;;  %v4159_v30 = vmul.f32 1.442695, %v4075_v32  ;;  %v4094_v58 = vsub.f32 0.0, %v4030_v42  ;;  %v4013_v29 = vmax.f32 %v3949_v56, 0.0  ;;  %v12522_v42 = vld [vmem:[#allocation104_spill] sm:$0xff] }
 0x3a0   : > { %v11527_v59 = vpop.eup %8416  ;;  %v4191_v61 = vmul.f32 1.442695, %v4091_v23  ;;  %v4165_v51 = vmul.f32 1.442695, %v4078_v35  ;;  %v4029_v8 = vmax.f32 %v3965_v49, 0.0  ;;  %v3824_v52 = vadd.f32 %v7366_v18, %v12521_v43  ;;  %v11530_v36 = vpop.f32.mrb[156].mxu1 }
 0x3a1   : > { %v11532_v28 = vpop.eup %8418  ;;  %8430 = vpow2.f32 %v4159_v30  ;;  %v4197_v57 = vmul.f32 1.442695, %v4094_v58  ;;  %v4077_v48 = vsub.f32 0.0, %v4013_v29  ;;  %v3840_v6 = vadd.f32 %v7422_v24, %v11465_v9  ;;  %v7428_v37 = vpop.f32.mrb[204].mxu0 }
 0x3a2   : > { %v11535_v46 = vpop.f32.mrb[157].mxu1  ;;  %v11537_v26 = vpop.eup %8420  ;;  %8432 = vpow2.f32 %v4191_v61  ;;  %v4093_v19 = vsub.f32 0.0, %v4029_v8  ;;  %v3952_v32 = vsub.f32 %v3824_v52, %v11442_v10  ;;  %v3823_v18 = vadd.f32 %v3374_v55, %v12522_v42  ;;  %v12524_v42 = vld [vmem:[#allocation106_spill] sm:$0xff] }
 0x3a3   : > { %v2197_v56 = vpop.xlane.xlu1 %2196  ;;  %v11541_v23 = vpop.f32.mrb[205].mxu0  ;;  %8434 = vpow2.f32 %v4165_v51  ;;  %v4163_v49 = vmul.f32 1.442695, %v4077_v48  ;;  %v3968_v9 = vsub.f32 %v3840_v6, %v11424_v12  ;;  %v3839_v24 = vadd.f32 %v3567_v39, %v11480_v20  ;;  %v12523_v51 = vld [vmem:[#allocation105_spill] sm:$0xff] }
 0x3a4   : > { %v11543_v35 = vpop.eup %8422  ;;  %8436 = vpow2.f32 %v4197_v57  ;;  %v4195_v58 = vmul.f32 1.442695, %v4093_v19  ;;  %v4016_v29 = vmax.f32 %v3952_v32, 0.0  ;;  %v3951_v10 = vsub.f32 %v3823_v18, %v11445_v50  ;;  %v2194_v61 = vpop.xlane.xlu0 %2193 }
 0x3a5   : > { %v11547_v30 = vpop.eup %8424  ;;  %v11550_v55 = vpop.f32.mrb[158].mxu1  ;;  %8438 = vpow2.f32 %v4163_v49  ;;  %v4032_v8 = vmax.f32 %v3968_v9, 0.0  ;;  %v3967_v43 = vsub.f32 %v3839_v24, %v11427_v15  ;;  %v3826_v52 = vadd.f32 %v7369_v44, %v12523_v51 }
 0x3a6   : > { %v11554_v48 = vpop.f32.mrb[206].mxu0  ;;  %v11556_v12 = vpop.f32.mrb[159].mxu1  ;;  %8440 = vpow2.f32 %v4195_v58  ;;  %v4080_v20 = vsub.f32 0.0, %v4016_v29  ;;  %v4015_v39 = vmax.f32 %v3951_v10, 0.0  ;;  %v3842_v57 = vadd.f32 %v7425_v1, %v11500_v22 }
 0x3a7   : > { %v11559_v6 = vpop.f32.mrb[207].mxu0  ;;  %v4096_v50 = vsub.f32 0.0, %v4032_v8  ;;  %v4031_v19 = vmax.f32 %v3967_v43, 0.0  ;;  %v3954_v32 = vsub.f32 %v3826_v52, %v11451_v62  ;;  %v3825_v18 = vadd.f32 %v3384_v25, %v12524_v42  ;;  %v11567_v58 = vpop.xlane.xlu1 %2244 }
 0x3a8   : > { %v11563_v15 = vpop.eup %8426  ;;  %v4169_v44 = vmul.f32 1.442695, %v4080_v20  ;;  %v4079_v49 = vsub.f32 0.0, %v4015_v39  ;;  %v3970_v9 = vsub.f32 %v3842_v57, %v11436_v0  ;;  %v3841_v24 = vadd.f32 %v3577_v53, %v11506_v17  ;;  %v11575_v53 = vpop.xlane.xlu0 %2241 }
 0x3a9   : > { %v11569_v29 = vpop.eup %8428  ;;  %v4201_v22 = vmul.f32 1.442695, %v4096_v50  ;;  %v4095_v1 = vsub.f32 0.0, %v4031_v19  ;;  %v4018_v10 = vmax.f32 %v3954_v32, 0.0  ;;  %v3953_v8 = vsub.f32 %v3825_v18, %v11454_v7 }
 0x3aa   : > { %8442 = vpow2.f32 %v4169_v44  ;;  %v4167_v62 = vmul.f32 1.442695, %v4079_v49  ;;  %v4034_v25 = vmax.f32 %v3970_v9, 0.0  ;;  %v3969_v43 = vsub.f32 %v3841_v24, %v11439_v33  ;;  %v12525_v33 = vld [vmem:[#allocation55_spill] sm:$0xff] }
 0x3ab   : > { %v11573_v51 = vpop.eup %8430  ;;  %8444 = vpow2.f32 %v4201_v22  ;;  %v4199_v0 = vmul.f32 1.442695, %v4095_v1  ;;  %v4082_v52 = vsub.f32 0.0, %v4018_v10  ;;  %v4017_v17 = vmax.f32 %v3953_v8, 0.0  ;;  %v12526_v24 = vld [vmem:[#allocation107_spill] sm:$0xff]  ;;  %v2203_v1 = vpop.xlane.xlu1 %2202 }
 0x3ac   : > { %v11577_v20 = vpop.eup %8432  ;;  %8446 = vpow2.f32 %v4167_v62  ;;  %v4098_v39 = vsub.f32 0.0, %v4034_v25  ;;  %v4033_v57 = vmax.f32 %v3969_v43, 0.0  ;;  %v3844_v50 = vadd.f32 %v7428_v37, %v2197_v56 }
 0x3ad   : > { %v11579_v7 = vpop.eup %8434  ;;  %8448 = vpow2.f32 %v4199_v0  ;;  %v4173_v19 = vmul.f32 1.442695, %v4082_v52  ;;  %v4081_v32 = vsub.f32 0.0, %v4017_v17  ;;  %v11583_v42 = vmul.f32 %v11517_v2, %v12525_v33  ;;  %v12527_v2 = vld [vmem:[#allocation56_spill] sm:$0xff]  ;;  %v12528_v0 = vld [vmem:[#allocation110_spill] sm:$0xff] }
 0x3ae   : > { %v11585_v18 = vpop.eup %8436  ;;  %v4205_v44 = vmul.f32 1.442695, %v4098_v39  ;;  %v4097_v49 = vsub.f32 0.0, %v4033_v57  ;;  %v3972_v9 = vsub.f32 %v3844_v50, %v11448_v40  ;;  %v3828_v22 = vadd.f32 %v11530_v36, %v12526_v24  ;;  %v12529_v39 = vld [vmem:[#allocation34_spill] sm:$0xff] }
 0x3af   : > { %v11590_v37 = vpop.eup %8438  ;;  %8450 = vpow2.f32 %v4173_v19  ;;  %v4171_v56 = vmul.f32 1.442695, %v4081_v32  ;;  %4345 = vmax.xlane.f32.xlu1 %v11583_v42  ;;  %v3843_v10 = vadd.f32 %v11541_v23, %v2194_v61  ;;  %v11596_v8 = vmul.f32 %v11525_v47, %v12527_v2  ;;  %v2200_v61 = vpop.xlane.xlu0 %2199 }
 0x3b0   : > { %v11598_v62 = vpop.eup %8440  ;;  %8452 = vpow2.f32 %v4205_v44  ;;  %v4203_v40 = vmul.f32 1.442695, %v4097_v49  ;;  %v4036_v25 = vmax.f32 %v3972_v9, 0.0  ;;  %v3956_v36 = vsub.f32 %v3828_v22, %v11461_v5  ;;  %v12530_v44 = vld [vmem:[#allocation35_spill] sm:$0xff] }
 0x3b1   : > { %8454 = vpow2.f32 %v4171_v56  ;;  %v3971_v43 = vsub.f32 %v3843_v10, %v11458_v21  ;;  %4343 = vmax.xlane.f32.xlu0 %v11596_v8  ;;  %v3827_v52 = vadd.f32 %v11535_v46, %v12528_v0  ;;  %v3846_v23 = vadd.f32 %v11554_v48, %v2203_v1 }
 0x3b2   : > { %8456 = vpow2.f32 %v4203_v40  ;;  %v4100_v47 = vsub.f32 0.0, %v4036_v25  ;;  %v4020_v17 = vmax.f32 %v3956_v36, 0.0  ;;  %v11608_v57 = vmul.f32 %v11520_v31, %v12529_v39 }
 0x3b3   : > { %v4035_v50 = vmax.f32 %v3971_v43, 0.0  ;;  %v3955_v5 = vsub.f32 %v3827_v52, %v11471_v41  ;;  %v3974_v21 = vsub.f32 %v3846_v23, %v11468_v16  ;;  %v3830_v19 = vadd.f32 %v11550_v55, %v11245_v11 }
 0x3b4   : > { %v8443_v32 = vpop.eup %8442  ;;  %v4209_v46 = vmul.f32 1.442695, %v4100_v47  ;;  %v4084_v33 = vsub.f32 0.0, %v4020_v17  ;;  %4377 = vmax.xlane.f32.xlu1 %v11608_v57  ;;  %v3845_v48 = vadd.f32 %v11559_v6, %v2200_v61  ;;  %v11618_v49 = vmul.f32 %v11527_v59, %v12530_v44  ;;  %v12532_v61 = vld [vmem:[#allocation58_spill] sm:$0xff]  ;;  %v12533_v17 = vld [vmem:[#allocation36_spill] sm:$0xff] }
 0x3b5   : > { %v8445_v31 = vpop.eup %8444  ;;  %v4099_v9 = vsub.f32 0.0, %v4035_v50  ;;  %v4019_v24 = vmax.f32 %v3955_v5, 0.0  ;;  %v4038_v41 = vmax.f32 %v3974_v21, 0.0  ;;  %v3958_v16 = vsub.f32 %v3830_v19, %v11478_v4  ;;  %v12531_v4 = vld [vmem:[#allocation57_spill] sm:$0xff]  ;;  %v12535_v21 = vld [vmem:[#allocation59_spill] sm:$0xff]  ;;  %v12537_v44 = vld [vmem:[#allocation42_spill] sm:$0xff] }
 0x3b6   : > { %v8447_v22 = vpop.eup %8446  ;;  %8458 = vpow2.f32 %v4209_v46  ;;  %v4177_v11 = vmul.f32 1.442695, %v4084_v33  ;;  %v3973_v55 = vsub.f32 %v3845_v48, %v11475_v27  ;;  %4375 = vmax.xlane.f32.xlu0 %v11618_v49  ;;  %v3829_v6 = vadd.f32 %v11556_v12, %v11253_v60  ;;  %v12534_v50 = vld [vmem:[#allocation37_spill] sm:$0xff]  ;;  %v12536_v48 = vld [vmem:[#allocation60_spill] sm:$0xff] }
 0x3b7   : > { %v8449_v1 = vpop.eup %8448  ;;  %v4207_v56 = vmul.f32 1.442695, %v4099_v9  ;;  %v4083_v59 = vsub.f32 0.0, %v4019_v24  ;;  %v4102_v10 = vsub.f32 0.0, %v4038_v41  ;;  %v4022_v2 = vmax.f32 %v3958_v16, 0.0 }
 0x3b8   : > { %8460 = vpow2.f32 %v4177_v11  ;;  %v4037_v40 = vmax.f32 %v3973_v55, 0.0  ;;  %v3957_v25 = vsub.f32 %v3829_v6, %v11483_v34  ;;  %v11628_v36 = vmul.f32 %v11532_v28, %v12531_v4  ;;  %v12540_v11 = vld [vmem:[#allocation62_spill] sm:$0xff]  ;;  %v12541_v55 = vld [vmem:[#allocation72_spill] sm:$0xff]  ;;  %v12542_v6 = vld [vmem:[#allocation73_spill] sm:$0xff] }
 0x3b9   : > { %v8451_v43 = vpop.eup %8450  ;;  %8462 = vpow2.f32 %v4207_v56  ;;  %v4175_v27 = vmul.f32 1.442695, %v4083_v59  ;;  %v4213_v0 = vmul.f32 1.442695, %v4102_v10  ;;  %v4086_v52 = vsub.f32 0.0, %v4022_v2  ;;  %v12543_v56 = vld [vmem:[#allocation63_spill] sm:$0xff] }
 0x3ba   : > { %v8453_v23 = vpop.eup %8452  ;;  %v4101_v60 = vsub.f32 0.0, %v4037_v40  ;;  %v4021_v12 = vmax.f32 %v3957_v25, 0.0  ;;  %4349 = vmax.xlane.f32.xlu1 %v11628_v36  ;;  %v11633_v47 = vmul.f32 %v11543_v35, %v12532_v61  ;;  %v11637_v34 = vmul.f32 %v11537_v26, %v12533_v17  ;;  %v12545_v2 = vld [vmem:[#allocation74_spill] sm:$0xff]  ;;  %v12547_v4 = vld [vmem:[#allocation65_spill] sm:$0xff]  ;;  %v12552_v17 = vld [vmem:[#allocation67_spill] sm:$0xff] }
 0x3bb   : > { %v8455_v28 = vpop.eup %8454  ;;  %8464 = vpow2.f32 %v4175_v27  ;;  %v4181_v39 = vmul.f32 1.442695, %v4086_v52  ;;  %v11641_v5 = vmul.f32 %v11547_v30, %v12534_v50  ;;  %v11645_v19 = vmul.f32 %v11563_v15, %v12535_v21  ;;  %v12538_v30 = vld [vmem:[#allocation71_spill] sm:$0xff]  ;;  %v12539_v15 = vld [vmem:[#allocation61_spill] sm:$0xff]  ;;  %v12554_v21 = vld [vmem:[#allocation68_spill] sm:$0xff] }
 0x3bc   : > { %v8457_v46 = vpop.eup %8456  ;;  %8466 = vpow2.f32 %v4213_v0  ;;  %v4211_v33 = vmul.f32 1.442695, %v4101_v60  ;;  %v4085_v35 = vsub.f32 0.0, %v4021_v12  ;;  %4347 = vmax.xlane.f32.xlu0 %v11633_v47  ;;  %v11650_v26 = vmul.f32 %v11573_v51, %v12536_v48 }
 0x3bd   : > { %8468 = vpow2.f32 %v4181_v39  ;;  %v11654_v9 = vmul.f32 %v11569_v29, %v12537_v44  ;;  %v11658_v24 = vmul.f32 %v11577_v20, %v12538_v30  ;;  %v11662_v41 = vmul.f32 %v11579_v7, %v12539_v15  ;;  %v12544_v7 = vld [vmem:[#allocation64_spill] sm:$0xff]  ;;  %v12556_v15 = vld [vmem:[#allocation69_spill] sm:$0xff] }
 0x3be   : > { %8470 = vpow2.f32 %v4211_v33  ;;  %v4179_v16 = vmul.f32 1.442695, %v4085_v35  ;;  %4381 = vmax.xlane.f32.xlu1 %v11637_v34  ;;  %v11667_v51 = vmul.f32 %v11590_v37, %v12540_v11  ;;  %v11671_v29 = vmul.f32 %v11585_v18, %v12541_v55  ;;  %v12546_v37 = vld [vmem:[#allocation75_spill] sm:$0xff]  ;;  %v12555_v35 = vld [vmem:[#allocation80_spill] sm:$0xff] }
 0x3bf   : > { %v11675_v20 = vmul.f32 %v11598_v62, %v12542_v6  ;;  %v11678_v59 = vmul.f32 %v8443_v32, %v12543_v56  ;;  %v11681_v10 = vmul.f32 %v8447_v22, %v12544_v7  ;;  %v11684_v40 = vmul.f32 %v8445_v31, %v12545_v2  ;;  %v12548_v62 = vld [vmem:[#allocation66_spill] sm:$0xff]  ;;  %v12549_v32 = vld [vmem:[#allocation76_spill] sm:$0xff]  ;;  %v12550_v22 = vld [vmem:[#allocation77_spill] sm:$0xff] }
 0x3c0   : > { %v8459_v25 = vpop.eup %8458  ;;  %8472 = vpow2.f32 %v4179_v16  ;;  %4379 = vmax.xlane.f32.xlu0 %v11641_v5  ;;  %v11688_v18 = vmul.f32 %v8449_v1, %v12546_v37  ;;  %v11691_v27 = vmul.f32 %v8451_v43, %v12547_v4  ;;  %v11694_v0 = vmul.f32 %v8455_v28, %v12548_v62  ;;  %v12551_v31 = vld [vmem:[#allocation78_spill] sm:$0xff]  ;;  %v12553_v43 = vld [vmem:[#allocation79_spill] sm:$0xff]  ;;  %v12557_v11 = vld [vmem:[#allocation108_spill] sm:$0xff] }
 0x3c1   : > { %v11697_v52 = vmul.f32 %v8453_v23, %v12549_v32  ;;  %v11700_v60 = vmul.f32 %v8457_v46, %v12550_v22  ;;  %v11703_v12 = vmul.f32 %v8459_v25, %v12551_v31  ;;  %v3912_v55 = vmul.f32 2.0, %v12557_v11  ;;  %v12558_v7 = vld [vmem:[#allocation81_spill] sm:$0xff]  ;;  %v12560_v22 = vld [vmem:[#allocation70_spill] sm:$0xff] }
 0x3c2   : > { %v8461_v61 = vpop.eup %8460  ;;  %4353 = vmax.xlane.f32.xlu1 %v11645_v19  ;;  %v12559_v37 = vld [vmem:[#allocation109_spill] sm:$0xff] }
 0x3c3   : > { %v8463_v1 = vpop.eup %8462  ;;  %v11707_v39 = vmul.f32 %v8461_v61, %v12552_v17  ;;  %v3911_v4 = vmul.f32 2.0, %v12559_v37 }
 0x3c4   : > { %4351 = vmax.xlane.f32.xlu0 %v11650_v26  ;;  %v11711_v28 = vmul.f32 %v8463_v1, %v12553_v43 }
 0x3c5   : > { %v8465_v23 = vpop.eup %8464 }
 0x3c6   : > { %v8467_v50 = vpop.eup %8466  ;;  %4385 = vmax.xlane.f32.xlu1 %v11654_v9  ;;  %v11715_v46 = vmul.f32 %v8465_v23, %v12554_v21  ;;  %v12562_v21 = vld [vmem:[#allocation112_spill] sm:$0xff] }
 0x3c7   : > { %v8469_v33 = vpop.eup %8468  ;;  %v11718_v48 = vmul.f32 %v8467_v50, %v12555_v35 }
 0x3c8   : > { %v8471_v44 = vpop.eup %8470  ;;  %4383 = vmax.xlane.f32.xlu0 %v11658_v24  ;;  %v7466_v30 = vpop.f32.mrb[160].mxu1  ;;  %v11722_v16 = vmul.f32 %v8469_v33, %v12556_v15  ;;  %v3913_v33 = vmul.f32 2.0, %v12562_v21 }
 0x3c9   : > { %v3848_v6 = vadd.f32 %v7466_v30, %v11283_v3  ;;  %v3720_v56 = vpop.f32.mrb[161].mxu1  ;;  %v11727_v2 = vmul.f32 %v8471_v44, %v12558_v7  ;;  %v12561_v3 = vld [vmem:[#allocation111_spill] sm:$0xff] }
 0x3ca   : > { %v8473_v25 = vpop.eup %8472  ;;  %4357 = vmax.xlane.f32.xlu1 %v11662_v41  ;;  %v3847_v62 = vadd.f32 %v3720_v56, %v11290_v14  ;;  %v3914_v17 = vmul.f32 2.0, %v12561_v3  ;;  %v12563_v14 = vld [vmem:[#allocation125_spill] sm:$0xff]  ;;  %v12567_v3 = vld [vmem:[#allocation127_spill] sm:$0xff] }
 0x3cb   : > { %v3976_v32 = vsub.f32 %v3848_v6, %v3912_v55  ;;  %v11733_v31 = vmul.f32 %v8473_v25, %v12560_v22  ;;  %v12564_v56 = vld [vmem:[#allocation113_spill] sm:$0xff] }
 0x3cc   : > { %4355 = vmax.xlane.f32.xlu0 %v11667_v51  ;;  %v3975_v61 = vsub.f32 %v3847_v62, %v3911_v4  ;;  %v7469_v1 = vpop.f32.mrb[162].mxu1  ;;  %v3916_v7 = vmul.f32 2.0, %v12564_v56 }
 0x3cd   : > { %v4040_v43 = vmax.f32 %v3976_v32, 0.0  ;;  %v3850_v23 = vadd.f32 %v7469_v1, %v11331_v54  ;;  %v3730_v50 = vpop.f32.mrb[163].mxu1  ;;  %v12565_v54 = vld [vmem:[#allocation126_spill] sm:$0xff] }
 0x3ce   : > { %4389 = vmax.xlane.f32.xlu1 %v11671_v29  ;;  %v4039_v35 = vmax.f32 %v3975_v61, 0.0  ;;  %v3849_v44 = vadd.f32 %v3730_v50, %v12563_v14  ;;  %v12566_v32 = vld [vmem:[#allocation114_spill] sm:$0xff] }
 0x3cf   : > { %v4104_v30 = vsub.f32 0.0, %v4040_v43  ;;  %v3978_v15 = vsub.f32 %v3850_v23, %v3914_v17  ;;  %v3915_v22 = vmul.f32 2.0, %v12566_v32 }
 0x3d0   : > { %4387 = vmax.xlane.f32.xlu0 %v11675_v20  ;;  %v4103_v11 = vsub.f32 0.0, %v4039_v35  ;;  %v3977_v55 = vsub.f32 %v3849_v44, %v3913_v33  ;;  %v7472_v6 = vpop.f32.mrb[164].mxu1  ;;  %v12568_v35 = vld [vmem:[#allocation115_spill] sm:$0xff] }
 0x3d1   : > { %v4217_v25 = vmul.f32 1.442695, %v4104_v30  ;;  %v4042_v37 = vmax.f32 %v3978_v15, 0.0  ;;  %v3852_v4 = vadd.f32 %v7472_v6, %v12565_v54  ;;  %v3740_v62 = vpop.f32.mrb[165].mxu1  ;;  %v3918_v14 = vmul.f32 2.0, %v12568_v35  ;;  %v12569_v15 = vld [vmem:[#allocation128_spill] sm:$0xff] }
 0x3d2   : > { %4361 = vmax.xlane.f32.xlu1 %v11678_v59  ;;  %v4215_v61 = vmul.f32 1.442695, %v4103_v11  ;;  %v4041_v1 = vmax.f32 %v3977_v55, 0.0  ;;  %v3851_v17 = vadd.f32 %v3740_v62, %v12567_v3  ;;  %v12570_v11 = vld [vmem:[#allocation116_spill] sm:$0xff] }
 0x3d3   : > { %8474 = vpow2.f32 %v4217_v25  ;;  %v4106_v43 = vsub.f32 0.0, %v4042_v37  ;;  %v3980_v23 = vsub.f32 %v3852_v4, %v3916_v7  ;;  %v3917_v55 = vmul.f32 2.0, %v12570_v11  ;;  %v12571_v7 = vld [vmem:[#allocation129_spill] sm:$0xff] }
 0x3d4   : > { %4359 = vmax.xlane.f32.xlu0 %v11681_v10  ;;  %8476 = vpow2.f32 %v4215_v61  ;;  %v4105_v50 = vsub.f32 0.0, %v4041_v1  ;;  %v3979_v21 = vsub.f32 %v3851_v17, %v3915_v22  ;;  %v7475_v33 = vpop.f32.mrb[166].mxu1  ;;  %v12572_v1 = vld [vmem:[#allocation117_spill] sm:$0xff] }
 0x3d5   : > { %v4221_v44 = vmul.f32 1.442695, %v4106_v43  ;;  %v4044_v30 = vmax.f32 %v3980_v23, 0.0  ;;  %v3854_v6 = vadd.f32 %v7475_v33, %v12569_v15  ;;  %v3750_v56 = vpop.f32.mrb[167].mxu1  ;;  %v3920_v3 = vmul.f32 2.0, %v12572_v1 }
 0x3d6   : > { %4393 = vmax.xlane.f32.xlu1 %v11684_v40  ;;  %v4219_v25 = vmul.f32 1.442695, %v4105_v50  ;;  %v4043_v37 = vmax.f32 %v3979_v21, 0.0  ;;  %v3853_v54 = vadd.f32 %v3750_v56, %v12571_v7  ;;  %v12573_v50 = vld [vmem:[#allocation118_spill] sm:$0xff] }
 0x3d7   : > { %8478 = vpow2.f32 %v4221_v44  ;;  %v4108_v4 = vsub.f32 0.0, %v4044_v30  ;;  %v3982_v62 = vsub.f32 %v3854_v6, %v3918_v14  ;;  %v3919_v21 = vmul.f32 2.0, %v12573_v50  ;;  %v12574_v6 = vld [vmem:[#allocation119_spill] sm:$0xff] }
 0x3d8   : > { %4391 = vmax.xlane.f32.xlu0 %v11688_v18  ;;  %8480 = vpow2.f32 %v4219_v25  ;;  %v4107_v32 = vsub.f32 0.0, %v4043_v37  ;;  %v3981_v22 = vsub.f32 %v3853_v54, %v3917_v55  ;;  %v7478_v61 = vpop.f32.mrb[168].mxu1  ;;  %v3922_v56 = vmul.f32 2.0, %v12574_v6  ;;  %v12575_v37 = vld [vmem:[#allocation120_spill] sm:$0xff] }
 0x3d9   : > { %v4225_v17 = vmul.f32 1.442695, %v4108_v4  ;;  %v4046_v43 = vmax.f32 %v3982_v62, 0.0  ;;  %v3856_v23 = vadd.f32 %v7478_v61, %v11492_v45  ;;  %v3760_v33 = vpop.f32.mrb[169].mxu1  ;;  %v3921_v7 = vmul.f32 2.0, %v12575_v37 }
 0x3da   : > { %4365 = vmax.xlane.f32.xlu1 %v11691_v27  ;;  %v4223_v35 = vmul.f32 1.442695, %v4107_v32  ;;  %v4045_v44 = vmax.f32 %v3981_v22, 0.0  ;;  %v3855_v14 = vadd.f32 %v3760_v33, %v11495_v38  ;;  %v12577_v33 = vld [vmem:[#allocation3_spill] sm:$0xff] }
 0x3db   : > { %8482 = vpow2.f32 %v4225_v17  ;;  %v4110_v30 = vsub.f32 0.0, %v4046_v43  ;;  %v3984_v15 = vsub.f32 %v3856_v23, %v3920_v3  ;;  %v12576_v3 = vld [vmem:[#allocation2_spill] sm:$0xff] }
 0x3dc   : > { %4363 = vmax.xlane.f32.xlu0 %v11694_v0  ;;  %8484 = vpow2.f32 %v4223_v35  ;;  %v4109_v11 = vsub.f32 0.0, %v4045_v44  ;;  %v3983_v55 = vsub.f32 %v3855_v14, %v3919_v21  ;;  %v7481_v45 = vpop.f32.mrb[170].mxu1  ;;  %v12578_v21 = vld [vmem:[#allocation121_spill] sm:$0xff] }
 0x3dd   : > { %v8475_v25 = vpop.eup %8474  ;;  %v4229_v54 = vmul.f32 1.442695, %v4110_v30  ;;  %v4048_v4 = vmax.f32 %v3984_v15, 0.0  ;;  %v3858_v62 = vadd.f32 %v7481_v45, %v11515_v13  ;;  %v3770_v32 = vpop.f32.mrb[171].mxu1  ;;  %v3924_v35 = vmul.f32 2.0, %v12578_v21  ;;  %v12579_v15 = vld [vmem:[#allocation122_spill] sm:$0xff] }
 0x3de   : > { %v8477_v38 = vpop.eup %8476  ;;  %4397 = vmax.xlane.f32.xlu1 %v11697_v52  ;;  %v4227_v22 = vmul.f32 1.442695, %v4109_v11  ;;  %v4047_v61 = vmax.f32 %v3983_v55, 0.0  ;;  %v3857_v1 = vadd.f32 %v3770_v32, %v11523_v63  ;;  %v11766_v17 = vmul.f32 %v8475_v25, %v12576_v3  ;;  %v12583_v21 = vld [vmem:[#allocation124_spill] sm:$0xff] }
 0x3df   : > { %8486 = vpow2.f32 %v4229_v54  ;;  %v4112_v43 = vsub.f32 0.0, %v4048_v4  ;;  %v3986_v23 = vsub.f32 %v3858_v62, %v3922_v56  ;;  %v11769_v50 = vmul.f32 %v8477_v38, %v12577_v33  ;;  %v2251_v4 = vpop.xlane.xlu1 %2250  ;;  %v12580_v62 = vld [vmem:[#allocation4_spill] sm:$0xff] }
 0x3e0   : > { %4395 = vmax.xlane.f32.xlu0 %v11700_v60  ;;  %8488 = vpow2.f32 %v4227_v22  ;;  %v4111_v13 = vsub.f32 0.0, %v4047_v61  ;;  %v3985_v44 = vsub.f32 %v3857_v1, %v3921_v7  ;;  %v7484_v14 = vpop.f32.mrb[172].mxu1  ;;  %v3923_v63 = vmul.f32 2.0, %v12579_v15  ;;  %v2248_v22 = vpop.xlane.xlu0 %2247  ;;  %v12581_v61 = vld [vmem:[#allocation5_spill] sm:$0xff] }
 0x3e1   : > { %v8479_v30 = vpop.eup %8478  ;;  %v4233_v6 = vmul.f32 1.442695, %v4112_v43  ;;  %v4050_v11 = vmax.f32 %v3986_v23, 0.0  ;;  %v3860_v55 = vadd.f32 %v7484_v14, %v11567_v58  ;;  %v3780_v45 = vpop.f32.mrb[173].mxu1  ;;  %v12582_v58 = vld [vmem:[#allocation123_spill] sm:$0xff] }
 0x3e2   : > { %v8481_v56 = vpop.eup %8480  ;;  %4369 = vmax.xlane.f32.xlu1 %v11707_v39  ;;  %v4231_v25 = vmul.f32 1.442695, %v4111_v13  ;;  %v4049_v37 = vmax.f32 %v3985_v44, 0.0  ;;  %v3859_v54 = vadd.f32 %v3780_v45, %v11575_v53  ;;  %v11778_v32 = vmul.f32 %v8479_v30, %v12580_v62  ;;  %v12584_v45 = vld [vmem:[#allocation6_spill] sm:$0xff] }
 0x3e3   : > { %8490 = vpow2.f32 %v4233_v6  ;;  %v4114_v7 = vsub.f32 0.0, %v4050_v11  ;;  %v3988_v38 = vsub.f32 %v3860_v55, %v3924_v35  ;;  %v11781_v1 = vmul.f32 %v8481_v56, %v12581_v61 }
 0x3e4   : > { %v3926_v3 = vmul.f32 2.0, %v12582_v58  ;;  %4367 = vmax.xlane.f32.xlu0 %v11715_v46  ;;  %8492 = vpow2.f32 %v4231_v25  ;;  %v4113_v43 = vsub.f32 0.0, %v4049_v37  ;;  %v3987_v23 = vsub.f32 %v3859_v54, %v3923_v63  ;;  %v7487_v33 = vpop.f32.mrb[174].mxu1  ;;  %v12585_v37 = vld [vmem:[#allocation7_spill] sm:$0xff] }
 0x3e5   : > { %v8483_v53 = vpop.eup %8482  ;;  %v3925_v13 = vmul.f32 2.0, %v12583_v21  ;;  %v4237_v44 = vmul.f32 1.442695, %v4114_v7  ;;  %v4052_v14 = vmax.f32 %v3988_v38, 0.0  ;;  %v3862_v30 = vadd.f32 %v7487_v33, %v2251_v4  ;;  %v3790_v15 = vpop.f32.mrb[175].mxu1 }
 0x3e6   : > { %v8485_v35 = vpop.eup %8484  ;;  %4401 = vmax.xlane.f32.xlu1 %v11703_v12  ;;  %v4235_v6 = vmul.f32 1.442695, %v4113_v43  ;;  %v4051_v11 = vmax.f32 %v3987_v23, 0.0  ;;  %v3861_v55 = vadd.f32 %v3790_v15, %v2248_v22  ;;  %v11788_v56 = vmul.f32 %v8483_v53, %v12584_v45  ;;  %v12586_v23 = vld [vmem:[#allocation8_spill] sm:$0xff]  ;;  %v12588_v53 = vld [vmem:[#allocation9_spill] sm:$0xff] }
 0x3e7   : > { %8494 = vpow2.f32 %v4237_v44  ;;  %v4116_v25 = vsub.f32 0.0, %v4052_v14  ;;  %v3990_v63 = vsub.f32 %v3862_v30, %v3926_v3  ;;  %v11791_v54 = vmul.f32 %v8485_v35, %v12585_v37 }
 0x3e8   : > { %4399 = vmax.xlane.f32.xlu0 %v11711_v28  ;;  %8496 = vpow2.f32 %v4235_v6  ;;  %v4115_v4 = vsub.f32 0.0, %v4051_v11  ;;  %v3989_v62 = vsub.f32 %v3861_v55, %v3925_v13  ;;  %v12590_v6 = vld [vmem:[#allocation82_spill] sm:$0xff] }
 0x3e9   : > { %v8487_v7 = vpop.eup %8486  ;;  %v4241_v38 = vmul.f32 1.442695, %v4116_v25  ;;  %v4054_v61 = vmax.f32 %v3990_v63, 0.0  ;;  %v12592_v55 = vld [vmem:[#allocation38_spill] sm:$0xff]  ;;  %v12593_v63 = vld [vmem:[#allocation83_spill] sm:$0xff] }
 0x3ea   : > { %v8489_v58 = vpop.eup %8488  ;;  %4373 = vmax.xlane.f32.xlu1 %v11722_v16  ;;  %v4239_v22 = vmul.f32 1.442695, %v4115_v4  ;;  %v4053_v43 = vmax.f32 %v3989_v62, 0.0  ;;  %v11796_v33 = vmul.f32 %v8487_v7, %v12586_v23  ;;  %v12595_v4 = vld [vmem:[#allocation39_spill] sm:$0xff] }
 0x3eb   : > { %8498 = vpow2.f32 %v4241_v38  ;;  %v4118_v3 = vsub.f32 0.0, %v4054_v61  ;;  %v11799_v21 = vmul.f32 %v8489_v58, %v12588_v53 }
 0x3ec   : > { %12587 = vst [vmem:[#allocation90_spill] sm:$0xff] %v11796_v33  ;;  %4371 = vmax.xlane.f32.xlu0 %v11733_v31  ;;  %8500 = vpow2.f32 %v4239_v22  ;;  %v4117_v13 = vsub.f32 0.0, %v4053_v43  ;;  %v12596_v43 = vld [vmem:[#allocation84_spill] sm:$0xff] }
 0x3ed   : > { %12589 = vst [vmem:[#allocation16_spill] sm:$0xff] %v11799_v21  ;;  %v8491_v44 = vpop.eup %8490  ;;  %v4245_v14 = vmul.f32 1.442695, %v4118_v3  ;;  %v12598_v3 = vld [vmem:[#allocation40_spill] sm:$0xff] }
 0x3ee   : > { %v8493_v30 = vpop.eup %8492  ;;  %4405 = vmax.xlane.f32.xlu1 %v11718_v48  ;;  %v4243_v15 = vmul.f32 1.442695, %v4117_v13  ;;  %v4314_v35 = vpop.xlane.xlu1 %4313  ;;  %v11804_v11 = vmul.f32 %v8491_v44, %v12590_v6  ;;  %v12599_v44 = vld [vmem:[#allocation85_spill] sm:$0xff] }
 0x3ef   : > { %8502 = vpow2.f32 %v4245_v14  ;;  %v4440_v45 = vsub.f32 %v12592_v55, %v4314_v35  ;;  %v4312_v25 = vpop.xlane.xlu0 %4311  ;;  %v11808_v37 = vmul.f32 %v8493_v30, %v12593_v63  ;;  %v12601_v30 = vld [vmem:[#allocation41_spill] sm:$0xff]  ;;  %v12602_v63 = vld [vmem:[#allocation86_spill] sm:$0xff] }
 0x3f0   : > { %12591 = vst [vmem:[#allocation17_spill] sm:$0xff] %v11804_v11  ;;  %4403 = vmax.xlane.f32.xlu0 %v11727_v2  ;;  %8504 = vpow2.f32 %v4243_v15  ;;  %v4439_v62 = vsub.f32 %v12595_v4, %v4312_v25 }
 0x3f1   : > { %12594 = vst [vmem:[#allocation93_spill] sm:$0xff] %v11808_v37  ;;  %v8495_v7 = vpop.eup %8494  ;;  %v4505_v38 = vmul.f32 1.442695, %v4440_v45 }
 0x3f2   : > { %v8497_v61 = vpop.eup %8496  ;;  %4409 = vmax.xlane.f32.xlu1 %v11766_v17  ;;  %v4503_v58 = vmul.f32 1.442695, %v4439_v62  ;;  %v4318_v22 = vpop.xlane.xlu1 %4317  ;;  %v11814_v23 = vmul.f32 %v8495_v7, %v12596_v43  ;;  %v12603_v62 = vld [vmem:[#allocation43_spill] sm:$0xff] }
 0x3f3   : > { %v4442_v53 = vsub.f32 %v12598_v3, %v4318_v22  ;;  %v4316_v13 = vpop.xlane.xlu0 %4315  ;;  %v11818_v14 = vmul.f32 %v8497_v61, %v12599_v44  ;;  %v12604_v22 = vld [vmem:[#allocation87_spill] sm:$0xff] }
 0x3f4   : > { %12597 = vst [vmem:[#allocation91_spill] sm:$0xff] %v11814_v23  ;;  %4407 = vmax.xlane.f32.xlu0 %v11769_v50  ;;  %8506 = vpow2.f32 %v4503_v58  ;;  %v4441_v15 = vsub.f32 %v12601_v30, %v4316_v13  ;;  %v12605_v58 = vld [vmem:[#allocation44_spill] sm:$0xff] }
 0x3f5   : > { %12600 = vst [vmem:[#allocation92_spill] sm:$0xff] %v11818_v14  ;;  %v8499_v35 = vpop.eup %8498  ;;  %8508 = vpow2.f32 %v4505_v38  ;;  %v4509_v6 = vmul.f32 1.442695, %v4442_v53 }
 0x3f6   : > { %v8501_v55 = vpop.eup %8500  ;;  %4413 = vmax.xlane.f32.xlu1 %v11778_v32  ;;  %v4507_v45 = vmul.f32 1.442695, %v4441_v15  ;;  %v4322_v25 = vpop.xlane.xlu1 %4321  ;;  %v11824_v4 = vmul.f32 %v8499_v35, %v12602_v63  ;;  %v12606_v15 = vld [vmem:[#allocation88_spill] sm:$0xff] }
 0x3f7   : > { %v4444_v7 = vsub.f32 %v12603_v62, %v4322_v25  ;;  %v4320_v61 = vpop.xlane.xlu0 %4319  ;;  %v11828_v43 = vmul.f32 %v8501_v55, %v12604_v22  ;;  %v12607_v25 = vld [vmem:[#allocation45_spill] sm:$0xff] }
 0x3f8   : > { %4411 = vmax.xlane.f32.xlu0 %v11781_v1  ;;  %8510 = vpow2.f32 %v4507_v45  ;;  %v4443_v38 = vsub.f32 %v12605_v58, %v4320_v61  ;;  %v12608_v62 = vld [vmem:[#allocation89_spill] sm:$0xff]  ;;  %v12609_v45 = vld [vmem:[#allocation46_spill] sm:$0xff] }
 0x3f9   : > { %v8503_v3 = vpop.eup %8502  ;;  %8512 = vpow2.f32 %v4509_v6  ;;  %v4513_v53 = vmul.f32 1.442695, %v4444_v7 }
 0x3fa   : > { %v8505_v13 = vpop.eup %8504  ;;  %4417 = vmax.xlane.f32.xlu1 %v11788_v56  ;;  %v4511_v44 = vmul.f32 1.442695, %v4443_v38  ;;  %v4326_v30 = vpop.xlane.xlu1 %4325  ;;  %v11834_v35 = vmul.f32 %v8503_v3, %v12606_v15 }
 0x3fb   : > { %v4446_v63 = vsub.f32 %v12607_v25, %v4326_v30  ;;  %v4324_v55 = vpop.xlane.xlu0 %4323  ;;  %v11838_v22 = vmul.f32 %v8505_v13, %v12608_v62  ;;  %v12610_v30 = vld [vmem:[#allocation47_spill] sm:$0xff] }
 0x3fc   : > { %4415 = vmax.xlane.f32.xlu0 %v11791_v54  ;;  %8514 = vpow2.f32 %v4511_v44  ;;  %v4445_v6 = vsub.f32 %v12609_v45, %v4324_v55  ;;  %v12611_v44 = vld [vmem:[#allocation48_spill] sm:$0xff]  ;;  %v12613_v45 = vld [vmem:[#allocation19_spill] sm:$0xff] }
 0x3fd   : > { %8516 = vpow2.f32 %v4513_v53  ;;  %v4517_v7 = vmul.f32 1.442695, %v4446_v63  ;;  %v12612_v63 = vld [vmem:[#allocation18_spill] sm:$0xff] }
 0x3fe   : > { %v11842_v61 = vpop.eup %8506  ;;  %4421 = vmax.xlane.f32.xlu1 %v11796_v33  ;;  %v4515_v58 = vmul.f32 1.442695, %v4445_v6  ;;  %v4330_v38 = vpop.xlane.xlu1 %4329 }
 0x3ff   : > { %v11845_v3 = vpop.eup %8508  ;;  %v4448_v15 = vsub.f32 %v12610_v30, %v4330_v38  ;;  %7520 = vmatprep.mubr.f32.mxu0 %v11842_v61  ;;  %v4328_v13 = vpop.xlane.xlu0 %4327  ;;  %v12614_v30 = vld [vmem:[#allocation49_spill] sm:$0xff] }
 0x400   : > { %4419 = vmax.xlane.f32.xlu0 %v11799_v21  ;;  %8518 = vpow2.f32 %v4515_v58  ;;  %v4447_v25 = vsub.f32 %v12611_v44, %v4328_v13  ;;  %7521 = vmatmul.mubr.f32.vlgmr.msra.gmra.mrb[208].mxu0 %v11845_v3 }
 0x401   : > { %8520 = vpow2.f32 %v4517_v7  ;;  %v4521_v53 = vmul.f32 1.442695, %v4448_v15  ;;  %8307 = vmatpush3.bf16.msra.mxu0 %v12612_v63  ;;  %v12615_v7 = vld [vmem:[#allocation50_spill] sm:$0xff]  ;;  %v12616_v63 = vld [vmem:[#allocation20_spill] sm:$0xff] }
 0x402   : > { %v11853_v55 = vpop.eup %8510  ;;  %4425 = vmax.xlane.f32.xlu1 %v11804_v11  ;;  %v4519_v62 = vmul.f32 1.442695, %v4447_v25  ;;  %8309 = vmatprep.subr.bf16.mxu0 %v12613_v45  ;;  %v4334_v6 = vpop.xlane.xlu1 %4333  ;;  %v12617_v11 = vld [vmem:[#allocation51_spill] sm:$0xff] }
 0x403   : > { %v8513_v38 = vpop.eup %8512  ;;  %v4450_v21 = vsub.f32 %v12614_v30, %v4334_v6  ;;  %7523 = vmatprep.mubr.f32.mxu0 %v11853_v55  ;;  %v4332_v58 = vpop.xlane.xlu0 %4331 }
 0x404   : > { %4423 = vmax.xlane.f32.xlu0 %v11808_v37  ;;  %8522 = vpow2.f32 %v4519_v62  ;;  %v4449_v15 = vsub.f32 %v12615_v7, %v4332_v58  ;;  %7524 = vmatmul.mubr.f32.gmra.mrb[210].mxu0 %v8513_v38 }
 0x405   : > { %8524 = vpow2.f32 %v4521_v53  ;;  %v4525_v13 = vmul.f32 1.442695, %v4450_v21  ;;  %8311 = vmatpush3.bf16.msra.mxu0 %v12613_v45  ;;  %v12618_v21 = vld [vmem:[#allocation52_spill] sm:$0xff] }
 0x406   : > { %v11862_v44 = vpop.eup %8514  ;;  %4429 = vmax.xlane.f32.xlu1 %v11814_v23  ;;  %v4523_v25 = vmul.f32 1.442695, %v4449_v15  ;;  %8313 = vmatprep.subr.bf16.mxu0 %v12616_v63  ;;  %v4338_v6 = vpop.xlane.xlu1 %4337  ;;  %v12619_v15 = vld [vmem:[#allocation21_spill] sm:$0xff] }
 0x407   : > { %v8517_v30 = vpop.eup %8516  ;;  %v4452_v33 = vsub.f32 %v12617_v11, %v4338_v6  ;;  %7526 = vmatprep.mubr.f32.mxu0 %v11862_v44  ;;  %v4336_v62 = vpop.xlane.xlu0 %4335  ;;  %v12620_v23 = vld [vmem:[#allocation53_spill] sm:$0xff] }
 0x408   : > { %4427 = vmax.xlane.f32.xlu0 %v11818_v14  ;;  %8526 = vpow2.f32 %v4523_v25  ;;  %v4451_v53 = vsub.f32 %v12618_v21, %v4336_v62  ;;  %7527 = vmatmul.mubr.f32.gmra.mrb[212].mxu0 %v8517_v30  ;;  %v12621_v25 = vld [vmem:[#allocation54_spill] sm:$0xff] }
 0x409   : > { %8528 = vpow2.f32 %v4525_v13  ;;  %v4529_v45 = vmul.f32 1.442695, %v4452_v33  ;;  %8315 = vmatpush3.bf16.msra.mxu0 %v12616_v63  ;;  %v12622_v21 = vld [vmem:[#allocation22_spill] sm:$0xff] }
 0x40a   : > { %v8519_v58 = vpop.eup %8518  ;;  %4433 = vmax.xlane.f32.xlu1 %v11824_v4  ;;  %v4527_v7 = vmul.f32 1.442695, %v4451_v53  ;;  %8317 = vmatprep.subr.bf16.mxu0 %v12619_v15  ;;  %v4342_v11 = vpop.xlane.xlu1 %4341 }
 0x40b   : > { %v8521_v6 = vpop.eup %8520  ;;  %v4454_v37 = vsub.f32 %v12620_v23, %v4342_v11  ;;  %7529 = vmatprep.mubr.f32.mxu0 %v8519_v58  ;;  %v4340_v14 = vpop.xlane.xlu0 %4339  ;;  %v12625_v11 = vld [vmem:[#allocation25_spill] sm:$0xff] }
 0x40c   : > { %4431 = vmax.xlane.f32.xlu0 %v11828_v43  ;;  %8530 = vpow2.f32 %v4527_v7  ;;  %v4453_v13 = vsub.f32 %v12621_v25, %v4340_v14  ;;  %7530 = vmatmul.mubr.f32.gmra.mrb[214].mxu0 %v8521_v6  ;;  %v12624_v7 = vld [vmem:[#allocation24_spill] sm:$0xff] }
 0x40d   : > { %8532 = vpow2.f32 %v4529_v45  ;;  %v4533_v33 = vmul.f32 1.442695, %v4454_v37  ;;  %8319 = vmatpush3.bf16.msra.mxu0 %v12619_v15  ;;  %v12623_v37 = vld [vmem:[#allocation23_spill] sm:$0xff] }
 0x40e   : > { %v8523_v63 = vpop.eup %8522  ;;  %4437 = vmax.xlane.f32.xlu1 %v11834_v35  ;;  %v4531_v62 = vmul.f32 1.442695, %v4453_v13  ;;  %8321 = vmatprep.subr.bf16.mxu0 %v12622_v21 }
 0x40f   : > { %v8525_v53 = vpop.eup %8524  ;;  %7532 = vmatprep.mubr.f32.mxu0 %v8523_v63 }
 0x410   : > { %4435 = vmax.xlane.f32.xlu0 %v11838_v22  ;;  %8534 = vpow2.f32 %v4531_v62  ;;  %7533 = vmatmul.mubr.f32.gmra.mrb[216].mxu0 %v8525_v53 }
 0x411   : > { %8536 = vpow2.f32 %v4533_v33  ;;  %8323 = vmatpush3.bf16.msra.mxu0 %v12622_v21 }
 0x412   : > { %v8527_v23 = vpop.eup %8526  ;;  %4633 = vadd.xlane.f32.xlu1 %v11845_v3  ;;  %8325 = vmatprep.subr.bf16.mxu0 %v12623_v37 }
 0x413   : > { %v8529_v14 = vpop.eup %8528  ;;  %7535 = vmatprep.mubr.f32.mxu0 %v8527_v23 }
 0x414   : > { %4631 = vadd.xlane.f32.xlu0 %v11842_v61  ;;  %7536 = vmatmul.mubr.f32.gmra.mrb[218].mxu0 %v8529_v14 }
 0x415   : > { %8327 = vmatpush3.bf16.msra.mxu0 %v12623_v37 }
 0x416   : > { %v8531_v45 = vpop.eup %8530  ;;  %4637 = vadd.xlane.f32.xlu1 %v8513_v38  ;;  %8329 = vmatprep.subr.bf16.mxu0 %v12624_v7 }
 0x417   : > { %v8533_v15 = vpop.eup %8532  ;;  %7538 = vmatprep.mubr.f32.mxu0 %v8531_v45 }
 0x418   : > { %4635 = vadd.xlane.f32.xlu0 %v11853_v55  ;;  %7539 = vmatmul.mubr.f32.gmra.mrb[220].mxu0 %v8533_v15 }
 0x419   : > { %8331 = vmatpush3.bf16.msra.mxu0 %v12624_v7 }
 0x41a   : > { %v8535_v3 = vpop.eup %8534  ;;  %4641 = vadd.xlane.f32.xlu1 %v8517_v30  ;;  %8333 = vmatprep.subr.bf16.mxu0 %v12625_v11 }
 0x41b   : > { %v8537_v25 = vpop.eup %8536  ;;  %7541 = vmatprep.mubr.f32.mxu0 %v8535_v3 }
 0x41c   : > { %4639 = vadd.xlane.f32.xlu0 %v11862_v44  ;;  %7542 = vmatmul.mubr.f32.gmra.mrb[222].mxu0 %v8537_v25 }
 0x41d   : > { %8335 = vmatpush3.bf16.msra.mxu0 %v12625_v11 }
 0x41e   : > { %4645 = vadd.xlane.f32.xlu1 %v8521_v6 }
 0x420   : > { %4643 = vadd.xlane.f32.xlu0 %v8519_v58 }
 0x422   : > { %4649 = vadd.xlane.f32.xlu1 %v8525_v53 }
 0x424   : > { %4647 = vadd.xlane.f32.xlu0 %v8523_v63 }
 0x426   : > { %4653 = vadd.xlane.f32.xlu1 %v8529_v14 }
 0x428   : > { %4651 = vadd.xlane.f32.xlu0 %v8527_v23 }
 0x42a   : > { %4657 = vadd.xlane.f32.xlu1 %v8533_v15 }
 0x42c   : > { %4655 = vadd.xlane.f32.xlu0 %v8531_v45 }
 0x42e   : > { %4661 = vadd.xlane.f32.xlu1 %v8537_v25 }
 0x430   : > { %4659 = vadd.xlane.f32.xlu0 %v8535_v3 }
 0x43c   : > { %v4346_v61 = vpop.xlane.xlu1 %4345 }
 0x43d   : > { %v4456_v55 = vsub.f32 %v11583_v42, %v4346_v61 }
 0x43e   : > { %v4344_v38 = vpop.xlane.xlu0 %4343 }
 0x43f   : > { %v4537_v30 = vmul.f32 1.442695, %v4456_v55  ;;  %v4455_v44 = vsub.f32 %v11596_v8, %v4344_v38  ;;  %v12626_v55 = vld [vmem:[#allocation26_spill] sm:$0xff] }
 0x441   : > { %8538 = vpow2.f32 %v4537_v30  ;;  %v4535_v13 = vmul.f32 1.442695, %v4455_v44  ;;  %v4378_v33 = vpop.xlane.xlu1 %4377 }
 0x442   : > { %v4472_v58 = vsub.f32 %v11608_v57, %v4378_v33 }
 0x443   : > { %8540 = vpow2.f32 %v4535_v13  ;;  %v4376_v6 = vpop.xlane.xlu0 %4375 }
 0x444   : > { %v4569_v63 = vmul.f32 1.442695, %v4472_v58  ;;  %v4471_v62 = vsub.f32 %v11618_v49, %v4376_v6  ;;  %v12628_v6 = vld [vmem:[#allocation28_spill] sm:$0xff] }
 0x446   : > { %8542 = vpow2.f32 %v4569_v63  ;;  %v4567_v21 = vmul.f32 1.442695, %v4471_v62 }
 0x447   : > { %v4350_v53 = vpop.xlane.xlu1 %4349 }
 0x448   : > { %8544 = vpow2.f32 %v4567_v21  ;;  %v4458_v42 = vsub.f32 %v11628_v36, %v4350_v53 }
 0x449   : > { %v4348_v23 = vpop.xlane.xlu0 %4347 }
 0x44a   : > { %v4541_v37 = vmul.f32 1.442695, %v4458_v42  ;;  %v4457_v8 = vsub.f32 %v11633_v47, %v4348_v23 }
 0x44b   : > { %v8539_v14 = vpop.eup %8538  ;;  %v4382_v45 = vpop.xlane.xlu1 %4381 }
 0x44c   : > { %8546 = vpow2.f32 %v4541_v37  ;;  %v4539_v7 = vmul.f32 1.442695, %v4457_v8  ;;  %v4474_v57 = vsub.f32 %v11637_v34, %v4382_v45  ;;  %4665 = vadd.xlane.f32.xlu1 %v8539_v14  ;;  %v12627_v34 = vld [vmem:[#allocation27_spill] sm:$0xff]  ;;  %v12629_v45 = vld [vmem:[#allocation29_spill] sm:$0xff] }
 0x44d   : > { %v8541_v15 = vpop.eup %8540  ;;  %v4380_v3 = vpop.xlane.xlu0 %4379 }
 0x44e   : > { %8548 = vpow2.f32 %v4539_v7  ;;  %v4573_v49 = vmul.f32 1.442695, %v4474_v57  ;;  %v4473_v11 = vsub.f32 %v11641_v5, %v4380_v3  ;;  %7576 = vmatprep.mubr.f32.mxu1 %v8541_v15  ;;  %4663 = vadd.xlane.f32.xlu0 %v8541_v15 }
 0x44f   : > { %v4354_v36 = vpop.xlane.xlu1 %4353  ;;  %7577 = vmatmul.mubr.f32.vlgmr.msra.gmra.mrb[176].mxu1 %v8539_v14 }
 0x450   : > { %v8543_v25 = vpop.eup %8542  ;;  %8550 = vpow2.f32 %v4573_v49  ;;  %v4571_v47 = vmul.f32 1.442695, %v4473_v11  ;;  %v4460_v61 = vsub.f32 %v11645_v19, %v4354_v36  ;;  %8339 = vmatpush3.bf16.msra.mxu1 %v12626_v55  ;;  %v12630_v11 = vld [vmem:[#allocation30_spill] sm:$0xff] }
 0x451   : > { %v4352_v38 = vpop.xlane.xlu0 %4351  ;;  %8341 = vmatprep.subr.bf16.mxu1 %v12627_v34  ;;  %4697 = vadd.xlane.f32.xlu1 %v8543_v25 }
 0x452   : > { %v8545_v30 = vpop.eup %8544  ;;  %8552 = vpow2.f32 %v4571_v47  ;;  %v4545_v44 = vmul.f32 1.442695, %v4460_v61  ;;  %v4459_v5 = vsub.f32 %v11650_v26, %v4352_v38 }
 0x453   : > { %v4386_v13 = vpop.xlane.xlu1 %4385  ;;  %7632 = vmatprep.mubr.f32.mxu0 %v8545_v30  ;;  %4695 = vadd.xlane.f32.xlu0 %v8545_v30 }
 0x454   : > { %8554 = vpow2.f32 %v4545_v44  ;;  %v4543_v33 = vmul.f32 1.442695, %v4459_v5  ;;  %v4476_v58 = vsub.f32 %v11654_v9, %v4386_v13  ;;  %7633 = vmatmul.mubr.f32.vlgmr.msra.gmra.mrb[224].mxu0 %v8543_v25  ;;  %8343 = vmatpush3.bf16.msra.mxu1 %v12627_v34  ;;  %v12631_v34 = vld [vmem:[#allocation31_spill] sm:$0xff] }
 0x455   : > { %v4384_v19 = vpop.xlane.xlu0 %4383  ;;  %8345 = vmatprep.subr.bf16.mxu1 %v12628_v6 }
 0x456   : > { %v8547_v63 = vpop.eup %8546  ;;  %8556 = vpow2.f32 %v4543_v33  ;;  %v4577_v62 = vmul.f32 1.442695, %v4476_v58  ;;  %v4475_v21 = vsub.f32 %v11658_v24, %v4384_v19  ;;  %v12632_v19 = vld [vmem:[#allocation32_spill] sm:$0xff] }
 0x457   : > { %v4358_v53 = vpop.xlane.xlu1 %4357  ;;  %4669 = vadd.xlane.f32.xlu1 %v8547_v63 }
 0x458   : > { %v8549_v26 = vpop.eup %8548  ;;  %8558 = vpow2.f32 %v4577_v62  ;;  %v4575_v42 = vmul.f32 1.442695, %v4475_v21  ;;  %v4462_v23 = vsub.f32 %v11662_v41, %v4358_v53  ;;  %8347 = vmatpush3.bf16.msra.mxu1 %v12628_v6 }
 0x459   : > { %7579 = vmatprep.mubr.f32.mxu1 %v8549_v26  ;;  %v4356_v9 = vpop.xlane.xlu0 %4355  ;;  %4667 = vadd.xlane.f32.xlu0 %v8549_v26 }
 0x45a   : > { %v8551_v37 = vpop.eup %8550  ;;  %8560 = vpow2.f32 %v4575_v42  ;;  %v4549_v8 = vmul.f32 1.442695, %v4462_v23  ;;  %v4461_v14 = vsub.f32 %v11667_v51, %v4356_v9  ;;  %7580 = vmatmul.mubr.f32.gmra.mrb[178].mxu1 %v8547_v63  ;;  %8349 = vmatprep.subr.bf16.mxu1 %v12629_v45  ;;  %v12633_v42 = vld [vmem:[#allocation33_spill] sm:$0xff] }
 0x45b   : > { %v4390_v24 = vpop.xlane.xlu1 %4389  ;;  %4701 = vadd.xlane.f32.xlu1 %v8551_v37 }
 0x45c   : > { %v8553_v7 = vpop.eup %8552  ;;  %8562 = vpow2.f32 %v4549_v8  ;;  %v4547_v57 = vmul.f32 1.442695, %v4461_v14  ;;  %v4478_v41 = vsub.f32 %v11671_v29, %v4390_v24  ;;  %8351 = vmatpush3.bf16.msra.mxu1 %v12629_v45 }
 0x45d   : > { %7635 = vmatprep.mubr.f32.mxu0 %v8553_v7  ;;  %v4388_v15 = vpop.xlane.xlu0 %4387  ;;  %4699 = vadd.xlane.f32.xlu0 %v8553_v7 }
 0x45e   : > { %v8555_v3 = vpop.eup %8554  ;;  %8564 = vpow2.f32 %v4547_v57  ;;  %v4581_v49 = vmul.f32 1.442695, %v4478_v41  ;;  %v4477_v51 = vsub.f32 %v11675_v20, %v4388_v15  ;;  %7636 = vmatmul.mubr.f32.gmra.mrb[226].mxu0 %v8551_v37  ;;  %8353 = vmatprep.subr.bf16.mxu1 %v12630_v11 }
 0x45f   : > { %v4362_v36 = vpop.xlane.xlu1 %4361  ;;  %4673 = vadd.xlane.f32.xlu1 %v8555_v3 }
 0x460   : > { %v8557_v25 = vpop.eup %8556  ;;  %8566 = vpow2.f32 %v4581_v49  ;;  %v4579_v47 = vmul.f32 1.442695, %v4477_v51  ;;  %v4464_v29 = vsub.f32 %v11678_v59, %v4362_v36  ;;  %8355 = vmatpush3.bf16.msra.mxu1 %v12630_v11 }
 0x461   : > { %7582 = vmatprep.mubr.f32.mxu1 %v8557_v25  ;;  %v4360_v61 = vpop.xlane.xlu0 %4359  ;;  %4671 = vadd.xlane.f32.xlu0 %v8557_v25 }
 0x462   : > { %v8559_v55 = vpop.eup %8558  ;;  %8568 = vpow2.f32 %v4579_v47  ;;  %v4553_v38 = vmul.f32 1.442695, %v4464_v29  ;;  %v4463_v20 = vsub.f32 %v11681_v10, %v4360_v61  ;;  %7583 = vmatmul.mubr.f32.gmra.mrb[180].mxu1 %v8555_v3  ;;  %8357 = vmatprep.subr.bf16.mxu1 %v12631_v34 }
 0x463   : > { %v4394_v30 = vpop.xlane.xlu1 %4393  ;;  %4705 = vadd.xlane.f32.xlu1 %v8559_v55 }
 0x464   : > { %v8561_v44 = vpop.eup %8560  ;;  %8570 = vpow2.f32 %v4553_v38  ;;  %v4551_v5 = vmul.f32 1.442695, %v4463_v20  ;;  %v4480_v59 = vsub.f32 %v11684_v40, %v4394_v30  ;;  %8359 = vmatpush3.bf16.msra.mxu1 %v12631_v34 }
 0x465   : > { %7638 = vmatprep.mubr.f32.mxu0 %v8561_v44  ;;  %v4392_v13 = vpop.xlane.xlu0 %4391  ;;  %4703 = vadd.xlane.f32.xlu0 %v8561_v44 }
 0x466   : > { %v8563_v33 = vpop.eup %8562  ;;  %8572 = vpow2.f32 %v4551_v5  ;;  %v4585_v58 = vmul.f32 1.442695, %v4480_v59  ;;  %v4479_v10 = vsub.f32 %v11688_v18, %v4392_v13  ;;  %7639 = vmatmul.mubr.f32.gmra.mrb[228].mxu0 %v8559_v55  ;;  %8361 = vmatprep.subr.bf16.mxu1 %v12632_v19 }
 0x467   : > { %v4366_v6 = vpop.xlane.xlu1 %4365  ;;  %4677 = vadd.xlane.f32.xlu1 %v8563_v33 }
 0x468   : > { %v8565_v63 = vpop.eup %8564  ;;  %8574 = vpow2.f32 %v4585_v58  ;;  %v4583_v62 = vmul.f32 1.442695, %v4479_v10  ;;  %v4466_v40 = vsub.f32 %v11691_v27, %v4366_v6  ;;  %8363 = vmatpush3.bf16.msra.mxu1 %v12632_v19 }
 0x469   : > { %7585 = vmatprep.mubr.f32.mxu1 %v8565_v63  ;;  %v4364_v21 = vpop.xlane.xlu0 %4363  ;;  %4675 = vadd.xlane.f32.xlu0 %v8565_v63 }
 0x46a   : > { %v8567_v53 = vpop.eup %8566  ;;  %8576 = vpow2.f32 %v4583_v62  ;;  %v4557_v26 = vmul.f32 1.442695, %v4466_v40  ;;  %v4465_v18 = vsub.f32 %v11694_v0, %v4364_v21  ;;  %7586 = vmatmul.mubr.f32.gmra.mrb[182].mxu1 %v8563_v33  ;;  %8365 = vmatprep.subr.bf16.mxu1 %v12633_v42 }
 0x46b   : > { %v4398_v23 = vpop.xlane.xlu1 %4397  ;;  %4709 = vadd.xlane.f32.xlu1 %v8567_v53 }
 0x46c   : > { %v8569_v9 = vpop.eup %8568  ;;  %8578 = vpow2.f32 %v4557_v26  ;;  %v4555_v37 = vmul.f32 1.442695, %v4465_v18  ;;  %v4482_v27 = vsub.f32 %v11697_v52, %v4398_v23  ;;  %8367 = vmatpush3.bf16.msra.mxu1 %v12633_v42 }
 0x46d   : > { %7641 = vmatprep.mubr.f32.mxu0 %v8569_v9  ;;  %v4396_v8 = vpop.xlane.xlu0 %4395  ;;  %4707 = vadd.xlane.f32.xlu0 %v8569_v9 }
 0x46e   : > { %v8571_v14 = vpop.eup %8570  ;;  %8580 = vpow2.f32 %v4555_v37  ;;  %v4589_v45 = vmul.f32 1.442695, %v4482_v27  ;;  %v4481_v0 = vsub.f32 %v11700_v60, %v4396_v8  ;;  %7642 = vmatmul.mubr.f32.gmra.mrb[230].mxu0 %v8567_v53 }
 0x46f   : > { %v4370_v24 = vpop.xlane.xlu1 %4369  ;;  %4681 = vadd.xlane.f32.xlu1 %v8571_v14 }
 0x470   : > { %v8573_v7 = vpop.eup %8572  ;;  %8582 = vpow2.f32 %v4589_v45  ;;  %v4587_v57 = vmul.f32 1.442695, %v4481_v0  ;;  %v4468_v41 = vsub.f32 %v11707_v39, %v4370_v24 }
 0x471   : > { %7588 = vmatprep.mubr.f32.mxu1 %v8573_v7  ;;  %v4368_v52 = vpop.xlane.xlu0 %4367  ;;  %4679 = vadd.xlane.f32.xlu0 %v8573_v7  ;;  %v12634_v7 = vld [vmem:[#allocation90_spill] sm:$0xff] }
 0x472   : > { %v8575_v15 = vpop.eup %8574  ;;  %8584 = vpow2.f32 %v4587_v57  ;;  %v4561_v3 = vmul.f32 1.442695, %v4468_v41  ;;  %v4467_v49 = vsub.f32 %v11715_v46, %v4368_v52  ;;  %7589 = vmatmul.mubr.f32.gmra.mrb[184].mxu1 %v8571_v14 }
 0x473   : > { %v4402_v51 = vpop.xlane.xlu1 %4401  ;;  %4713 = vadd.xlane.f32.xlu1 %v8575_v15 }
 0x474   : > { %v8577_v60 = vpop.eup %8576  ;;  %8586 = vpow2.f32 %v4561_v3  ;;  %v4559_v11 = vmul.f32 1.442695, %v4467_v49  ;;  %v4484_v36 = vsub.f32 %v11703_v12, %v4402_v51 }
 0x475   : > { %7644 = vmatprep.mubr.f32.mxu0 %v8577_v60  ;;  %v4400_v25 = vpop.xlane.xlu0 %4399  ;;  %4711 = vadd.xlane.f32.xlu0 %v8577_v60  ;;  %v12636_v60 = vld [vmem:[#allocation17_spill] sm:$0xff] }
 0x476   : > { %v8579_v39 = vpop.eup %8578  ;;  %8588 = vpow2.f32 %v4559_v11  ;;  %v4593_v47 = vmul.f32 1.442695, %v4484_v36  ;;  %v4483_v29 = vsub.f32 %v11711_v28, %v4400_v25  ;;  %7645 = vmatmul.mubr.f32.gmra.mrb[232].mxu0 %v8575_v15  ;;  %v12635_v15 = vld [vmem:[#allocation16_spill] sm:$0xff] }
 0x477   : > { %v4374_v61 = vpop.xlane.xlu1 %4373  ;;  %4685 = vadd.xlane.f32.xlu1 %v8579_v39 }
 0x478   : > { %v8581_v46 = vpop.eup %8580  ;;  %8590 = vpow2.f32 %v4593_v47  ;;  %v4591_v55 = vmul.f32 1.442695, %v4483_v29  ;;  %v4470_v38 = vsub.f32 %v11722_v16, %v4374_v61  ;;  %v12637_v47 = vld [vmem:[#allocation93_spill] sm:$0xff] }
 0x479   : > { %7591 = vmatprep.mubr.f32.mxu1 %v8581_v46  ;;  %v4372_v20 = vpop.xlane.xlu0 %4371  ;;  %4683 = vadd.xlane.f32.xlu0 %v8581_v46 }
 0x47a   : > { %v8583_v12 = vpop.eup %8582  ;;  %8592 = vpow2.f32 %v4591_v55  ;;  %v4565_v34 = vmul.f32 1.442695, %v4470_v38  ;;  %v4469_v30 = vsub.f32 %v11733_v31, %v4372_v20  ;;  %7592 = vmatmul.mubr.f32.gmra.mrb[186].mxu1 %v8579_v39  ;;  %v12638_v38 = vld [vmem:[#allocation91_spill] sm:$0xff] }
 0x47b   : > { %v4406_v44 = vpop.xlane.xlu1 %4405  ;;  %4717 = vadd.xlane.f32.xlu1 %v8583_v12 }
 0x47c   : > { %v8585_v28 = vpop.eup %8584  ;;  %8594 = vpow2.f32 %v4565_v34  ;;  %v4563_v5 = vmul.f32 1.442695, %v4469_v30  ;;  %v4486_v59 = vsub.f32 %v11718_v48, %v4406_v44  ;;  %v12639_v44 = vld [vmem:[#allocation92_spill] sm:$0xff] }
 0x47d   : > { %7647 = vmatprep.mubr.f32.mxu0 %v8585_v28  ;;  %v4404_v13 = vpop.xlane.xlu0 %4403  ;;  %4715 = vadd.xlane.f32.xlu0 %v8585_v28 }
 0x47e   : > { %v8587_v16 = vpop.eup %8586  ;;  %8596 = vpow2.f32 %v4563_v5  ;;  %v4597_v33 = vmul.f32 1.442695, %v4486_v59  ;;  %v4485_v58 = vsub.f32 %v11727_v2, %v4404_v13  ;;  %7648 = vmatmul.mubr.f32.gmra.mrb[234].mxu0 %v8583_v12 }
 0x47f   : > { %v4410_v10 = vpop.xlane.xlu1 %4409  ;;  %4689 = vadd.xlane.f32.xlu1 %v8587_v16 }
 0x480   : > { %v8589_v31 = vpop.eup %8588  ;;  %8598 = vpow2.f32 %v4597_v33  ;;  %v4595_v19 = vmul.f32 1.442695, %v4485_v58  ;;  %v4488_v6 = vsub.f32 %v11766_v17, %v4410_v10 }
 0x481   : > { %7594 = vmatprep.mubr.f32.mxu1 %v8589_v31  ;;  %v4408_v63 = vpop.xlane.xlu0 %4407  ;;  %4687 = vadd.xlane.f32.xlu0 %v8589_v31 }
 0x482   : > { %v8591_v48 = vpop.eup %8590  ;;  %8600 = vpow2.f32 %v4595_v19  ;;  %v4601_v62 = vmul.f32 1.442695, %v4488_v6  ;;  %v4487_v40 = vsub.f32 %v11769_v50, %v4408_v63  ;;  %7595 = vmatmul.mubr.f32.gmra.mrb[188].mxu1 %v8587_v16 }
 0x483   : > { %v4414_v21 = vpop.xlane.xlu1 %4413  ;;  %4721 = vadd.xlane.f32.xlu1 %v8591_v48 }
 0x484   : > { %v8593_v2 = vpop.eup %8592  ;;  %8602 = vpow2.f32 %v4601_v62  ;;  %v4599_v53 = vmul.f32 1.442695, %v4487_v40  ;;  %v4490_v26 = vsub.f32 %v11778_v32, %v4414_v21 }
 0x485   : > { %7650 = vmatprep.mubr.f32.mxu0 %v8593_v2  ;;  %v4412_v18 = vpop.xlane.xlu0 %4411  ;;  %4719 = vadd.xlane.f32.xlu0 %v8593_v2 }
 0x486   : > { %v8595_v17 = vpop.eup %8594  ;;  %8604 = vpow2.f32 %v4599_v53  ;;  %v4605_v42 = vmul.f32 1.442695, %v4490_v26  ;;  %v4489_v23 = vsub.f32 %v11781_v1, %v4412_v18  ;;  %7651 = vmatmul.mubr.f32.gmra.mrb[236].mxu0 %v8591_v48 }
 0x487   : > { %v4418_v9 = vpop.xlane.xlu1 %4417  ;;  %4693 = vadd.xlane.f32.xlu1 %v8595_v17 }
 0x488   : > { %v8597_v50 = vpop.eup %8596  ;;  %8606 = vpow2.f32 %v4605_v42  ;;  %v4603_v37 = vmul.f32 1.442695, %v4489_v23  ;;  %v4492_v27 = vsub.f32 %v11788_v56, %v4418_v9 }
 0x489   : > { %7597 = vmatprep.mubr.f32.mxu1 %v8597_v50  ;;  %v4416_v8 = vpop.xlane.xlu0 %4415  ;;  %4691 = vadd.xlane.f32.xlu0 %v8597_v50 }
 0x48a   : > { %v8599_v32 = vpop.eup %8598  ;;  %8608 = vpow2.f32 %v4603_v37  ;;  %v4609_v14 = vmul.f32 1.442695, %v4492_v27  ;;  %v4491_v45 = vsub.f32 %v11791_v54, %v4416_v8  ;;  %7598 = vmatmul.mubr.f32.gmra.mrb[190].mxu1 %v8595_v17 }
 0x48b   : > { %v4422_v0 = vpop.xlane.xlu1 %4421  ;;  %4725 = vadd.xlane.f32.xlu1 %v8599_v32 }
 0x48c   : > { %v8601_v1 = vpop.eup %8600  ;;  %8610 = vpow2.f32 %v4609_v14  ;;  %v4607_v24 = vmul.f32 1.442695, %v4491_v45  ;;  %v4494_v57 = vsub.f32 %v12634_v7, %v4422_v0 }
 0x48d   : > { %7653 = vmatprep.mubr.f32.mxu0 %v8601_v1  ;;  %v4420_v41 = vpop.xlane.xlu0 %4419  ;;  %4723 = vadd.xlane.f32.xlu0 %v8601_v1 }
 0x48e   : > { %v8603_v56 = vpop.eup %8602  ;;  %8612 = vpow2.f32 %v4607_v24  ;;  %v4613_v52 = vmul.f32 1.442695, %v4494_v57  ;;  %v4493_v3 = vsub.f32 %v12635_v15, %v4420_v41  ;;  %7654 = vmatmul.mubr.f32.gmra.mrb[238].mxu0 %v8599_v32 }
 0x48f   : > { %v4426_v49 = vpop.xlane.xlu1 %4425  ;;  %4729 = vadd.xlane.f32.xlu1 %v8603_v56 }
 0x490   : > { %v8605_v54 = vpop.eup %8604  ;;  %8614 = vpow2.f32 %v4613_v52  ;;  %v4611_v51 = vmul.f32 1.442695, %v4493_v3  ;;  %v4496_v11 = vsub.f32 %v12636_v60, %v4426_v49 }
 0x491   : > { %7688 = vmatprep.mubr.f32.mxu1 %v8605_v54  ;;  %v4424_v36 = vpop.xlane.xlu0 %4423  ;;  %4727 = vadd.xlane.f32.xlu0 %v8605_v54 }
 0x492   : > { %v8607_v25 = vpop.eup %8606  ;;  %8616 = vpow2.f32 %v4611_v51  ;;  %v4617_v39 = vmul.f32 1.442695, %v4496_v11  ;;  %v4495_v29 = vsub.f32 %v12637_v47, %v4424_v36  ;;  %7689 = vmatmul.mubr.f32.vlgmr.msra.gmra.mrb[192].mxu1 %v8603_v56  ;;  %v8762_v47 = vld [vmem:[%s8912_s20 + $0x8] sm:$0xff] }
 0x493   : > { %v4430_v61 = vpop.xlane.xlu1 %4429  ;;  %4733 = vadd.xlane.f32.xlu1 %v8607_v25 }
 0x494   : > { %v8609_v46 = vpop.eup %8608  ;;  %8618 = vpow2.f32 %v4617_v39  ;;  %v4615_v55 = vmul.f32 1.442695, %v4495_v29  ;;  %v4498_v20 = vsub.f32 %v12638_v38, %v4430_v61 }
 0x495   : > { %7691 = vmatprep.mubr.f32.mxu1 %v8609_v46  ;;  %v4428_v12 = vpop.xlane.xlu0 %4427  ;;  %4731 = vadd.xlane.f32.xlu0 %v8609_v46  ;;  %v8763_v46 = vld [vmem:[%s8912_s20] sm:$0xff] }
 0x496   : > { %v8611_v34 = vpop.eup %8610  ;;  %8620 = vpow2.f32 %v4615_v55  ;;  %v4621_v30 = vmul.f32 1.442695, %v4498_v20  ;;  %v4497_v28 = vsub.f32 %v12639_v44, %v4428_v12  ;;  %7692 = vmatmul.mubr.f32.gmra.mrb[194].mxu1 %v8607_v25 }
 0x497   : > { %v4434_v5 = vpop.xlane.xlu1 %4433  ;;  %4737 = vadd.xlane.f32.xlu1 %v8611_v34 }
 0x498   : > { %v8613_v59 = vpop.eup %8612  ;;  %8622 = vpow2.f32 %v4621_v30  ;;  %v4619_v13 = vmul.f32 1.442695, %v4497_v28  ;;  %v4500_v16 = vsub.f32 %v11824_v4, %v4434_v5 }
 0x499   : > { %7694 = vmatprep.mubr.f32.mxu1 %v8613_v59  ;;  %v4432_v33 = vpop.xlane.xlu0 %4431  ;;  %4735 = vadd.xlane.f32.xlu0 %v8613_v59 }
 0x49a   : > { %v8615_v58 = vpop.eup %8614  ;;  %8624 = vpow2.f32 %v4619_v13  ;;  %v4625_v10 = vmul.f32 1.442695, %v4500_v16  ;;  %v4499_v31 = vsub.f32 %v11828_v43, %v4432_v33  ;;  %7695 = vmatmul.mubr.f32.gmra.mrb[196].mxu1 %v8611_v34  ;;  %v8764_v13 = vld [vmem:[%s8912_s20 + $0x18] sm:$0xff] }
 0x49b   : > { %4741 = vadd.xlane.f32.xlu1 %v8615_v58  ;;  %v4438_v19 = vpop.xlane.xlu1 %4437 }
 0x49c   : > { %v8617_v6 = vpop.eup %8616  ;;  %8626 = vpow2.f32 %v4625_v10  ;;  %v4623_v63 = vmul.f32 1.442695, %v4499_v31  ;;  %v4502_v48 = vsub.f32 %v11834_v35, %v4438_v19 }
 0x49d   : > { %7697 = vmatprep.mubr.f32.mxu1 %v8617_v6  ;;  %4739 = vadd.xlane.f32.xlu0 %v8617_v6  ;;  %v4436_v62 = vpop.xlane.xlu0 %4435 }
 0x49e   : > { %v8619_v4 = vpop.eup %8618  ;;  %8628 = vpow2.f32 %v4623_v63  ;;  %v4629_v40 = vmul.f32 1.442695, %v4502_v48  ;;  %v4501_v21 = vsub.f32 %v11838_v22, %v4436_v62  ;;  %7698 = vmatmul.mubr.f32.gmra.mrb[198].mxu1 %v8615_v58  ;;  %v8765_v58 = vld [vmem:[%s8912_s20 + $0x10] sm:$0xff] }
 0x49f   : > { %4745 = vadd.xlane.f32.xlu1 %v8619_v4  ;;  %v4634_v42 = vpop.xlane.xlu1 %4633 }
 0x4a0   : > { %v8621_v2 = vpop.eup %8620  ;;  %8630 = vpow2.f32 %v4629_v40  ;;  %v4627_v43 = vmul.f32 1.442695, %v4501_v21  ;;  %v4760_v8 = vadd.f32 1.0, %v4634_v42  ;;  %v8766_v21 = vld [vmem:[%s8912_s20 + $0x28] sm:$0xff] }
 0x4a1   : > { %7700 = vmatprep.mubr.f32.mxu1 %v8621_v2  ;;  %4743 = vadd.xlane.f32.xlu0 %v8621_v2  ;;  %v4632_v23 = vpop.xlane.xlu0 %4631 }
 0x4a2   : > { %v8623_v53 = vpop.eup %8622  ;;  %8632 = vpow2.f32 %v4627_v43  ;;  %7701 = vmatmul.mubr.f32.gmra.mrb[200].mxu1 %v8619_v4  ;;  %v4759_v32 = vadd.f32 1.0, %v4632_v23 }
 0x4a3   : > { %4749 = vadd.xlane.f32.xlu1 %v8623_v53  ;;  %v4638_v9 = vpop.xlane.xlu1 %4637  ;;  %8634 = vrcp.f32 %v4760_v8 }
 0x4a4   : > { %v8625_v35 = vpop.eup %8624  ;;  %v4762_v0 = vadd.f32 1.0, %v4638_v9  ;;  %8636 = vrcp.f32 %v4759_v32  ;;  %v8769_v32 = vld [vmem:[%s8912_s20 + $0x30] sm:$0xff] }
 0x4a5   : > { %7703 = vmatprep.mubr.f32.mxu1 %v8625_v35  ;;  %4747 = vadd.xlane.f32.xlu0 %v8625_v35  ;;  %v4636_v50 = vpop.xlane.xlu0 %4635  ;;  %v8767_v35 = vld [vmem:[%s8912_s20 + $0x20] sm:$0xff] }
 0x4a6   : > { %v8627_v26 = vpop.eup %8626  ;;  %7704 = vmatmul.mubr.f32.gmra.mrb[202].mxu1 %v8623_v53  ;;  %v4761_v1 = vadd.f32 1.0, %v4636_v50  ;;  %8638 = vrcp.f32 %v4762_v0 }
 0x4a7   : > { %4753 = vadd.xlane.f32.xlu1 %v8627_v26  ;;  %v4642_v37 = vpop.xlane.xlu1 %4641 }
 0x4a8   : > { %v8629_v18 = vpop.eup %8628  ;;  %v4764_v7 = vadd.f32 1.0, %v4642_v37  ;;  %8640 = vrcp.f32 %v4761_v1  ;;  %v8768_v37 = vld [vmem:[%s8912_s20 + $0x38] sm:$0xff] }
 0x4a9   : > { %7706 = vmatprep.mubr.f32.mxu1 %v8629_v18  ;;  %4751 = vadd.xlane.f32.xlu0 %v8629_v18  ;;  %v4640_v27 = vpop.xlane.xlu0 %4639 }
 0x4aa   : > { %v8631_v22 = vpop.eup %8630  ;;  %7707 = vmatmul.mubr.f32.gmra.mrb[204].mxu1 %v8627_v26  ;;  %v4763_v41 = vadd.f32 1.0, %v4640_v27  ;;  %8642 = vrcp.f32 %v4764_v7 }
 0x4ab   : > { %4757 = vadd.xlane.f32.xlu1 %v8631_v22  ;;  %v4646_v14 = vpop.xlane.xlu1 %4645 }
 0x4ac   : > { %v8633_v17 = vpop.eup %8632  ;;  %v4766_v56 = vadd.f32 1.0, %v4646_v14  ;;  %8644 = vrcp.f32 %v4763_v41  ;;  %v8770_v41 = vld [vmem:[%s8912_s20 + $0x48] sm:$0xff] }
 0x4ad   : > { %4755 = vadd.xlane.f32.xlu0 %v8633_v17  ;;  %7709 = vmatprep.mubr.f32.mxu1 %v8633_v17  ;;  %v4644_v45 = vpop.xlane.xlu0 %4643  ;;  %v8635_v3 = vpop.eup %8634 }
 0x4ae   : > { %7710 = vmatmul.mubr.f32.gmra.mrb[206].mxu1 %v8631_v22  ;;  %v4765_v52 = vadd.f32 1.0, %v4644_v45  ;;  %v8637_v51 = vpop.eup %8636  ;;  %8646 = vrcp.f32 %v4766_v56 }
 0x4af   : > { %v4650_v24 = vpop.xlane.xlu1 %4649 }
 0x4b0   : > { %v4768_v36 = vadd.f32 1.0, %v4650_v24  ;;  %8648 = vrcp.f32 %v4765_v52  ;;  %v8639_v61 = vpop.eup %8638 }
 0x4b1   : > { %v4648_v57 = vpop.xlane.xlu0 %4647 }
 0x4b2   : > { %v4767_v39 = vadd.f32 1.0, %v4648_v57  ;;  %v8641_v20 = vpop.eup %8640  ;;  %8650 = vrcp.f32 %v4768_v36 }
 0x4b3   : > { %v4654_v15 = vpop.xlane.xlu1 %4653 }
 0x4b4   : > { %v4770_v44 = vadd.f32 1.0, %v4654_v15  ;;  %8652 = vrcp.f32 %v4767_v39  ;;  %v8643_v33 = vpop.eup %8642 }
 0x4b5   : > { %v4652_v49 = vpop.xlane.xlu0 %4651 }
 0x4b6   : > { %v4769_v59 = vadd.f32 1.0, %v4652_v49  ;;  %v8645_v19 = vpop.eup %8644  ;;  %8654 = vrcp.f32 %v4770_v44  ;;  %v8774_v44 = vld [vmem:[%s8912_s20 + $0x68] sm:$0xff] }
 0x4b7   : > { %v4658_v12 = vpop.xlane.xlu1 %4657 }
 0x4b8   : > { %v4772_v48 = vadd.f32 1.0, %v4658_v12  ;;  %8656 = vrcp.f32 %v4769_v59  ;;  %v8647_v43 = vpop.eup %8646  ;;  %v8775_v59 = vld [vmem:[%s8912_s20 + $0x60] sm:$0xff] }
 0x4b9   : > { %v4656_v28 = vpop.xlane.xlu0 %4655 }
 0x4ba   : > { %v4771_v4 = vadd.f32 1.0, %v4656_v28  ;;  %v8649_v22 = vpop.eup %8648  ;;  %8658 = vrcp.f32 %v4772_v48 }
 0x4bb   : > { %v4662_v40 = vpop.xlane.xlu1 %4661 }
 0x4bc   : > { %v4774_v23 = vadd.f32 1.0, %v4662_v40  ;;  %8660 = vrcp.f32 %v4771_v4  ;;  %v8651_v8 = vpop.eup %8650 }
 0x4bd   : > { %v4660_v53 = vpop.xlane.xlu0 %4659 }
 0x4be   : > { %v4773_v50 = vadd.f32 1.0, %v4660_v53  ;;  %v8653_v0 = vpop.eup %8652  ;;  %8662 = vrcp.f32 %v4774_v23 }
 0x4c0   : > { %8664 = vrcp.f32 %v4773_v50  ;;  %v8655_v52 = vpop.eup %8654 }
 0x4d3   : > { %v7522_v54 = vpop.f32.mrb[208].mxu0 }
 0x4d4   : > { %v5468_v60 = vmul.f32 %v8635_v3, %v7522_v54  ;;  %v4889_v11 = vpop.f32.mrb[209].mxu0  ;;  %v8771_v3 = vld [vmem:[%s8912_s20 + $0x40] sm:$0xff] }
 0x4d5   : > { %v5467_v25 = vmul.f32 %v8637_v51, %v4889_v11  ;;  %v8657_v51 = vpop.eup %8656 }
 0x4d6   : > { %v5532_v29 = vadd.f32 %v8762_v47, %v5468_v60  ;;  %v8659_v47 = vpop.eup %8658 }
 0x4d7   : > { %v5531_v55 = vadd.f32 %v8763_v46, %v5467_v25  ;;  %v7525_v38 = vpop.f32.mrb[210].mxu0  ;;  %v8772_v25 = vld [vmem:[%s8912_s20 + $0x58] sm:$0xff] }
 0x4d8   : > { %5596 = vst.msk [vmem:[%s11958_s28 + $0x8] sm:$0xff] %vm324_vm0, %v5532_v29  ;;  %v5470_v34 = vmul.f32 %v8639_v61, %v7525_v38  ;;  %v4899_v30 = vpop.f32.mrb[211].mxu0  ;;  %v8773_v29 = vld [vmem:[%s8912_s20 + $0x50] sm:$0xff] }
 0x4d9   : > { %5595 = vst.msk [vmem:[%s11958_s28] sm:$0xff] %vm324_vm0, %v5531_v55  ;;  %v5469_v5 = vmul.f32 %v8641_v20, %v4899_v30  ;;  %v4666_v57 = vpop.xlane.xlu1 %4665  ;;  %v8661_v55 = vpop.eup %8660 }
 0x4da   : > { %v5534_v16 = vadd.f32 %v8764_v13, %v5470_v34 }
 0x4db   : > { %v5533_v10 = vadd.f32 %v8765_v58, %v5469_v5  ;;  %v7528_v31 = vpop.f32.mrb[212].mxu0  ;;  %v4664_v15 = vpop.xlane.xlu0 %4663 }
 0x4dc   : > { %5598 = vst.msk [vmem:[%s11958_s28 + $0x18] sm:$0xff] %vm324_vm0, %v5534_v16  ;;  %v5472_v6 = vmul.f32 %v8643_v33, %v7528_v31  ;;  %v4909_v63 = vpop.f32.mrb[213].mxu0  ;;  %v8663_v5 = vpop.eup %8662  ;;  %v4775_v23 = vadd.f32 1.0, %v4664_v15 }
 0x4dd   : > { %5597 = vst.msk [vmem:[%s11958_s28 + $0x10] sm:$0xff] %vm324_vm0, %v5533_v10  ;;  %v5471_v62 = vmul.f32 %v8645_v19, %v4909_v63  ;;  %v8665_v33 = vpop.eup %8664 }
 0x4de   : > { %v5536_v2 = vadd.f32 %v8766_v21, %v5472_v6  ;;  %v4698_v38 = vpop.xlane.xlu1 %4697  ;;  %v8776_v6 = vld [vmem:[%s8912_s20 + $0x78] sm:$0xff] }
 0x4df   : > { %v5535_v26 = vadd.f32 %v8767_v35, %v5471_v62  ;;  %v7531_v18 = vpop.f32.mrb[214].mxu0  ;;  %v8777_v62 = vld [vmem:[%s8912_s20 + $0x70] sm:$0xff] }
 0x4e0   : > { %5600 = vst.msk [vmem:[%s11958_s28 + $0x28] sm:$0xff] %vm324_vm0, %v5536_v2  ;;  %v5474_v17 = vmul.f32 %v8647_v43, %v7531_v18  ;;  %v4919_v42 = vpop.f32.mrb[215].mxu0  ;;  %v4696_v34 = vpop.xlane.xlu0 %4695 }
 0x4e1   : > { %5599 = vst.msk [vmem:[%s11958_s28 + $0x20] sm:$0xff] %vm324_vm0, %v5535_v26  ;;  %v5473_v9 = vmul.f32 %v8649_v22, %v4919_v42  ;;  %v4776_v42 = vadd.f32 1.0, %v4666_v57 }
 0x4e2   : > { %v5538_v27 = vadd.f32 %v8768_v37, %v5474_v17  ;;  %v4792_v37 = vadd.f32 1.0, %v4698_v38 }
 0x4e3   : > { %v5537_v14 = vadd.f32 %v8769_v32, %v5473_v9  ;;  %v7534_v45 = vpop.f32.mrb[216].mxu0  ;;  %8666 = vrcp.f32 %v4776_v42 }
 0x4e4   : > { %5602 = vst.msk [vmem:[%s11958_s28 + $0x38] sm:$0xff] %vm324_vm0, %v5538_v27  ;;  %v5476_v1 = vmul.f32 %v8651_v8, %v7534_v45  ;;  %v4929_v24 = vpop.f32.mrb[217].mxu0  ;;  %v4670_v19 = vpop.xlane.xlu1 %4669  ;;  %8668 = vrcp.f32 %v4775_v23  ;;  %v4791_v27 = vadd.f32 1.0, %v4696_v34  ;;  %v8784_v23 = vld [vmem:[%s8912_s20 + $0x118] sm:$0xff] }
 0x4e5   : > { %5601 = vst.msk [vmem:[%s11958_s28 + $0x30] sm:$0xff] %vm324_vm0, %v5537_v14  ;;  %v5475_v7 = vmul.f32 %v8653_v0, %v4929_v24  ;;  %8670 = vrcp.f32 %v4792_v37  ;;  %v4778_v14 = vadd.f32 1.0, %v4670_v19 }
 0x4e6   : > { %v5540_v56 = vadd.f32 %v8770_v41, %v5476_v1  ;;  %v4668_v48 = vpop.xlane.xlu0 %4667  ;;  %8672 = vrcp.f32 %v4791_v27 }
 0x4e7   : > { %v5539_v49 = vadd.f32 %v8771_v3, %v5475_v7  ;;  %v7537_v54 = vpop.f32.mrb[218].mxu0  ;;  %v4777_v45 = vadd.f32 1.0, %v4668_v48  ;;  %8674 = vrcp.f32 %v4778_v14 }
 0x4e8   : > { %5604 = vst.msk [vmem:[%s11958_s28 + $0x48] sm:$0xff] %vm324_vm0, %v5540_v56  ;;  %v5478_v60 = vmul.f32 %v8655_v52, %v7537_v54  ;;  %v4939_v11 = vpop.f32.mrb[219].mxu0  ;;  %v4702_v40 = vpop.xlane.xlu1 %4701 }
 0x4e9   : > { %5603 = vst.msk [vmem:[%s11958_s28 + $0x40] sm:$0xff] %vm324_vm0, %v5539_v49  ;;  %v5477_v36 = vmul.f32 %v8657_v51, %v4939_v11  ;;  %v4794_v57 = vadd.f32 1.0, %v4702_v40  ;;  %8676 = vrcp.f32 %v4777_v45  ;;  %v8778_v49 = vld [vmem:[%s8912_s20 + $0x88] sm:$0xff]  ;;  %v8779_v51 = vld [vmem:[%s8912_s20 + $0x80] sm:$0xff]  ;;  %v8785_v45 = vld [vmem:[%s8912_s20 + $0x110] sm:$0xff] }
 0x4ea   : > { %v5542_v39 = vadd.f32 %v8772_v25, %v5478_v60  ;;  %v4700_v21 = vpop.xlane.xlu0 %4699 }
 0x4eb   : > { %v5541_v61 = vadd.f32 %v8773_v29, %v5477_v36  ;;  %v7540_v46 = vpop.f32.mrb[220].mxu0  ;;  %v4793_v15 = vadd.f32 1.0, %v4700_v21  ;;  %8678 = vrcp.f32 %v4794_v57 }
 0x4ec   : > { %5606 = vst.msk [vmem:[%s11958_s28 + $0x58] sm:$0xff] %vm324_vm0, %v5542_v39  ;;  %v5480_v20 = vmul.f32 %v8659_v47, %v7540_v46  ;;  %v4949_v12 = vpop.f32.mrb[221].mxu0  ;;  %v4674_v2 = vpop.xlane.xlu1 %4673 }
 0x4ed   : > { %5605 = vst.msk [vmem:[%s11958_s28 + $0x50] sm:$0xff] %vm324_vm0, %v5541_v61  ;;  %v5479_v30 = vmul.f32 %v8661_v55, %v4949_v12  ;;  %v8667_v0 = vpop.eup %8666  ;;  %v4780_v36 = vadd.f32 1.0, %v4674_v2  ;;  %8680 = vrcp.f32 %v4793_v15  ;;  %v8786_v15 = vld [vmem:[%s8912_s20 + $0xa8] sm:$0xff] }
 0x4ee   : > { %v5544_v28 = vadd.f32 %v8774_v44, %v5480_v20  ;;  %v4672_v43 = vpop.xlane.xlu0 %4671  ;;  %v8669_v7 = vpop.eup %8668  ;;  %v8780_v20 = vld [vmem:[%s8912_s20 + $0x108] sm:$0xff] }
 0x4ef   : > { %v5543_v13 = vadd.f32 %v8775_v59, %v5479_v30  ;;  %v7543_v16 = vpop.f32.mrb[222].mxu0  ;;  %v8671_v11 = vpop.eup %8670  ;;  %v4779_v47 = vadd.f32 1.0, %v4672_v43  ;;  %8682 = vrcp.f32 %v4780_v36  ;;  %v8781_v30 = vld [vmem:[%s8912_s20 + $0x100] sm:$0xff] }
 0x4f0   : > { %5608 = vst.msk [vmem:[%s11958_s28 + $0x68] sm:$0xff] %vm324_vm0, %v5544_v28  ;;  %v5482_v58 = vmul.f32 %v8663_v5, %v7543_v16  ;;  %v4959_v10 = vpop.f32.mrb[223].mxu0  ;;  %v4706_v53 = vpop.xlane.xlu1 %4705 }
 0x4f1   : > { %5607 = vst.msk [vmem:[%s11958_s28 + $0x60] sm:$0xff] %vm324_vm0, %v5543_v13  ;;  %v5481_v31 = vmul.f32 %v8665_v33, %v4959_v10  ;;  %v8673_v39 = vpop.eup %8672  ;;  %v4796_v34 = vadd.f32 1.0, %v4706_v53  ;;  %8684 = vrcp.f32 %v4779_v47 }
 0x4f2   : > { %v5546_v63 = vadd.f32 %v8776_v6, %v5482_v58  ;;  %v4704_v35 = vpop.xlane.xlu0 %4703  ;;  %v8675_v5 = vpop.eup %8674 }
 0x4f3   : > { %v5545_v4 = vadd.f32 %v8777_v62, %v5481_v31  ;;  %v4795_v28 = vadd.f32 1.0, %v4704_v35  ;;  %v8677_v13 = vpop.eup %8676  ;;  %8686 = vrcp.f32 %v4796_v34 }
 0x4f4   : > { %5610 = vst.msk [vmem:[%s11958_s28 + $0x78] sm:$0xff] %vm324_vm0, %v5546_v63  ;;  %v12008_v26 = vpop.xlane.xlu1 %4677  ;;  %v8782_v63 = vld [vmem:[%s8912_s20 + $0x98] sm:$0xff] }
 0x4f5   : > { %5609 = vst.msk [vmem:[%s11958_s28 + $0x70] sm:$0xff] %vm324_vm0, %v5545_v4  ;;  %v4782_v10 = vadd.f32 1.0, %v12008_v26  ;;  %8688 = vrcp.f32 %v4795_v28  ;;  %v8679_v62 = vpop.eup %8678  ;;  %v8783_v4 = vld [vmem:[%s8912_s20 + $0x90] sm:$0xff] }
 0x4f6   : > { %v12010_v18 = vpop.xlane.xlu0 %4675 }
 0x4f7   : > { %v4781_v6 = vadd.f32 1.0, %v12010_v18  ;;  %v8681_v2 = vpop.eup %8680  ;;  %8690 = vrcp.f32 %v4782_v10 }
 0x4f8   : > { %v12012_v22 = vpop.xlane.xlu1 %4709 }
 0x4f9   : > { %v4798_v35 = vadd.f32 1.0, %v12012_v22  ;;  %8692 = vrcp.f32 %v4781_v6  ;;  %v8683_v27 = vpop.eup %8682  ;;  %v8791_v6 = vld [vmem:[%s8912_s20 + $0xb0] sm:$0xff] }
 0x4fa   : > { %v12014_v17 = vpop.xlane.xlu0 %4707 }
 0x4fb   : > { %v4797_v18 = vadd.f32 1.0, %v12014_v17  ;;  %v8685_v22 = vpop.eup %8684  ;;  %8694 = vrcp.f32 %v4798_v35  ;;  %v8793_v35 = vld [vmem:[%s8912_s20 + $0x130] sm:$0xff] }
 0x4fc   : > { %v12016_v9 = vpop.xlane.xlu1 %4681 }
 0x4fd   : > { %v4784_v17 = vadd.f32 1.0, %v12016_v9  ;;  %8696 = vrcp.f32 %v4797_v18 }
 0x4fe   : > { %v12018_v50 = vpop.xlane.xlu0 %4679 }
 0x4ff   : > { %8698 = vrcp.f32 %v4784_v17  ;;  %v8795_v17 = vld [vmem:[%s8912_s20 + $0xc0] sm:$0xff] }
 0x500   : > { %v12020_v8 = vpop.xlane.xlu1 %4713 }
 0x502   : > { %v12022_v32 = vpop.xlane.xlu0 %4711 }
 0x504   : > { %v12024_v1 = vpop.xlane.xlu1 %4685 }
 0x506   : > { %v12026_v41 = vpop.xlane.xlu0 %4683 }
 0x508   : > { %v12032_v29 = vpop.xlane.xlu1 %4717 }
 0x50a   : > { %v12036_v55 = vpop.xlane.xlu0 %4715 }
 0x50c   : > { %v12044_v16 = vpop.xlane.xlu1 %4689 }
 0x50e   : > { %v12047_v31 = vpop.xlane.xlu0 %4687 }
 0x510   : > { %v12058_v42 = vpop.xlane.xlu1 %4721 }
 0x512   : > { %v12061_v14 = vpop.xlane.xlu0 %4719 }
 0x514   : > { %v12072_v36 = vpop.xlane.xlu1 %4693 }
 0x522   : > { %v7578_v24 = vpop.f32.mrb[176].mxu1 }
 0x523   : > { %v5484_v56 = vmul.f32 %v8667_v0, %v7578_v24  ;;  %v5034_v52 = vpop.f32.mrb[177].mxu1 }
 0x524   : > { %v5483_v3 = vmul.f32 %v8669_v7, %v5034_v52  ;;  %v4783_v52 = vadd.f32 1.0, %v12018_v50  ;;  %v12077_v50 = vpop.xlane.xlu0 %4691 }
 0x525   : > { %v5548_v54 = vadd.f32 %v8778_v49, %v5484_v56  ;;  %v8687_v49 = vpop.eup %8686 }
 0x526   : > { %v5547_v60 = vadd.f32 %v8779_v51, %v5483_v3  ;;  %8700 = vrcp.f32 %v4783_v52 }
 0x527   : > { %5612 = vst.msk [vmem:[%s11958_s28 + $0x88] sm:$0xff] %vm324_vm0, %v5548_v54  ;;  %v7634_v25 = vpop.f32.mrb[224].mxu0  ;;  %v8787_v54 = vld [vmem:[%s8912_s20 + $0xa0] sm:$0xff] }
 0x528   : > { %5611 = vst.msk [vmem:[%s11958_s28 + $0x80] sm:$0xff] %vm324_vm0, %v5547_v60  ;;  %v5500_v61 = vmul.f32 %v8671_v11, %v7634_v25  ;;  %v5179_v46 = vpop.f32.mrb[225].mxu0  ;;  %v8689_v11 = vpop.eup %8688 }
 0x529   : > { %v5499_v38 = vmul.f32 %v8673_v39, %v5179_v46  ;;  %v4800_v39 = vadd.f32 1.0, %v12020_v8  ;;  %v8788_v46 = vld [vmem:[%s8912_s20 + $0x128] sm:$0xff] }
 0x52a   : > { %v5564_v12 = vadd.f32 %v8780_v20, %v5500_v61  ;;  %v4799_v61 = vadd.f32 1.0, %v12022_v32  ;;  %v8691_v20 = vpop.eup %8690 }
 0x52b   : > { %v5563_v44 = vadd.f32 %v8781_v30, %v5499_v38  ;;  %8702 = vrcp.f32 %v4800_v39  ;;  %v8797_v39 = vld [vmem:[%s8912_s20 + $0x140] sm:$0xff] }
 0x52c   : > { %5628 = vst.msk [vmem:[%s11958_s28 + $0x108] sm:$0xff] %vm324_vm0, %v5564_v12  ;;  %v8789_v12 = vld [vmem:[%s8912_s20 + $0x120] sm:$0xff]  ;;  %8704 = vrcp.f32 %v4799_v61 }
 0x52d   : > { %5627 = vst.msk [vmem:[%s11958_s28 + $0x100] sm:$0xff] %vm324_vm0, %v5563_v44  ;;  %v7581_v59 = vpop.f32.mrb[178].mxu1  ;;  %v8693_v44 = vpop.eup %8692 }
 0x52e   : > { %v5486_v33 = vmul.f32 %v8675_v5, %v7581_v59  ;;  %v5044_v58 = vpop.f32.mrb[179].mxu1  ;;  %v4786_v5 = vadd.f32 1.0, %v12024_v1  ;;  %v4785_v59 = vadd.f32 1.0, %v12026_v41  ;;  %v8695_v10 = vpop.eup %8694  ;;  %v4802_v41 = vadd.f32 1.0, %v12032_v29 }
 0x52f   : > { %v5485_v19 = vmul.f32 %v8677_v13, %v5044_v58  ;;  %v12090_v13 = vpop.xlane.xlu1 %4725  ;;  %v8697_v1 = vpop.eup %8696 }
 0x530   : > { %v5550_v48 = vadd.f32 %v8782_v63, %v5486_v33  ;;  %v8790_v33 = vld [vmem:[%s8912_s20 + $0xb8] sm:$0xff]  ;;  %8706 = vrcp.f32 %v4786_v5 }
 0x531   : > { %v5549_v40 = vadd.f32 %v8783_v4, %v5485_v19  ;;  %v7637_v21 = vpop.f32.mrb[226].mxu0  ;;  %v12093_v19 = vpop.xlane.xlu0 %4723  ;;  %8708 = vrcp.f32 %v4785_v59 }
 0x532   : > { %5614 = vst.msk [vmem:[%s11958_s28 + $0x98] sm:$0xff] %vm324_vm0, %v5550_v48  ;;  %v5502_v43 = vmul.f32 %v8679_v62, %v7637_v21  ;;  %v5189_v53 = vpop.f32.mrb[227].mxu0  ;;  %v4801_v21 = vadd.f32 1.0, %v12036_v55  ;;  %8710 = vrcp.f32 %v4802_v41 }
 0x533   : > { %5613 = vst.msk [vmem:[%s11958_s28 + $0x90] sm:$0xff] %vm324_vm0, %v5549_v40  ;;  %v5501_v26 = vmul.f32 %v8681_v2, %v5189_v53  ;;  %v8792_v2 = vld [vmem:[%s8912_s20 + $0x138] sm:$0xff]  ;;  %v8699_v53 = vpop.eup %8698 }
 0x534   : > { %v5566_v37 = vadd.f32 %v8784_v23, %v5502_v43  ;;  %v8701_v23 = vpop.eup %8700  ;;  %8712 = vrcp.f32 %v4801_v21 }
 0x535   : > { %v5565_v0 = vadd.f32 %v8785_v45, %v5501_v26  ;;  %v7584_v24 = vpop.f32.mrb[180].mxu1  ;;  %v4788_v45 = vadd.f32 1.0, %v12044_v16  ;;  %v12109_v55 = vpop.xlane.xlu0 %4727 }
 0x536   : > { %5630 = vst.msk [vmem:[%s11958_s28 + $0x118] sm:$0xff] %vm324_vm0, %v5566_v37  ;;  %v5488_v7 = vmul.f32 %v8683_v27, %v7584_v24  ;;  %v5054_v57 = vpop.f32.mrb[181].mxu1  ;;  %v12104_v37 = vpop.xlane.xlu1 %4729  ;;  %v4787_v24 = vadd.f32 1.0, %v12047_v31 }
 0x537   : > { %5629 = vst.msk [vmem:[%s11958_s28 + $0x110] sm:$0xff] %vm324_vm0, %v5565_v0  ;;  %v5487_v56 = vmul.f32 %v8685_v22, %v5054_v57  ;;  %v8794_v22 = vld [vmem:[%s8912_s20 + $0xc8] sm:$0xff]  ;;  %v8703_v57 = vpop.eup %8702  ;;  %8714 = vrcp.f32 %v4788_v45 }
 0x538   : > { %v5552_v3 = vadd.f32 %v8786_v15, %v5488_v7  ;;  %v8705_v15 = vpop.eup %8704  ;;  %8716 = vrcp.f32 %v4787_v24 }
 0x539   : > { %v5551_v51 = vadd.f32 %v8787_v54, %v5487_v56  ;;  %v7640_v60 = vpop.f32.mrb[228].mxu0  ;;  %v4803_v54 = vadd.f32 1.0, %v12061_v14  ;;  %v4790_v14 = vadd.f32 1.0, %v12072_v36 }
 0x53a   : > { %5616 = vst.msk [vmem:[%s11958_s28 + $0xa8] sm:$0xff] %vm324_vm0, %v5552_v3  ;;  %v5504_v9 = vmul.f32 %v8687_v49, %v7640_v60  ;;  %v5199_v25 = vpop.f32.mrb[229].mxu0  ;;  %v4804_v49 = vadd.f32 1.0, %v12058_v42  ;;  %v8796_v60 = vld [vmem:[%s8912_s20 + $0x148] sm:$0xff] }
 0x53b   : > { %5615 = vst.msk [vmem:[%s11958_s28 + $0xa0] sm:$0xff] %vm324_vm0, %v5551_v51  ;;  %v5503_v47 = vmul.f32 %v8689_v11, %v5199_v25  ;;  %v12122_v51 = vpop.xlane.xlu1 %4733  ;;  %v12125_v25 = vpop.xlane.xlu0 %4731 }
 0x53c   : > { %v5568_v38 = vadd.f32 %v8788_v46, %v5504_v9  ;;  %v8707_v9 = vpop.eup %8706  ;;  %8718 = vrcp.f32 %v4804_v49 }
 0x53d   : > { %v5567_v34 = vadd.f32 %v8789_v12, %v5503_v47  ;;  %v7587_v30 = vpop.f32.mrb[182].mxu1  ;;  %v8709_v42 = vpop.eup %8708  ;;  %8720 = vrcp.f32 %v4803_v54  ;;  %v4789_v12 = vadd.f32 1.0, %v12077_v50 }
 0x53e   : > { %5632 = vst.msk [vmem:[%s11958_s28 + $0x128] sm:$0xff] %vm324_vm0, %v5568_v38  ;;  %v5490_v8 = vmul.f32 %v8691_v20, %v7587_v30  ;;  %v5064_v28 = vpop.f32.mrb[183].mxu1  ;;  %8722 = vrcp.f32 %v4790_v14 }
 0x53f   : > { %5631 = vst.msk [vmem:[%s11958_s28 + $0x120] sm:$0xff] %vm324_vm0, %v5567_v34  ;;  %v5489_v32 = vmul.f32 %v8693_v44, %v5064_v28  ;;  %v8798_v34 = vld [vmem:[%s8912_s20 + $0xd8] sm:$0xff]  ;;  %v8711_v44 = vpop.eup %8710  ;;  %v4738_v59 = vpop.xlane.xlu1 %4737  ;;  %8724 = vrcp.f32 %v4789_v12 }
 0x540   : > { %v5554_v58 = vadd.f32 %v8790_v33, %v5490_v8  ;;  %v8799_v8 = vld [vmem:[%s8912_s20 + $0xd0] sm:$0xff] }
 0x541   : > { %v5553_v63 = vadd.f32 %v8791_v6, %v5489_v32  ;;  %v7643_v48 = vpop.f32.mrb[230].mxu0  ;;  %v8713_v32 = vpop.eup %8712  ;;  %v4805_v6 = vadd.f32 1.0, %v12093_v19 }
 0x542   : > { %5618 = vst.msk [vmem:[%s11958_s28 + $0xb8] sm:$0xff] %vm324_vm0, %v5554_v58  ;;  %v5506_v62 = vmul.f32 %v8695_v10, %v7643_v48  ;;  %v5209_v4 = vpop.f32.mrb[231].mxu0  ;;  %v4806_v58 = vadd.f32 1.0, %v12090_v13  ;;  %v4736_v10 = vpop.xlane.xlu0 %4735 }
 0x543   : > { %5617 = vst.msk [vmem:[%s11958_s28 + $0xb0] sm:$0xff] %vm324_vm0, %v5553_v63  ;;  %v5505_v40 = vmul.f32 %v8697_v1, %v5209_v4  ;;  %v8800_v63 = vld [vmem:[%s8912_s20 + $0x158] sm:$0xff]  ;;  %v8715_v1 = vpop.eup %8714 }
 0x544   : > { %v5570_v43 = vadd.f32 %v8792_v2, %v5506_v62  ;;  %v8801_v62 = vld [vmem:[%s8912_s20 + $0x150] sm:$0xff]  ;;  %8726 = vrcp.f32 %v4806_v58  ;;  %v4808_v2 = vadd.f32 1.0, %v12104_v37 }
 0x545   : > { %v5569_v26 = vadd.f32 %v8793_v35, %v5505_v40  ;;  %v7590_v18 = vpop.f32.mrb[184].mxu1  ;;  %v8717_v40 = vpop.eup %8716  ;;  %8728 = vrcp.f32 %v4805_v6  ;;  %v8802_v35 = vld [vmem:[%s8912_s20 + $0xe8] sm:$0xff] }
 0x546   : > { %5634 = vst.msk [vmem:[%s11958_s28 + $0x138] sm:$0xff] %vm324_vm0, %v5570_v43  ;;  %v5492_v29 = vmul.f32 %v8699_v53, %v7590_v18  ;;  %v5074_v27 = vpop.f32.mrb[185].mxu1  ;;  %v4807_v43 = vadd.f32 1.0, %v12109_v55  ;;  %v4742_v53 = vpop.xlane.xlu1 %4741  ;;  %8730 = vrcp.f32 %v4808_v2 }
 0x547   : > { %5633 = vst.msk [vmem:[%s11958_s28 + $0x130] sm:$0xff] %vm324_vm0, %v5569_v26  ;;  %v5491_v0 = vmul.f32 %v8701_v23, %v5074_v27  ;;  %v8719_v18 = vpop.eup %8718  ;;  %v4740_v23 = vpop.xlane.xlu0 %4739  ;;  %v4814_v12 = vadd.f32 1.0, %v4742_v53 }
 0x548   : > { %v5556_v7 = vadd.f32 %v8794_v22, %v5492_v29  ;;  %v8803_v29 = vld [vmem:[%s8912_s20 + $0xe0] sm:$0xff]  ;;  %v4810_v22 = vadd.f32 1.0, %v12122_v51  ;;  %8732 = vrcp.f32 %v4807_v43  ;;  %v4812_v51 = vadd.f32 1.0, %v4738_v59  ;;  %v8809_v59 = vld [vmem:[%s8912_s20 + $0x170] sm:$0xff] }
 0x549   : > { %v5555_v56 = vadd.f32 %v8795_v17, %v5491_v0  ;;  %v7646_v52 = vpop.f32.mrb[232].mxu0  ;;  %v8721_v0 = vpop.eup %8720 }
 0x54a   : > { %5620 = vst.msk [vmem:[%s11958_s28 + $0xc8] sm:$0xff] %vm324_vm0, %v5556_v7  ;;  %v5508_v16 = vmul.f32 %v8703_v57, %v7646_v52  ;;  %v5219_v3 = vpop.f32.mrb[233].mxu0  ;;  %v4809_v7 = vadd.f32 1.0, %v12125_v25  ;;  %v8804_v57 = vld [vmem:[%s8912_s20 + $0x168] sm:$0xff]  ;;  %v8805_v52 = vld [vmem:[%s8912_s20 + $0x160] sm:$0xff]  ;;  %v4746_v49 = vpop.xlane.xlu1 %4745  ;;  %8734 = vrcp.f32 %v4810_v22  ;;  %v8806_v25 = vld [vmem:[%s8912_s20 + $0xf8] sm:$0xff] }
 0x54b   : > { %5619 = vst.msk [vmem:[%s11958_s28 + $0xc0] sm:$0xff] %vm324_vm0, %v5555_v56  ;;  %v5507_v31 = vmul.f32 %v8705_v15, %v5219_v3  ;;  %v8723_v56 = vpop.eup %8722  ;;  %v4816_v6 = vadd.f32 1.0, %v4746_v49  ;;  %v8815_v49 = vld [vmem:[%s8912_s20 + $0x1a0] sm:$0xff] }
 0x54c   : > { %v5572_v11 = vadd.f32 %v8796_v60, %v5508_v16  ;;  %v8725_v3 = vpop.eup %8724  ;;  %v4744_v60 = vpop.xlane.xlu0 %4743  ;;  %8736 = vrcp.f32 %v4809_v7 }
 0x54d   : > { %v5571_v47 = vadd.f32 %v8797_v39, %v5507_v31  ;;  %v7593_v61 = vpop.f32.mrb[186].mxu1  ;;  %8738 = vrcp.f32 %v4812_v51 }
 0x54e   : > { %5636 = vst.msk [vmem:[%s11958_s28 + $0x148] sm:$0xff] %vm324_vm0, %v5572_v11  ;;  %v5494_v46 = vmul.f32 %v8707_v9, %v7593_v61  ;;  %v5084_v38 = vpop.f32.mrb[187].mxu1  ;;  %v4811_v9 = vadd.f32 1.0, %v4736_v10  ;;  %v8807_v61 = vld [vmem:[%s8912_s20 + $0xf0] sm:$0xff] }
 0x54f   : > { %5635 = vst.msk [vmem:[%s11958_s28 + $0x140] sm:$0xff] %vm324_vm0, %v5571_v47  ;;  %v5493_v20 = vmul.f32 %v8709_v42, %v5084_v38  ;;  %v8727_v47 = vpop.eup %8726 }
 0x550   : > { %v5558_v30 = vadd.f32 %v8798_v34, %v5494_v46  ;;  %v8729_v38 = vpop.eup %8728  ;;  %8740 = vrcp.f32 %v4811_v9 }
 0x551   : > { %v5557_v28 = vadd.f32 %v8799_v8, %v5493_v20  ;;  %v7649_v5 = vpop.f32.mrb[234].mxu0  ;;  %v8808_v8 = vld [vmem:[%s8912_s20 + $0x178] sm:$0xff]  ;;  %8742 = vrcp.f32 %v4814_v12 }
 0x552   : > { %5622 = vst.msk [vmem:[%s11958_s28 + $0xd8] sm:$0xff] %vm324_vm0, %v5558_v30  ;;  %v5510_v36 = vmul.f32 %v8711_v44, %v7649_v5  ;;  %v5229_v33 = vpop.f32.mrb[235].mxu0  ;;  %v4813_v30 = vadd.f32 1.0, %v4740_v23  ;;  %v4750_v44 = vpop.xlane.xlu1 %4749  ;;  %v8812_v23 = vld [vmem:[%s8912_s20 + $0x198] sm:$0xff] }
 0x553   : > { %5621 = vst.msk [vmem:[%s11958_s28 + $0xd0] sm:$0xff] %vm324_vm0, %v5557_v28  ;;  %v5509_v50 = vmul.f32 %v8713_v32, %v5229_v33  ;;  %v8731_v5 = vpop.eup %8730  ;;  %v4748_v32 = vpop.xlane.xlu0 %4747  ;;  %v4818_v53 = vadd.f32 1.0, %v4750_v44  ;;  %v8818_v44 = vld [vmem:[%s8912_s20 + $0x1c8] sm:$0xff] }
 0x554   : > { %v5574_v48 = vadd.f32 %v8800_v63, %v5510_v36  ;;  %v8733_v58 = vpop.eup %8732  ;;  %8744 = vrcp.f32 %v4813_v30 }
 0x555   : > { %v5573_v4 = vadd.f32 %v8801_v62, %v5509_v50  ;;  %v7596_v41 = vpop.f32.mrb[188].mxu1  ;;  %8746 = vrcp.f32 %v4816_v6 }
 0x556   : > { %5638 = vst.msk [vmem:[%s11958_s28 + $0x158] sm:$0xff] %vm324_vm0, %v5574_v48  ;;  %v5496_v13 = vmul.f32 %v8715_v1, %v7596_v41  ;;  %v5094_v21 = vpop.f32.mrb[189].mxu1  ;;  %v4815_v48 = vadd.f32 1.0, %v4744_v60  ;;  %v8810_v1 = vld [vmem:[%s8912_s20 + $0x188] sm:$0xff]  ;;  %v8811_v41 = vld [vmem:[%s8912_s20 + $0x180] sm:$0xff]  ;;  %v4754_v2 = vpop.xlane.xlu1 %4753 }
 0x557   : > { %5637 = vst.msk [vmem:[%s11958_s28 + $0x150] sm:$0xff] %vm324_vm0, %v5573_v4  ;;  %v5495_v19 = vmul.f32 %v8717_v40, %v5094_v21  ;;  %v8735_v4 = vpop.eup %8734  ;;  %v4820_v7 = vadd.f32 1.0, %v4754_v2 }
 0x558   : > { %v5560_v26 = vadd.f32 %v8802_v35, %v5496_v13  ;;  %v8737_v21 = vpop.eup %8736  ;;  %v4752_v35 = vpop.xlane.xlu0 %4751  ;;  %8748 = vrcp.f32 %v4815_v48  ;;  %v8821_v48 = vld [vmem:[%s8912_s20 + $0x1d0] sm:$0xff] }
 0x559   : > { %v5559_v27 = vadd.f32 %v8803_v29, %v5495_v19  ;;  %v7652_v45 = vpop.f32.mrb[236].mxu0  ;;  %8750 = vrcp.f32 %v4818_v53 }
 0x55a   : > { %5624 = vst.msk [vmem:[%s11958_s28 + $0xe8] sm:$0xff] %vm324_vm0, %v5560_v26  ;;  %v5512_v37 = vmul.f32 %v8719_v18, %v7652_v45  ;;  %v5239_v24 = vpop.f32.mrb[237].mxu0  ;;  %v4817_v18 = vadd.f32 1.0, %v4748_v32  ;;  %v8813_v45 = vld [vmem:[%s8912_s20 + $0x190] sm:$0xff] }
 0x55b   : > { %5623 = vst.msk [vmem:[%s11958_s28 + $0xe0] sm:$0xff] %vm324_vm0, %v5559_v27  ;;  %v5511_v55 = vmul.f32 %v8721_v0, %v5239_v24  ;;  %v8739_v27 = vpop.eup %8738 }
 0x55c   : > { %v5576_v17 = vadd.f32 %v8804_v57, %v5512_v37  ;;  %v8741_v24 = vpop.eup %8740  ;;  %8752 = vrcp.f32 %v4817_v18 }
 0x55d   : > { %v5575_v15 = vadd.f32 %v8805_v52, %v5511_v55  ;;  %v7599_v16 = vpop.f32.mrb[190].mxu1  ;;  %v8814_v52 = vld [vmem:[%s8912_s20 + $0x1a8] sm:$0xff]  ;;  %8754 = vrcp.f32 %v4820_v7 }
 0x55e   : > { %5640 = vst.msk [vmem:[%s11958_s28 + $0x168] sm:$0xff] %vm324_vm0, %v5576_v17  ;;  %v5498_v31 = vmul.f32 %v8723_v56, %v7599_v16  ;;  %v5104_v54 = vpop.f32.mrb[191].mxu1  ;;  %v4819_v17 = vadd.f32 1.0, %v4752_v35  ;;  %v4758_v56 = vpop.xlane.xlu1 %4757 }
 0x55f   : > { %5639 = vst.msk [vmem:[%s11958_s28 + $0x160] sm:$0xff] %vm324_vm0, %v5575_v15  ;;  %v5497_v11 = vmul.f32 %v8725_v3, %v5104_v54  ;;  %v8743_v16 = vpop.eup %8742  ;;  %v4756_v3 = vpop.xlane.xlu0 %4755  ;;  %v4822_v9 = vadd.f32 1.0, %v4758_v56 }
 0x560   : > { %v5562_v39 = vadd.f32 %v8806_v25, %v5498_v31  ;;  %v8745_v51 = vpop.eup %8744  ;;  %8756 = vrcp.f32 %v4819_v17 }
 0x561   : > { %v5561_v42 = vadd.f32 %v8807_v61, %v5497_v11  ;;  %v7655_v46 = vpop.f32.mrb[238].mxu0  ;;  %8758 = vrcp.f32 %v4822_v9 }
 0x562   : > { %5626 = vst.msk [vmem:[%s11958_s28 + $0xf8] sm:$0xff] %vm324_vm0, %v5562_v39  ;;  %v5514_v14 = vmul.f32 %v8727_v47, %v7655_v46  ;;  %v5249_v20 = vpop.f32.mrb[239].mxu0  ;;  %v4821_v39 = vadd.f32 1.0, %v4756_v3  ;;  %v8816_v47 = vld [vmem:[%s8912_s20 + $0x1b8] sm:$0xff]  ;;  %v8817_v46 = vld [vmem:[%s8912_s20 + $0x1b0] sm:$0xff] }
 0x563   : > { %5625 = vst.msk [vmem:[%s11958_s28 + $0xf0] sm:$0xff] %vm324_vm0, %v5561_v42  ;;  %v5513_v34 = vmul.f32 %v8729_v38, %v5249_v20  ;;  %v8747_v42 = vpop.eup %8746 }
 0x564   : > { %v5578_v28 = vadd.f32 %v8808_v8, %v5514_v14  ;;  %v8749_v20 = vpop.eup %8748  ;;  %8760 = vrcp.f32 %v4821_v39 }
 0x565   : > { %v5577_v36 = vadd.f32 %v8809_v59, %v5513_v34  ;;  %v7690_v33 = vpop.f32.mrb[192].mxu1 }
 0x566   : > { %5642 = vst.msk [vmem:[%s11958_s28 + $0x178] sm:$0xff] %vm324_vm0, %v5578_v28  ;;  %v5516_v10 = vmul.f32 %v8731_v5, %v7690_v33  ;;  %v5324_v50 = vpop.f32.mrb[193].mxu1  ;;  %v8751_v28 = vpop.eup %8750  ;;  %v8819_v5 = vld [vmem:[%s8912_s20 + $0x1c0] sm:$0xff] }
 0x567   : > { %5641 = vst.msk [vmem:[%s11958_s28 + $0x170] sm:$0xff] %vm324_vm0, %v5577_v36  ;;  %v5515_v63 = vmul.f32 %v8733_v58, %v5324_v50  ;;  %v8753_v36 = vpop.eup %8752  ;;  %v8820_v50 = vld [vmem:[%s8912_s20 + $0x1d8] sm:$0xff] }
 0x568   : > { %v5580_v62 = vadd.f32 %v8810_v1, %v5516_v10 }
 0x569   : > { %v5579_v40 = vadd.f32 %v8811_v41, %v5515_v63  ;;  %v7693_v13 = vpop.f32.mrb[194].mxu1  ;;  %v8755_v63 = vpop.eup %8754 }
 0x56a   : > { %5644 = vst.msk [vmem:[%s11958_s28 + $0x188] sm:$0xff] %vm324_vm0, %v5580_v62  ;;  %v5518_v19 = vmul.f32 %v8735_v4, %v7693_v13  ;;  %v5334_v43 = vpop.f32.mrb[195].mxu1  ;;  %v8757_v4 = vpop.eup %8756 }
 0x56b   : > { %5643 = vst.msk [vmem:[%s11958_s28 + $0x180] sm:$0xff] %vm324_vm0, %v5579_v40  ;;  %v5517_v26 = vmul.f32 %v8737_v21, %v5334_v43  ;;  %v8822_v21 = vld [vmem:[%s8912_s20 + $0x1e8] sm:$0xff]  ;;  %v8823_v43 = vld [vmem:[%s8912_s20 + $0x1e0] sm:$0xff] }
 0x56c   : > { %v5582_v29 = vadd.f32 %v8812_v23, %v5518_v19  ;;  %v8759_v19 = vpop.eup %8758 }
 0x56d   : > { %v5581_v0 = vadd.f32 %v8813_v45, %v5517_v26  ;;  %v7696_v37 = vpop.f32.mrb[196].mxu1 }
 0x56e   : > { %5646 = vst.msk [vmem:[%s11958_s28 + $0x198] sm:$0xff] %vm324_vm0, %v5582_v29  ;;  %v5520_v22 = vmul.f32 %v8739_v27, %v7696_v37  ;;  %v5344_v55 = vpop.f32.mrb[197].mxu1  ;;  %v8761_v26 = vpop.eup %8760  ;;  %v8824_v27 = vld [vmem:[%s8912_s20 + $0x1f8] sm:$0xff] }
 0x56f   : > { %5645 = vst.msk [vmem:[%s11958_s28 + $0x190] sm:$0xff] %vm324_vm0, %v5581_v0  ;;  %v5519_v57 = vmul.f32 %v8741_v24, %v5344_v55  ;;  %v8825_v0 = vld [vmem:[%s8912_s20 + $0x1f0] sm:$0xff] }
 0x570   : > { %v5584_v15 = vadd.f32 %v8814_v52, %v5520_v22 }
 0x571   : > { %v5583_v31 = vadd.f32 %v8815_v49, %v5519_v57  ;;  %v7699_v54 = vpop.f32.mrb[198].mxu1 }
 0x572   : > { %5648 = vst.msk [vmem:[%s11958_s28 + $0x1a8] sm:$0xff] %vm324_vm0, %v5584_v15  ;;  %v5522_v60 = vmul.f32 %v8743_v16, %v7699_v54  ;;  %v5354_v11 = vpop.f32.mrb[199].mxu1 }
 0x573   : > { %5647 = vst.msk [vmem:[%s11958_s28 + $0x1a0] sm:$0xff] %vm324_vm0, %v5583_v31  ;;  %v5521_v25 = vmul.f32 %v8745_v51, %v5354_v11 }
 0x574   : > { %v5586_v61 = vadd.f32 %v8816_v47, %v5522_v60 }
 0x575   : > { %v5585_v38 = vadd.f32 %v8817_v46, %v5521_v25  ;;  %v7702_v14 = vpop.f32.mrb[200].mxu1 }
 0x576   : > { %5650 = vst.msk [vmem:[%s11958_s28 + $0x1b8] sm:$0xff] %vm324_vm0, %v5586_v61  ;;  %v5524_v12 = vmul.f32 %v8747_v42, %v7702_v14  ;;  %v5364_v34 = vpop.f32.mrb[201].mxu1 }
 0x577   : > { %5649 = vst.msk [vmem:[%s11958_s28 + $0x1b0] sm:$0xff] %vm324_vm0, %v5585_v38  ;;  %v5523_v30 = vmul.f32 %v8749_v20, %v5364_v34 }
 0x578   : > { %v5588_v8 = vadd.f32 %v8818_v44, %v5524_v12 }
 0x579   : > { %v5587_v32 = vadd.f32 %v8819_v5, %v5523_v30  ;;  %v7705_v59 = vpop.f32.mrb[202].mxu1 }
 0x57a   : > { %5652 = vst.msk [vmem:[%s11958_s28 + $0x1c8] sm:$0xff] %vm324_vm0, %v5588_v8  ;;  %v5526_v33 = vmul.f32 %v8751_v28, %v7705_v59  ;;  %v5374_v58 = vpop.f32.mrb[203].mxu1 }
 0x57b   : > { %5651 = vst.msk [vmem:[%s11958_s28 + $0x1c0] sm:$0xff] %vm324_vm0, %v5587_v32  ;;  %v5525_v10 = vmul.f32 %v8753_v36, %v5374_v58 }
 0x57c   : > { %v5590_v6 = vadd.f32 %v8820_v50, %v5526_v33 }
 0x57d   : > { %v5589_v1 = vadd.f32 %v8821_v48, %v5525_v10  ;;  %v7708_v62 = vpop.f32.mrb[204].mxu1 }
 0x57e   : > { %5654 = vst.msk [vmem:[%s11958_s28 + $0x1d8] sm:$0xff] %vm324_vm0, %v5590_v6  ;;  %v5528_v41 = vmul.f32 %v8755_v63, %v7708_v62  ;;  %v5384_v40 = vpop.f32.mrb[205].mxu1 }
 0x57f   : > { %5653 = vst.msk [vmem:[%s11958_s28 + $0x1d0] sm:$0xff] %vm324_vm0, %v5589_v1  ;;  %v5527_v13 = vmul.f32 %v8757_v4, %v5384_v40 }
 0x580   : > { %v5592_v2 = vadd.f32 %v8822_v21, %v5528_v41 }
 0x581   : > { %v5591_v53 = vadd.f32 %v8823_v43, %v5527_v13  ;;  %v7711_v35 = vpop.f32.mrb[206].mxu1 }
 0x582   : > { %5656 = vst.msk [vmem:[%s11958_s28 + $0x1e8] sm:$0xff] %vm324_vm0, %v5592_v2  ;;  %v5530_v18 = vmul.f32 %v8759_v19, %v7711_v35  ;;  %v5394_v23 = vpop.f32.mrb[207].mxu1 }
 0x583   : > { %5655 = vst.msk [vmem:[%s11958_s28 + $0x1e0] sm:$0xff] %vm324_vm0, %v5591_v53  ;;  %v5529_v29 = vmul.f32 %v8761_v26, %v5394_v23 }
 0x584   : > { %v5594_v45 = vadd.f32 %v8824_v27, %v5530_v18 }
 0x585   : > { %v5593_v37 = vadd.f32 %v8825_v0, %v5529_v29 }
 0x586   : > { %5658 = vst.msk [vmem:[%s11958_s28 + $0x1f8] sm:$0xff] %vm324_vm0, %v5594_v45 }
 0x587   : > { %5657 = vst.msk [vmem:[%s11958_s28 + $0x1f0] sm:$0xff] %vm324_vm0, %v5593_v37 }
 0x588 PF: > { %s14_s15 = sadd.s32 1, %s8832_s15  }
 0x589   : > { %p11_p4 = scmp.ge.s32.totalorder %s14_s15, 4  }
 0x58b   :  { %13 = sbr.rel (!%p11_p4) target bundleno = 1 (0x1), region = 69 }

</bundles_post_ra>
